<compile_context>
chip_gen: v7x
topology: tpu7x:2x2x1
jax: 0.10.0
libtpu: 0.0.40
codegen_flags: <defaults>
</compile_context>

<pallas_src>
import jax
import jax.numpy as jnp
from jax import lax
from jax.experimental import pallas as pl
from jax.experimental.pallas import tpu as pltpu

# ----------------------------- model hyper-params (small) -----------------------------
B = 2          # batch
S_LEN = 8      # source sequence length
T_LEN = 8      # target sequence length
D_MODEL = 32
HEADS = 4
D_K = D_MODEL // HEADS
D_FF = 64
N_LAYERS = 2
VOCAB_IN = 16
VOCAB_OUT = 16
SRC_PAD = 0
TRG_PAD = 0
MAX_LEN = 64
NEG_INF = -1e9
LN_EPS = 1e-5


# --------------------------------- in-kernel helpers ---------------------------------
def _dot_wT(x, w):
    """x:(N,din) @ w^T with w:(dout,din) torch layout — contraction on last dims, no transpose."""
    return lax.dot_general(x, w, (((1,), (1,)), ((), ())),
                           preferred_element_type=jnp.float32)


def _add_ln(x, s, g, b):
    """LayerNorm(x + s) over last dim, eps=1e-5 (PyTorch default). g,b: (1, D)."""
    z = x + s
    mu = jnp.mean(z, axis=-1, keepdims=True)
    var = jnp.mean((z - mu) * (z - mu), axis=-1, keepdims=True)
    return (z - mu) * lax.rsqrt(var + LN_EPS) * g + b


def _ffn(x, w1, b1, w2, b2):
    """FFN(x) = max(0, x W1^T + b1) W2^T + b2."""
    h = jnp.maximum(_dot_wT(x, w1) + b1, 0.0)
    return _dot_wT(h, w2) + b2


def _mha(x_q, x_kv, bias, wqkv, bqkv, wo, bo, *, self_attn):
    """Multi-head attention on one batch element.

    x_q: (Lq, D), x_kv: (Lk, D), bias: additive mask broadcastable to (Lq, Lk).
    wqkv: (3D, D) fused [Wq; Wk; Wv] (torch layout), bqkv: (1, 3D), wo: (D, D), bo: (1, D).
    Returns (out (Lq, D), [per-head attention maps (Lq, Lk)]).
    """
    d, dk = D_MODEL, D_K
    inv_scale = 1.0 / (float(dk) ** 0.5)
    if self_attn:
        qkv = _dot_wT(x_q, wqkv) + bqkv                       # one fused (L,3D) matmul
        q, k, v = qkv[:, :d], qkv[:, d:2 * d], qkv[:, 2 * d:]
    else:
        q = _dot_wT(x_q, wqkv[:d]) + bqkv[:, :d]              # Q from query stream
        kv = _dot_wT(x_kv, wqkv[d:]) + bqkv[:, d:]            # fused K/V from kv stream
        k, v = kv[:, :d], kv[:, d:]

    outs, attns = [], []
    for h in range(HEADS):
        lo, hi = h * dk, (h + 1) * dk
        qh, kh, vh = q[:, lo:hi], k[:, lo:hi], v[:, lo:hi]
        s = _dot_wT(qh, kh) * inv_scale + bias                # Q K^T (contract dk), no transpose
        m = jnp.max(s, axis=-1, keepdims=True)
        p = jnp.exp(s - m)
        denom = jnp.sum(p, axis=-1, keepdims=True)
        a = p * pl.reciprocal(denom, approx=True)
        outs.append(jnp.dot(a, vh, preferred_element_type=jnp.float32))
        attns.append(a)
    out = jnp.concatenate(outs, axis=-1)                      # (Lq, D)
    out = _dot_wT(out, wo) + bo
    return out, attns


# ----------------------------------- Pallas kernels -----------------------------------
def encoder_kernel(x_ref, srcv_ref,
                   wqkv_ref, bqkv_ref, wo_ref, bo_ref,
                   ln1g_ref, ln1b_ref, ln2g_ref, ln2b_ref,
                   w1_ref, b1_ref, w2_ref, b2_ref,
                   o_ref):
    """Whole encoder stack for one batch element. Grid axis = batch."""
    x = x_ref[0]                                   # (S, D)
    srcv = srcv_ref[0]                             # (1, S) float: 1=valid, 0=pad
    bias = jnp.where(srcv > 0.5, 0.0, NEG_INF)     # additive key-padding bias, broadcasts to (S, S)
    for l in range(N_LAYERS):
        attn_out, _ = _mha(x, x, bias,
                           wqkv_ref[l], bqkv_ref[l], wo_ref[l], bo_ref[l],
                           self_attn=True)
        x = _add_ln(x, attn_out, ln1g_ref[l], ln1b_ref[l])
        f = _ffn(x, w1_ref[l], b1_ref[l], w2_ref[l], b2_ref[l])
        x = _add_ln(x, f, ln2g_ref[l], ln2b_ref[l])
    o_ref[0] = x.astype(o_ref.dtype)


def decoder_kernel(y_ref, enc_ref, srcv_ref, trgv_ref,
                   sa_wqkv_ref, sa_bqkv_ref, sa_wo_ref, sa_bo_ref,
                   ca_wqkv_ref, ca_bqkv_ref, ca_wo_ref, ca_bo_ref,
                   ln1g_ref, ln1b_ref, ln2g_ref, ln2b_ref, ln3g_ref, ln3b_ref,
                   w1_ref, b1_ref, w2_ref, b2_ref,
                   emb_ref, fcb_ref,
                   logits_ref, attn_ref):
    """Whole decoder stack + tied fc_out projection for one batch element."""
    t = y_ref.shape[1]
    y = y_ref[0]                                   # (T, D)
    enc = enc_ref[0]                               # (S, D)
    srcv = srcv_ref[0]                             # (1, S)
    trgv = trgv_ref[0]                             # (1, T)

    src_bias = jnp.where(srcv > 0.5, 0.0, NEG_INF)                    # (1, S)
    row = lax.broadcasted_iota(jnp.int32, (t, t), 0)
    col = lax.broadcasted_iota(jnp.int32, (t, t), 1)
    trg_bias = jnp.where((row >= col) & (trgv > 0.5), 0.0, NEG_INF)   # causal + key padding

    attn_heads = None
    for l in range(N_LAYERS):
        sa_out, _ = _mha(y, y, trg_bias,
                         sa_wqkv_ref[l], sa_bqkv_ref[l], sa_wo_ref[l], sa_bo_ref[l],
                         self_attn=True)
        y = _add_ln(y, sa_out, ln1g_ref[l], ln1b_ref[l])
        ca_out, attn_heads = _mha(y, enc, src_bias,
                                  ca_wqkv_ref[l], ca_bqkv_ref[l], ca_wo_ref[l], ca_bo_ref[l],
                                  self_attn=False)
        y = _add_ln(y, ca_out, ln2g_ref[l], ln2b_ref[l])
        f = _ffn(y, w1_ref[l], b1_ref[l], w2_ref[l], b2_ref[l])
        y = _add_ln(y, f, ln3g_ref[l], ln3b_ref[l])

    # fc_out: weight tied to decoder token embedding (VOCAB_OUT, D) — y @ emb^T + b
    logits = _dot_wT(y, emb_ref[...]) + fcb_ref[...]
    logits_ref[0] = logits.astype(logits_ref.dtype)

    # only the last decoder layer's cross-attention map is returned by the model
    for h in range(HEADS):
        attn_ref[0, h, :, :] = attn_heads[h].astype(attn_ref.dtype)


# ----------------------------------- kernel wrappers -----------------------------------
def _full_spec(arr):
    nd = arr.ndim
    return pl.BlockSpec(arr.shape, lambda i, _nd=nd: (0,) * _nd)


ENC_WEIGHT_KEYS = ("wqkv", "bqkv", "wo", "bo",
                   "ln1_g", "ln1_b", "ln2_g", "ln2_b",
                   "w1", "b1", "w2", "b2")

DEC_WEIGHT_KEYS = ("sa_wqkv", "sa_bqkv", "sa_wo", "sa_bo",
                   "ca_wqkv", "ca_bqkv", "ca_wo", "ca_bo",
                   "ln1_g", "ln1_b", "ln2_g", "ln2_b", "ln3_g", "ln3_b",
                   "w1", "b1", "w2", "b2")


def encoder_forward(p, x, src_valid):
    b, s, d = x.shape
    weights = [p[k] for k in ENC_WEIGHT_KEYS]
    in_specs = [pl.BlockSpec((1, s, d), lambda i: (i, 0, 0)),
                pl.BlockSpec((1, 1, s), lambda i: (i, 0, 0))]
    in_specs += [_full_spec(w) for w in weights]
    return pl.pallas_call(
        encoder_kernel,
        grid=(b,),
        out_shape=jax.ShapeDtypeStruct((b, s, d), jnp.float32),
        in_specs=in_specs,
        out_specs=pl.BlockSpec((1, s, d), lambda i: (i, 0, 0)),
        compiler_params=pltpu.CompilerParams(dimension_semantics=("parallel",)),
    )(x, src_valid, *weights)


def decoder_forward(p, y, enc_src, src_valid, trg_valid, dec_emb, fc_out_b):
    b, t, d = y.shape
    s = enc_src.shape[1]
    v = dec_emb.shape[0]
    weights = [p[k] for k in DEC_WEIGHT_KEYS]
    in_specs = [pl.BlockSpec((1, t, d), lambda i: (i, 0, 0)),
                pl.BlockSpec((1, s, d), lambda i: (i, 0, 0)),
                pl.BlockSpec((1, 1, s), lambda i: (i, 0, 0)),
                pl.BlockSpec((1, 1, t), lambda i: (i, 0, 0))]
    in_specs += [_full_spec(w) for w in weights]
    in_specs += [_full_spec(dec_emb), _full_spec(fc_out_b)]
    return pl.pallas_call(
        decoder_kernel,
        grid=(b,),
        out_shape=(jax.ShapeDtypeStruct((b, t, v), jnp.float32),
                   jax.ShapeDtypeStruct((b, HEADS, t, s), jnp.float32)),
        in_specs=in_specs,
        out_specs=(pl.BlockSpec((1, t, v), lambda i: (i, 0, 0)),
                   pl.BlockSpec((1, HEADS, t, s), lambda i: (i, 0, 0, 0))),
        compiler_params=pltpu.CompilerParams(dimension_semantics=("parallel",)),
    )(y, enc_src, src_valid, trg_valid, *weights, dec_emb, fc_out_b)


# -------------------------------------- parameters --------------------------------------
def positional_encoding_table(max_len, d_model):
    pos = jnp.arange(max_len, dtype=jnp.float32)[:, None]
    two_i = jnp.arange(0, d_model, 2, dtype=jnp.float32)
    div = jnp.power(10000.0, two_i / d_model)
    pe = jnp.zeros((max_len, d_model), jnp.float32)
    pe = pe.at[:, 0::2].set(jnp.sin(pos / div))
    pe = pe.at[:, 1::2].set(jnp.cos(pos / div))
    return pe


def init_params(key):
    keys = iter(jax.random.split(key, 64))

    def nrm(shape, scale=0.05):
        return (scale * jax.random.normal(next(keys), shape)).astype(jnp.float32)

    def ones(shape):
        return jnp.ones(shape, jnp.float32)

    def zeros(shape):
        return jnp.zeros(shape, jnp.float32)

    def attn_block():
        # fused [Wq; Wk; Wv] (3D, D) torch layout + fused bias (1, 3D); output proj (D, D)
        return (nrm((N_LAYERS, 3 * D_MODEL, D_MODEL)), nrm((N_LAYERS, 1, 3 * D_MODEL), 0.01),
                nrm((N_LAYERS, D_MODEL, D_MODEL)), nrm((N_LAYERS, 1, D_MODEL), 0.01))

    e_wqkv, e_bqkv, e_wo, e_bo = attn_block()
    enc = {
        "wqkv": e_wqkv, "bqkv": e_bqkv, "wo": e_wo, "bo": e_bo,
        "ln1_g": ones((N_LAYERS, 1, D_MODEL)), "ln1_b": zeros((N_LAYERS, 1, D_MODEL)),
        "ln2_g": ones((N_LAYERS, 1, D_MODEL)), "ln2_b": zeros((N_LAYERS, 1, D_MODEL)),
        "w1": nrm((N_LAYERS, D_FF, D_MODEL)), "b1": nrm((N_LAYERS, 1, D_FF), 0.01),
        "w2": nrm((N_LAYERS, D_MODEL, D_FF)), "b2": nrm((N_LAYERS, 1, D_MODEL), 0.01),
    }

    sa_wqkv, sa_bqkv, sa_wo, sa_bo = attn_block()
    ca_wqkv, ca_bqkv, ca_wo, ca_bo = attn_block()
    dec = {
        "sa_wqkv": sa_wqkv, "sa_bqkv": sa_bqkv, "sa_wo": sa_wo, "sa_bo": sa_bo,
        "ca_wqkv": ca_wqkv, "ca_bqkv": ca_bqkv, "ca_wo": ca_wo, "ca_bo": ca_bo,
        "ln1_g": ones((N_LAYERS, 1, D_MODEL)), "ln1_b": zeros((N_LAYERS, 1, D_MODEL)),
        "ln2_g": ones((N_LAYERS, 1, D_MODEL)), "ln2_b": zeros((N_LAYERS, 1, D_MODEL)),
        "ln3_g": ones((N_LAYERS, 1, D_MODEL)), "ln3_b": zeros((N_LAYERS, 1, D_MODEL)),
        "w1": nrm((N_LAYERS, D_FF, D_MODEL)), "b1": nrm((N_LAYERS, 1, D_FF), 0.01),
        "w2": nrm((N_LAYERS, D_MODEL, D_FF)), "b2": nrm((N_LAYERS, 1, D_MODEL), 0.01),
    }

    return {
        "enc_emb": nrm((VOCAB_IN, D_MODEL), 0.1),
        "dec_emb": nrm((VOCAB_OUT, D_MODEL), 0.1),   # tied with fc_out.weight
        "fc_out_b": nrm((1, VOCAB_OUT), 0.01),
        "pe": positional_encoding_table(MAX_LEN, D_MODEL),
        "enc": enc,
        "dec": dec,
    }


# ------------------------------------- full forward -------------------------------------
def transformer_forward(params, src, trg):
    bsz, s_len = src.shape
    t_len = trg.shape[1]
    scale = float(D_MODEL) ** 0.5

    # tiny per-token pad-validity masks (float: 1 valid, 0 pad); full biases built in-kernel
    src_valid = (src != SRC_PAD).astype(jnp.float32).reshape(bsz, 1, s_len)
    trg_valid = (trg != TRG_PAD).astype(jnp.float32).reshape(bsz, 1, t_len)

    # embedding lookup + positional encoding (gather stays in plain JAX glue)
    x = params["enc_emb"][src] * scale + params["pe"][:s_len][None]
    enc_src = encoder_forward(params["enc"], x, src_valid)

    y = params["dec_emb"][trg] * scale + params["pe"][:t_len][None]
    logits, attention = decoder_forward(params["dec"], y, enc_src, src_valid, trg_valid,
                                        params["dec_emb"], params["fc_out_b"])
    return logits, attention


# ------------------------------------------ main ------------------------------------------
if __name__ == "__main__":
    key = jax.random.PRNGKey(0)
    k_params, k_src, k_trg = jax.random.split(key, 3)

    params = init_params(k_params)
    src = jax.random.randint(k_src, (B, S_LEN), 0, VOCAB_IN, dtype=jnp.int32)
    trg = jax.random.randint(k_trg, (B, T_LEN), 0, VOCAB_OUT, dtype=jnp.int32)
    # make sure some pad tokens exist to exercise masking
    src = src.at[:, -1].set(SRC_PAD)
    trg = trg.at[:, -1].set(TRG_PAD)

    fwd = jax.jit(transformer_forward)
    logits, attention = fwd(params, src, trg)
    jax.block_until_ready((logits, attention))

    assert logits.shape == (B, T_LEN, VOCAB_OUT)
    assert attention.shape == (B, HEADS, T_LEN, S_LEN)
    assert bool(jnp.all(jnp.isfinite(logits)))
    # attention rows sum to ~1 (tolerance loosened for approx reciprocal)
    assert bool(jnp.allclose(jnp.sum(attention, axis=-1), 1.0, atol=1e-2))

    print("KERNEL_OK")
</pallas_src>

<mosaic_0001>
module attributes {stable_mosaic.version = 11 : i64} {
  func.func @encoder_kernel(%arg0: i32, %arg1: memref<1x8x32xf32, #tpu.memory_space<vmem>>, %arg2: memref<1x1x8xf32, #tpu.memory_space<vmem>>, %arg3: memref<2x96x32xf32, #tpu.memory_space<vmem>>, %arg4: memref<2x1x96xf32, #tpu.memory_space<vmem>>, %arg5: memref<2x32x32xf32, #tpu.memory_space<vmem>>, %arg6: memref<2x1x32xf32, #tpu.memory_space<vmem>>, %arg7: memref<2x1x32xf32, #tpu.memory_space<vmem>>, %arg8: memref<2x1x32xf32, #tpu.memory_space<vmem>>, %arg9: memref<2x1x32xf32, #tpu.memory_space<vmem>>, %arg10: memref<2x1x32xf32, #tpu.memory_space<vmem>>, %arg11: memref<2x64x32xf32, #tpu.memory_space<vmem>>, %arg12: memref<2x1x64xf32, #tpu.memory_space<vmem>>, %arg13: memref<2x32x64xf32, #tpu.memory_space<vmem>>, %arg14: memref<2x1x32xf32, #tpu.memory_space<vmem>>, %arg15: memref<1x8x32xf32, #tpu.memory_space<vmem>>) attributes {dimension_semantics = [#tpu.dimension_semantics<parallel>], iteration_bounds = array<i64: 2>, scalar_prefetch = 0 : i64, scratch_operands = 0 : i64, tpu.core_type = #tpu.core_type<tc>, window_params = [{transform_indices = @transform_0, window_bounds = array<i64: 1, 8, 32>}, {transform_indices = @transform_1, window_bounds = array<i64: 1, 1, 8>}, {pipeline_mode = #tpu.pipeline_mode<synchronous>, transform_indices = @transform_2, window_bounds = array<i64: 2, 96, 32>}, {pipeline_mode = #tpu.pipeline_mode<synchronous>, transform_indices = @transform_3, window_bounds = array<i64: 2, 1, 96>}, {pipeline_mode = #tpu.pipeline_mode<synchronous>, transform_indices = @transform_4, window_bounds = array<i64: 2, 32, 32>}, {pipeline_mode = #tpu.pipeline_mode<synchronous>, transform_indices = @transform_5, window_bounds = array<i64: 2, 1, 32>}, {pipeline_mode = #tpu.pipeline_mode<synchronous>, transform_indices = @transform_6, window_bounds = array<i64: 2, 1, 32>}, {pipeline_mode = #tpu.pipeline_mode<synchronous>, transform_indices = @transform_7, window_bounds = array<i64: 2, 1, 32>}, {pipeline_mode = #tpu.pipeline_mode<synchronous>, transform_indices = @transform_8, window_bounds = array<i64: 2, 1, 32>}, {pipeline_mode = #tpu.pipeline_mode<synchronous>, transform_indices = @transform_9, window_bounds = array<i64: 2, 1, 32>}, {pipeline_mode = #tpu.pipeline_mode<synchronous>, transform_indices = @transform_10, window_bounds = array<i64: 2, 64, 32>}, {pipeline_mode = #tpu.pipeline_mode<synchronous>, transform_indices = @transform_11, window_bounds = array<i64: 2, 1, 64>}, {pipeline_mode = #tpu.pipeline_mode<synchronous>, transform_indices = @transform_12, window_bounds = array<i64: 2, 32, 64>}, {pipeline_mode = #tpu.pipeline_mode<synchronous>, transform_indices = @transform_13, window_bounds = array<i64: 2, 1, 32>}, {transform_indices = @transform_14, window_bounds = array<i64: 1, 8, 32>}]} {
    %c0 = arith.constant 0 : index
    %c0_0 = arith.constant 0 : index
    %c0_1 = arith.constant 0 : index
    %0 = vector.load %arg1[%c0, %c0_0, %c0_1] : memref<1x8x32xf32, #tpu.memory_space<vmem>>, vector<1x8x32xf32>
    %1 = vector.shape_cast %0 : vector<1x8x32xf32> to vector<8x32xf32>
    %c0_2 = arith.constant 0 : index
    %c0_3 = arith.constant 0 : index
    %c0_4 = arith.constant 0 : index
    %2 = vector.load %arg2[%c0_2, %c0_3, %c0_4] : memref<1x1x8xf32, #tpu.memory_space<vmem>>, vector<1x1x8xf32>
    %3 = vector.shape_cast %2 : vector<1x1x8xf32> to vector<1x8xf32>
    %cst = arith.constant 5.000000e-01 : f32
    %4 = vector.broadcast %cst : f32 to vector<1x8xf32>
    %5 = arith.cmpf ogt, %3, %4 : vector<1x8xf32>
    %cst_5 = arith.constant 0.000000e+00 : f32
    %cst_6 = arith.constant -1.000000e+09 : f32
    %6 = vector.broadcast %cst_5 : f32 to vector<1x8xf32>
    %7 = vector.broadcast %cst_6 : f32 to vector<1x8xf32>
    %8 = arith.select %5, %6, %7 : vector<1x8xi1>, vector<1x8xf32>
    %c0_7 = arith.constant 0 : index
    %c0_8 = arith.constant 0 : index
    %c0_9 = arith.constant 0 : index
    %9 = vector.load %arg3[%c0_7, %c0_8, %c0_9] : memref<2x96x32xf32, #tpu.memory_space<vmem>>, vector<1x96x32xf32>
    %10 = vector.shape_cast %9 : vector<1x96x32xf32> to vector<96x32xf32>
    %c0_10 = arith.constant 0 : index
    %c0_11 = arith.constant 0 : index
    %c0_12 = arith.constant 0 : index
    %11 = vector.load %arg4[%c0_10, %c0_11, %c0_12] : memref<2x1x96xf32, #tpu.memory_space<vmem>>, vector<1x1x96xf32>
    %12 = vector.shape_cast %11 : vector<1x1x96xf32> to vector<1x96xf32>
    %c0_13 = arith.constant 0 : index
    %c0_14 = arith.constant 0 : index
    %c0_15 = arith.constant 0 : index
    %13 = vector.load %arg5[%c0_13, %c0_14, %c0_15] : memref<2x32x32xf32, #tpu.memory_space<vmem>>, vector<1x32x32xf32>
    %14 = vector.shape_cast %13 : vector<1x32x32xf32> to vector<32x32xf32>
    %c0_16 = arith.constant 0 : index
    %c0_17 = arith.constant 0 : index
    %c0_18 = arith.constant 0 : index
    %15 = vector.load %arg6[%c0_16, %c0_17, %c0_18] : memref<2x1x32xf32, #tpu.memory_space<vmem>>, vector<1x1x32xf32>
    %16 = vector.shape_cast %15 : vector<1x1x32xf32> to vector<1x32xf32>
    %cst_19 = arith.constant dense<0.000000e+00> : vector<8x96xf32>
    %17 = tpu.matmul %1, %10, %cst_19 {dimension_numbers = #tpu.dot_dimension_numbers<[1], [1], [0], [0], [0, 0, 1, 0], [], []>} : vector<8x32xf32>, vector<96x32xf32>, vector<8x96xf32> -> vector<8x96xf32>
    %18 = vector.broadcast %12 : vector<1x96xf32> to vector<8x96xf32>
    %19 = arith.addf %17, %18 : vector<8x96xf32>
    %20 = vector.extract_strided_slice %19 {offsets = [0, 0], sizes = [8, 32], strides = [1, 1]} : vector<8x96xf32> to vector<8x32xf32>
    %21 = vector.extract_strided_slice %19 {offsets = [0, 32], sizes = [8, 32], strides = [1, 1]} : vector<8x96xf32> to vector<8x32xf32>
    %22 = vector.extract_strided_slice %19 {offsets = [0, 64], sizes = [8, 32], strides = [1, 1]} : vector<8x96xf32> to vector<8x32xf32>
    %23 = vector.extract_strided_slice %20 {offsets = [0, 0], sizes = [8, 8], strides = [1, 1]} : vector<8x32xf32> to vector<8x8xf32>
    %24 = vector.extract_strided_slice %21 {offsets = [0, 0], sizes = [8, 8], strides = [1, 1]} : vector<8x32xf32> to vector<8x8xf32>
    %25 = vector.extract_strided_slice %22 {offsets = [0, 0], sizes = [8, 8], strides = [1, 1]} : vector<8x32xf32> to vector<8x8xf32>
    %cst_20 = arith.constant dense<0.000000e+00> : vector<8x8xf32>
    %26 = tpu.matmul %23, %24, %cst_20 {dimension_numbers = #tpu.dot_dimension_numbers<[1], [1], [0], [0], [0, 0, 1, 0], [], []>} : vector<8x8xf32>, vector<8x8xf32>, vector<8x8xf32> -> vector<8x8xf32>
    %cst_21 = arith.constant 0.353553385 : f32
    %27 = vector.broadcast %cst_21 : f32 to vector<8x8xf32>
    %28 = arith.mulf %26, %27 : vector<8x8xf32>
    %29 = vector.broadcast %8 : vector<1x8xf32> to vector<8x8xf32>
    %30 = arith.addf %28, %29 : vector<8x8xf32>
    %cst_22 = arith.constant dense<0xFF800000> : vector<8xf32>
    %31 = vector.multi_reduction <maximumf>, %30, %cst_22 [1] : vector<8x8xf32> to vector<8xf32>
    %32 = vector.shape_cast %31 : vector<8xf32> to vector<8x1xf32>
    %33 = vector.broadcast %32 : vector<8x1xf32> to vector<8x8xf32>
    %34 = arith.subf %30, %33 : vector<8x8xf32>
    %35 = math.exp %34 : vector<8x8xf32>
    %cst_23 = arith.constant dense<0.000000e+00> : vector<8xf32>
    %36 = vector.multi_reduction <add>, %35, %cst_23 [1] : vector<8x8xf32> to vector<8xf32>
    %37 = vector.shape_cast %36 : vector<8xf32> to vector<8x1xf32>
    %38 = tpu.reciprocal %37 {approx = true} : vector<8x1xf32> -> vector<8x1xf32>
    %39 = vector.broadcast %38 : vector<8x1xf32> to vector<8x8xf32>
    %40 = arith.mulf %35, %39 : vector<8x8xf32>
    %cst_24 = arith.constant dense<0.000000e+00> : vector<8x8xf32>
    %41 = tpu.matmul %40, %25, %cst_24 {dimension_numbers = #tpu.dot_dimension_numbers<[1], [0], [0], [1], [0, 0, 1, 1], [], []>} : vector<8x8xf32>, vector<8x8xf32>, vector<8x8xf32> -> vector<8x8xf32>
    %42 = vector.extract_strided_slice %20 {offsets = [0, 8], sizes = [8, 8], strides = [1, 1]} : vector<8x32xf32> to vector<8x8xf32>
    %43 = vector.extract_strided_slice %21 {offsets = [0, 8], sizes = [8, 8], strides = [1, 1]} : vector<8x32xf32> to vector<8x8xf32>
    %44 = vector.extract_strided_slice %22 {offsets = [0, 8], sizes = [8, 8], strides = [1, 1]} : vector<8x32xf32> to vector<8x8xf32>
    %cst_25 = arith.constant dense<0.000000e+00> : vector<8x8xf32>
    %45 = tpu.matmul %42, %43, %cst_25 {dimension_numbers = #tpu.dot_dimension_numbers<[1], [1], [0], [0], [0, 0, 1, 0], [], []>} : vector<8x8xf32>, vector<8x8xf32>, vector<8x8xf32> -> vector<8x8xf32>
    %cst_26 = arith.constant 0.353553385 : f32
    %46 = vector.broadcast %cst_26 : f32 to vector<8x8xf32>
    %47 = arith.mulf %45, %46 : vector<8x8xf32>
    %48 = vector.broadcast %8 : vector<1x8xf32> to vector<8x8xf32>
    %49 = arith.addf %47, %48 : vector<8x8xf32>
    %cst_27 = arith.constant dense<0xFF800000> : vector<8xf32>
    %50 = vector.multi_reduction <maximumf>, %49, %cst_27 [1] : vector<8x8xf32> to vector<8xf32>
    %51 = vector.shape_cast %50 : vector<8xf32> to vector<8x1xf32>
    %52 = vector.broadcast %51 : vector<8x1xf32> to vector<8x8xf32>
    %53 = arith.subf %49, %52 : vector<8x8xf32>
    %54 = math.exp %53 : vector<8x8xf32>
    %cst_28 = arith.constant dense<0.000000e+00> : vector<8xf32>
    %55 = vector.multi_reduction <add>, %54, %cst_28 [1] : vector<8x8xf32> to vector<8xf32>
    %56 = vector.shape_cast %55 : vector<8xf32> to vector<8x1xf32>
    %57 = tpu.reciprocal %56 {approx = true} : vector<8x1xf32> -> vector<8x1xf32>
    %58 = vector.broadcast %57 : vector<8x1xf32> to vector<8x8xf32>
    %59 = arith.mulf %54, %58 : vector<8x8xf32>
    %cst_29 = arith.constant dense<0.000000e+00> : vector<8x8xf32>
    %60 = tpu.matmul %59, %44, %cst_29 {dimension_numbers = #tpu.dot_dimension_numbers<[1], [0], [0], [1], [0, 0, 1, 1], [], []>} : vector<8x8xf32>, vector<8x8xf32>, vector<8x8xf32> -> vector<8x8xf32>
    %61 = vector.extract_strided_slice %20 {offsets = [0, 16], sizes = [8, 8], strides = [1, 1]} : vector<8x32xf32> to vector<8x8xf32>
    %62 = vector.extract_strided_slice %21 {offsets = [0, 16], sizes = [8, 8], strides = [1, 1]} : vector<8x32xf32> to vector<8x8xf32>
    %63 = vector.extract_strided_slice %22 {offsets = [0, 16], sizes = [8, 8], strides = [1, 1]} : vector<8x32xf32> to vector<8x8xf32>
    %cst_30 = arith.constant dense<0.000000e+00> : vector<8x8xf32>
    %64 = tpu.matmul %61, %62, %cst_30 {dimension_numbers = #tpu.dot_dimension_numbers<[1], [1], [0], [0], [0, 0, 1, 0], [], []>} : vector<8x8xf32>, vector<8x8xf32>, vector<8x8xf32> -> vector<8x8xf32>
    %cst_31 = arith.constant 0.353553385 : f32
    %65 = vector.broadcast %cst_31 : f32 to vector<8x8xf32>
    %66 = arith.mulf %64, %65 : vector<8x8xf32>
    %67 = vector.broadcast %8 : vector<1x8xf32> to vector<8x8xf32>
    %68 = arith.addf %66, %67 : vector<8x8xf32>
    %cst_32 = arith.constant dense<0xFF800000> : vector<8xf32>
    %69 = vector.multi_reduction <maximumf>, %68, %cst_32 [1] : vector<8x8xf32> to vector<8xf32>
    %70 = vector.shape_cast %69 : vector<8xf32> to vector<8x1xf32>
    %71 = vector.broadcast %70 : vector<8x1xf32> to vector<8x8xf32>
    %72 = arith.subf %68, %71 : vector<8x8xf32>
    %73 = math.exp %72 : vector<8x8xf32>
    %cst_33 = arith.constant dense<0.000000e+00> : vector<8xf32>
    %74 = vector.multi_reduction <add>, %73, %cst_33 [1] : vector<8x8xf32> to vector<8xf32>
    %75 = vector.shape_cast %74 : vector<8xf32> to vector<8x1xf32>
    %76 = tpu.reciprocal %75 {approx = true} : vector<8x1xf32> -> vector<8x1xf32>
    %77 = vector.broadcast %76 : vector<8x1xf32> to vector<8x8xf32>
    %78 = arith.mulf %73, %77 : vector<8x8xf32>
    %cst_34 = arith.constant dense<0.000000e+00> : vector<8x8xf32>
    %79 = tpu.matmul %78, %63, %cst_34 {dimension_numbers = #tpu.dot_dimension_numbers<[1], [0], [0], [1], [0, 0, 1, 1], [], []>} : vector<8x8xf32>, vector<8x8xf32>, vector<8x8xf32> -> vector<8x8xf32>
    %80 = vector.extract_strided_slice %20 {offsets = [0, 24], sizes = [8, 8], strides = [1, 1]} : vector<8x32xf32> to vector<8x8xf32>
    %81 = vector.extract_strided_slice %21 {offsets = [0, 24], sizes = [8, 8], strides = [1, 1]} : vector<8x32xf32> to vector<8x8xf32>
    %82 = vector.extract_strided_slice %22 {offsets = [0, 24], sizes = [8, 8], strides = [1, 1]} : vector<8x32xf32> to vector<8x8xf32>
    %cst_35 = arith.constant dense<0.000000e+00> : vector<8x8xf32>
    %83 = tpu.matmul %80, %81, %cst_35 {dimension_numbers = #tpu.dot_dimension_numbers<[1], [1], [0], [0], [0, 0, 1, 0], [], []>} : vector<8x8xf32>, vector<8x8xf32>, vector<8x8xf32> -> vector<8x8xf32>
    %cst_36 = arith.constant 0.353553385 : f32
    %84 = vector.broadcast %cst_36 : f32 to vector<8x8xf32>
    %85 = arith.mulf %83, %84 : vector<8x8xf32>
    %86 = vector.broadcast %8 : vector<1x8xf32> to vector<8x8xf32>
    %87 = arith.addf %85, %86 : vector<8x8xf32>
    %cst_37 = arith.constant dense<0xFF800000> : vector<8xf32>
    %88 = vector.multi_reduction <maximumf>, %87, %cst_37 [1] : vector<8x8xf32> to vector<8xf32>
    %89 = vector.shape_cast %88 : vector<8xf32> to vector<8x1xf32>
    %90 = vector.broadcast %89 : vector<8x1xf32> to vector<8x8xf32>
    %91 = arith.subf %87, %90 : vector<8x8xf32>
    %92 = math.exp %91 : vector<8x8xf32>
    %cst_38 = arith.constant dense<0.000000e+00> : vector<8xf32>
    %93 = vector.multi_reduction <add>, %92, %cst_38 [1] : vector<8x8xf32> to vector<8xf32>
    %94 = vector.shape_cast %93 : vector<8xf32> to vector<8x1xf32>
    %95 = tpu.reciprocal %94 {approx = true} : vector<8x1xf32> -> vector<8x1xf32>
    %96 = vector.broadcast %95 : vector<8x1xf32> to vector<8x8xf32>
    %97 = arith.mulf %92, %96 : vector<8x8xf32>
    %cst_39 = arith.constant dense<0.000000e+00> : vector<8x8xf32>
    %98 = tpu.matmul %97, %82, %cst_39 {dimension_numbers = #tpu.dot_dimension_numbers<[1], [0], [0], [1], [0, 0, 1, 1], [], []>} : vector<8x8xf32>, vector<8x8xf32>, vector<8x8xf32> -> vector<8x8xf32>
    %99 = tpu.concatenate %41, %60, %79, %98 in 1 : vector<8x8xf32>, vector<8x8xf32>, vector<8x8xf32>, vector<8x8xf32> -> vector<8x32xf32>
    %cst_40 = arith.constant dense<0.000000e+00> : vector<8x32xf32>
    %100 = tpu.matmul %99, %14, %cst_40 {dimension_numbers = #tpu.dot_dimension_numbers<[1], [1], [0], [0], [0, 0, 1, 0], [], []>} : vector<8x32xf32>, vector<32x32xf32>, vector<8x32xf32> -> vector<8x32xf32>
    %101 = vector.broadcast %16 : vector<1x32xf32> to vector<8x32xf32>
    %102 = arith.addf %100, %101 : vector<8x32xf32>
    %c0_41 = arith.constant 0 : index
    %c0_42 = arith.constant 0 : index
    %c0_43 = arith.constant 0 : index
    %103 = vector.load %arg7[%c0_41, %c0_42, %c0_43] : memref<2x1x32xf32, #tpu.memory_space<vmem>>, vector<1x1x32xf32>
    %104 = vector.shape_cast %103 : vector<1x1x32xf32> to vector<1x32xf32>
    %c0_44 = arith.constant 0 : index
    %c0_45 = arith.constant 0 : index
    %c0_46 = arith.constant 0 : index
    %105 = vector.load %arg8[%c0_44, %c0_45, %c0_46] : memref<2x1x32xf32, #tpu.memory_space<vmem>>, vector<1x1x32xf32>
    %106 = vector.shape_cast %105 : vector<1x1x32xf32> to vector<1x32xf32>
    %107 = arith.addf %1, %102 : vector<8x32xf32>
    %cst_47 = arith.constant dense<0.000000e+00> : vector<8xf32>
    %108 = vector.multi_reduction <add>, %107, %cst_47 [1] : vector<8x32xf32> to vector<8xf32>
    %109 = vector.shape_cast %108 : vector<8xf32> to vector<8x1xf32>
    %cst_48 = arith.constant 3.200000e+01 : f32
    %110 = vector.broadcast %cst_48 : f32 to vector<8x1xf32>
    %111 = arith.divf %109, %110 : vector<8x1xf32>
    %112 = vector.broadcast %111 : vector<8x1xf32> to vector<8x32xf32>
    %113 = arith.subf %107, %112 : vector<8x32xf32>
    %114 = vector.broadcast %111 : vector<8x1xf32> to vector<8x32xf32>
    %115 = arith.subf %107, %114 : vector<8x32xf32>
    %116 = arith.mulf %113, %115 : vector<8x32xf32>
    %cst_49 = arith.constant dense<0.000000e+00> : vector<8xf32>
    %117 = vector.multi_reduction <add>, %116, %cst_49 [1] : vector<8x32xf32> to vector<8xf32>
    %118 = vector.shape_cast %117 : vector<8xf32> to vector<8x1xf32>
    %cst_50 = arith.constant 3.200000e+01 : f32
    %119 = vector.broadcast %cst_50 : f32 to vector<8x1xf32>
    %120 = arith.divf %118, %119 : vector<8x1xf32>
    %121 = vector.broadcast %111 : vector<8x1xf32> to vector<8x32xf32>
    %122 = arith.subf %107, %121 : vector<8x32xf32>
    %cst_51 = arith.constant 9.99999974E-6 : f32
    %123 = vector.broadcast %cst_51 : f32 to vector<8x1xf32>
    %124 = arith.addf %120, %123 : vector<8x1xf32>
    %125 = math.rsqrt %124 : vector<8x1xf32>
    %126 = vector.broadcast %125 : vector<8x1xf32> to vector<8x32xf32>
    %127 = arith.mulf %122, %126 : vector<8x32xf32>
    %128 = vector.broadcast %104 : vector<1x32xf32> to vector<8x32xf32>
    %129 = arith.mulf %127, %128 : vector<8x32xf32>
    %130 = vector.broadcast %106 : vector<1x32xf32> to vector<8x32xf32>
    %131 = arith.addf %129, %130 : vector<8x32xf32>
    %c0_52 = arith.constant 0 : index
    %c0_53 = arith.constant 0 : index
    %c0_54 = arith.constant 0 : index
    %132 = vector.load %arg11[%c0_52, %c0_53, %c0_54] : memref<2x64x32xf32, #tpu.memory_space<vmem>>, vector<1x64x32xf32>
    %133 = vector.shape_cast %132 : vector<1x64x32xf32> to vector<64x32xf32>
    %c0_55 = arith.constant 0 : index
    %c0_56 = arith.constant 0 : index
    %c0_57 = arith.constant 0 : index
    %134 = vector.load %arg12[%c0_55, %c0_56, %c0_57] : memref<2x1x64xf32, #tpu.memory_space<vmem>>, vector<1x1x64xf32>
    %135 = vector.shape_cast %134 : vector<1x1x64xf32> to vector<1x64xf32>
    %c0_58 = arith.constant 0 : index
    %c0_59 = arith.constant 0 : index
    %c0_60 = arith.constant 0 : index
    %136 = vector.load %arg13[%c0_58, %c0_59, %c0_60] : memref<2x32x64xf32, #tpu.memory_space<vmem>>, vector<1x32x64xf32>
    %137 = vector.shape_cast %136 : vector<1x32x64xf32> to vector<32x64xf32>
    %c0_61 = arith.constant 0 : index
    %c0_62 = arith.constant 0 : index
    %c0_63 = arith.constant 0 : index
    %138 = vector.load %arg14[%c0_61, %c0_62, %c0_63] : memref<2x1x32xf32, #tpu.memory_space<vmem>>, vector<1x1x32xf32>
    %139 = vector.shape_cast %138 : vector<1x1x32xf32> to vector<1x32xf32>
    %cst_64 = arith.constant dense<0.000000e+00> : vector<8x64xf32>
    %140 = tpu.matmul %131, %133, %cst_64 {dimension_numbers = #tpu.dot_dimension_numbers<[1], [1], [0], [0], [0, 0, 1, 0], [], []>} : vector<8x32xf32>, vector<64x32xf32>, vector<8x64xf32> -> vector<8x64xf32>
    %141 = vector.broadcast %135 : vector<1x64xf32> to vector<8x64xf32>
    %142 = arith.addf %140, %141 : vector<8x64xf32>
    %cst_65 = arith.constant 0.000000e+00 : f32
    %143 = vector.broadcast %cst_65 : f32 to vector<8x64xf32>
    %144 = arith.maximumf %142, %143 : vector<8x64xf32>
    %cst_66 = arith.constant dense<0.000000e+00> : vector<8x32xf32>
    %145 = tpu.matmul %144, %137, %cst_66 {dimension_numbers = #tpu.dot_dimension_numbers<[1], [1], [0], [0], [0, 0, 1, 0], [], []>} : vector<8x64xf32>, vector<32x64xf32>, vector<8x32xf32> -> vector<8x32xf32>
    %146 = vector.broadcast %139 : vector<1x32xf32> to vector<8x32xf32>
    %147 = arith.addf %145, %146 : vector<8x32xf32>
    %c0_67 = arith.constant 0 : index
    %c0_68 = arith.constant 0 : index
    %c0_69 = arith.constant 0 : index
    %148 = vector.load %arg9[%c0_67, %c0_68, %c0_69] : memref<2x1x32xf32, #tpu.memory_space<vmem>>, vector<1x1x32xf32>
    %149 = vector.shape_cast %148 : vector<1x1x32xf32> to vector<1x32xf32>
    %c0_70 = arith.constant 0 : index
    %c0_71 = arith.constant 0 : index
    %c0_72 = arith.constant 0 : index
    %150 = vector.load %arg10[%c0_70, %c0_71, %c0_72] : memref<2x1x32xf32, #tpu.memory_space<vmem>>, vector<1x1x32xf32>
    %151 = vector.shape_cast %150 : vector<1x1x32xf32> to vector<1x32xf32>
    %152 = arith.addf %131, %147 : vector<8x32xf32>
    %cst_73 = arith.constant dense<0.000000e+00> : vector<8xf32>
    %153 = vector.multi_reduction <add>, %152, %cst_73 [1] : vector<8x32xf32> to vector<8xf32>
    %154 = vector.shape_cast %153 : vector<8xf32> to vector<8x1xf32>
    %cst_74 = arith.constant 3.200000e+01 : f32
    %155 = vector.broadcast %cst_74 : f32 to vector<8x1xf32>
    %156 = arith.divf %154, %155 : vector<8x1xf32>
    %157 = vector.broadcast %156 : vector<8x1xf32> to vector<8x32xf32>
    %158 = arith.subf %152, %157 : vector<8x32xf32>
    %159 = vector.broadcast %156 : vector<8x1xf32> to vector<8x32xf32>
    %160 = arith.subf %152, %159 : vector<8x32xf32>
    %161 = arith.mulf %158, %160 : vector<8x32xf32>
    %cst_75 = arith.constant dense<0.000000e+00> : vector<8xf32>
    %162 = vector.multi_reduction <add>, %161, %cst_75 [1] : vector<8x32xf32> to vector<8xf32>
    %163 = vector.shape_cast %162 : vector<8xf32> to vector<8x1xf32>
    %cst_76 = arith.constant 3.200000e+01 : f32
    %164 = vector.broadcast %cst_76 : f32 to vector<8x1xf32>
    %165 = arith.divf %163, %164 : vector<8x1xf32>
    %166 = vector.broadcast %156 : vector<8x1xf32> to vector<8x32xf32>
    %167 = arith.subf %152, %166 : vector<8x32xf32>
    %cst_77 = arith.constant 9.99999974E-6 : f32
    %168 = vector.broadcast %cst_77 : f32 to vector<8x1xf32>
    %169 = arith.addf %165, %168 : vector<8x1xf32>
    %170 = math.rsqrt %169 : vector<8x1xf32>
    %171 = vector.broadcast %170 : vector<8x1xf32> to vector<8x32xf32>
    %172 = arith.mulf %167, %171 : vector<8x32xf32>
    %173 = vector.broadcast %149 : vector<1x32xf32> to vector<8x32xf32>
    %174 = arith.mulf %172, %173 : vector<8x32xf32>
    %175 = vector.broadcast %151 : vector<1x32xf32> to vector<8x32xf32>
    %176 = arith.addf %174, %175 : vector<8x32xf32>
    %c1 = arith.constant 1 : index
    %c0_78 = arith.constant 0 : index
    %c0_79 = arith.constant 0 : index
    %177 = vector.load %arg3[%c1, %c0_78, %c0_79] : memref<2x96x32xf32, #tpu.memory_space<vmem>>, vector<1x96x32xf32>
    %178 = vector.shape_cast %177 : vector<1x96x32xf32> to vector<96x32xf32>
    %c1_80 = arith.constant 1 : index
    %c0_81 = arith.constant 0 : index
    %c0_82 = arith.constant 0 : index
    %179 = vector.load %arg4[%c1_80, %c0_81, %c0_82] : memref<2x1x96xf32, #tpu.memory_space<vmem>>, vector<1x1x96xf32>
    %180 = vector.shape_cast %179 : vector<1x1x96xf32> to vector<1x96xf32>
    %c1_83 = arith.constant 1 : index
    %c0_84 = arith.constant 0 : index
    %c0_85 = arith.constant 0 : index
    %181 = vector.load %arg5[%c1_83, %c0_84, %c0_85] : memref<2x32x32xf32, #tpu.memory_space<vmem>>, vector<1x32x32xf32>
    %182 = vector.shape_cast %181 : vector<1x32x32xf32> to vector<32x32xf32>
    %c1_86 = arith.constant 1 : index
    %c0_87 = arith.constant 0 : index
    %c0_88 = arith.constant 0 : index
    %183 = vector.load %arg6[%c1_86, %c0_87, %c0_88] : memref<2x1x32xf32, #tpu.memory_space<vmem>>, vector<1x1x32xf32>
    %184 = vector.shape_cast %183 : vector<1x1x32xf32> to vector<1x32xf32>
    %cst_89 = arith.constant dense<0.000000e+00> : vector<8x96xf32>
    %185 = tpu.matmul %176, %178, %cst_89 {dimension_numbers = #tpu.dot_dimension_numbers<[1], [1], [0], [0], [0, 0, 1, 0], [], []>} : vector<8x32xf32>, vector<96x32xf32>, vector<8x96xf32> -> vector<8x96xf32>
    %186 = vector.broadcast %180 : vector<1x96xf32> to vector<8x96xf32>
    %187 = arith.addf %185, %186 : vector<8x96xf32>
    %188 = vector.extract_strided_slice %187 {offsets = [0, 0], sizes = [8, 32], strides = [1, 1]} : vector<8x96xf32> to vector<8x32xf32>
    %189 = vector.extract_strided_slice %187 {offsets = [0, 32], sizes = [8, 32], strides = [1, 1]} : vector<8x96xf32> to vector<8x32xf32>
    %190 = vector.extract_strided_slice %187 {offsets = [0, 64], sizes = [8, 32], strides = [1, 1]} : vector<8x96xf32> to vector<8x32xf32>
    %191 = vector.extract_strided_slice %188 {offsets = [0, 0], sizes = [8, 8], strides = [1, 1]} : vector<8x32xf32> to vector<8x8xf32>
    %192 = vector.extract_strided_slice %189 {offsets = [0, 0], sizes = [8, 8], strides = [1, 1]} : vector<8x32xf32> to vector<8x8xf32>
    %193 = vector.extract_strided_slice %190 {offsets = [0, 0], sizes = [8, 8], strides = [1, 1]} : vector<8x32xf32> to vector<8x8xf32>
    %cst_90 = arith.constant dense<0.000000e+00> : vector<8x8xf32>
    %194 = tpu.matmul %191, %192, %cst_90 {dimension_numbers = #tpu.dot_dimension_numbers<[1], [1], [0], [0], [0, 0, 1, 0], [], []>} : vector<8x8xf32>, vector<8x8xf32>, vector<8x8xf32> -> vector<8x8xf32>
    %cst_91 = arith.constant 0.353553385 : f32
    %195 = vector.broadcast %cst_91 : f32 to vector<8x8xf32>
    %196 = arith.mulf %194, %195 : vector<8x8xf32>
    %197 = vector.broadcast %8 : vector<1x8xf32> to vector<8x8xf32>
    %198 = arith.addf %196, %197 : vector<8x8xf32>
    %cst_92 = arith.constant dense<0xFF800000> : vector<8xf32>
    %199 = vector.multi_reduction <maximumf>, %198, %cst_92 [1] : vector<8x8xf32> to vector<8xf32>
    %200 = vector.shape_cast %199 : vector<8xf32> to vector<8x1xf32>
    %201 = vector.broadcast %200 : vector<8x1xf32> to vector<8x8xf32>
    %202 = arith.subf %198, %201 : vector<8x8xf32>
    %203 = math.exp %202 : vector<8x8xf32>
    %cst_93 = arith.constant dense<0.000000e+00> : vector<8xf32>
    %204 = vector.multi_reduction <add>, %203, %cst_93 [1] : vector<8x8xf32> to vector<8xf32>
    %205 = vector.shape_cast %204 : vector<8xf32> to vector<8x1xf32>
    %206 = tpu.reciprocal %205 {approx = true} : vector<8x1xf32> -> vector<8x1xf32>
    %207 = vector.broadcast %206 : vector<8x1xf32> to vector<8x8xf32>
    %208 = arith.mulf %203, %207 : vector<8x8xf32>
    %cst_94 = arith.constant dense<0.000000e+00> : vector<8x8xf32>
    %209 = tpu.matmul %208, %193, %cst_94 {dimension_numbers = #tpu.dot_dimension_numbers<[1], [0], [0], [1], [0, 0, 1, 1], [], []>} : vector<8x8xf32>, vector<8x8xf32>, vector<8x8xf32> -> vector<8x8xf32>
    %210 = vector.extract_strided_slice %188 {offsets = [0, 8], sizes = [8, 8], strides = [1, 1]} : vector<8x32xf32> to vector<8x8xf32>
    %211 = vector.extract_strided_slice %189 {offsets = [0, 8], sizes = [8, 8], strides = [1, 1]} : vector<8x32xf32> to vector<8x8xf32>
    %212 = vector.extract_strided_slice %190 {offsets = [0, 8], sizes = [8, 8], strides = [1, 1]} : vector<8x32xf32> to vector<8x8xf32>
    %cst_95 = arith.constant dense<0.000000e+00> : vector<8x8xf32>
    %213 = tpu.matmul %210, %211, %cst_95 {dimension_numbers = #tpu.dot_dimension_numbers<[1], [1], [0], [0], [0, 0, 1, 0], [], []>} : vector<8x8xf32>, vector<8x8xf32>, vector<8x8xf32> -> vector<8x8xf32>
    %cst_96 = arith.constant 0.353553385 : f32
    %214 = vector.broadcast %cst_96 : f32 to vector<8x8xf32>
    %215 = arith.mulf %213, %214 : vector<8x8xf32>
    %216 = vector.broadcast %8 : vector<1x8xf32> to vector<8x8xf32>
    %217 = arith.addf %215, %216 : vector<8x8xf32>
    %cst_97 = arith.constant dense<0xFF800000> : vector<8xf32>
    %218 = vector.multi_reduction <maximumf>, %217, %cst_97 [1] : vector<8x8xf32> to vector<8xf32>
    %219 = vector.shape_cast %218 : vector<8xf32> to vector<8x1xf32>
    %220 = vector.broadcast %219 : vector<8x1xf32> to vector<8x8xf32>
    %221 = arith.subf %217, %220 : vector<8x8xf32>
    %222 = math.exp %221 : vector<8x8xf32>
    %cst_98 = arith.constant dense<0.000000e+00> : vector<8xf32>
    %223 = vector.multi_reduction <add>, %222, %cst_98 [1] : vector<8x8xf32> to vector<8xf32>
    %224 = vector.shape_cast %223 : vector<8xf32> to vector<8x1xf32>
    %225 = tpu.reciprocal %224 {approx = true} : vector<8x1xf32> -> vector<8x1xf32>
    %226 = vector.broadcast %225 : vector<8x1xf32> to vector<8x8xf32>
    %227 = arith.mulf %222, %226 : vector<8x8xf32>
    %cst_99 = arith.constant dense<0.000000e+00> : vector<8x8xf32>
    %228 = tpu.matmul %227, %212, %cst_99 {dimension_numbers = #tpu.dot_dimension_numbers<[1], [0], [0], [1], [0, 0, 1, 1], [], []>} : vector<8x8xf32>, vector<8x8xf32>, vector<8x8xf32> -> vector<8x8xf32>
    %229 = vector.extract_strided_slice %188 {offsets = [0, 16], sizes = [8, 8], strides = [1, 1]} : vector<8x32xf32> to vector<8x8xf32>
    %230 = vector.extract_strided_slice %189 {offsets = [0, 16], sizes = [8, 8], strides = [1, 1]} : vector<8x32xf32> to vector<8x8xf32>
    %231 = vector.extract_strided_slice %190 {offsets = [0, 16], sizes = [8, 8], strides = [1, 1]} : vector<8x32xf32> to vector<8x8xf32>
    %cst_100 = arith.constant dense<0.000000e+00> : vector<8x8xf32>
    %232 = tpu.matmul %229, %230, %cst_100 {dimension_numbers = #tpu.dot_dimension_numbers<[1], [1], [0], [0], [0, 0, 1, 0], [], []>} : vector<8x8xf32>, vector<8x8xf32>, vector<8x8xf32> -> vector<8x8xf32>
    %cst_101 = arith.constant 0.353553385 : f32
    %233 = vector.broadcast %cst_101 : f32 to vector<8x8xf32>
    %234 = arith.mulf %232, %233 : vector<8x8xf32>
    %235 = vector.broadcast %8 : vector<1x8xf32> to vector<8x8xf32>
    %236 = arith.addf %234, %235 : vector<8x8xf32>
    %cst_102 = arith.constant dense<0xFF800000> : vector<8xf32>
    %237 = vector.multi_reduction <maximumf>, %236, %cst_102 [1] : vector<8x8xf32> to vector<8xf32>
    %238 = vector.shape_cast %237 : vector<8xf32> to vector<8x1xf32>
    %239 = vector.broadcast %238 : vector<8x1xf32> to vector<8x8xf32>
    %240 = arith.subf %236, %239 : vector<8x8xf32>
    %241 = math.exp %240 : vector<8x8xf32>
    %cst_103 = arith.constant dense<0.000000e+00> : vector<8xf32>
    %242 = vector.multi_reduction <add>, %241, %cst_103 [1] : vector<8x8xf32> to vector<8xf32>
    %243 = vector.shape_cast %242 : vector<8xf32> to vector<8x1xf32>
    %244 = tpu.reciprocal %243 {approx = true} : vector<8x1xf32> -> vector<8x1xf32>
    %245 = vector.broadcast %244 : vector<8x1xf32> to vector<8x8xf32>
    %246 = arith.mulf %241, %245 : vector<8x8xf32>
    %cst_104 = arith.constant dense<0.000000e+00> : vector<8x8xf32>
    %247 = tpu.matmul %246, %231, %cst_104 {dimension_numbers = #tpu.dot_dimension_numbers<[1], [0], [0], [1], [0, 0, 1, 1], [], []>} : vector<8x8xf32>, vector<8x8xf32>, vector<8x8xf32> -> vector<8x8xf32>
    %248 = vector.extract_strided_slice %188 {offsets = [0, 24], sizes = [8, 8], strides = [1, 1]} : vector<8x32xf32> to vector<8x8xf32>
    %249 = vector.extract_strided_slice %189 {offsets = [0, 24], sizes = [8, 8], strides = [1, 1]} : vector<8x32xf32> to vector<8x8xf32>
    %250 = vector.extract_strided_slice %190 {offsets = [0, 24], sizes = [8, 8], strides = [1, 1]} : vector<8x32xf32> to vector<8x8xf32>
    %cst_105 = arith.constant dense<0.000000e+00> : vector<8x8xf32>
    %251 = tpu.matmul %248, %249, %cst_105 {dimension_numbers = #tpu.dot_dimension_numbers<[1], [1], [0], [0], [0, 0, 1, 0], [], []>} : vector<8x8xf32>, vector<8x8xf32>, vector<8x8xf32> -> vector<8x8xf32>
    %cst_106 = arith.constant 0.353553385 : f32
    %252 = vector.broadcast %cst_106 : f32 to vector<8x8xf32>
    %253 = arith.mulf %251, %252 : vector<8x8xf32>
    %254 = vector.broadcast %8 : vector<1x8xf32> to vector<8x8xf32>
    %255 = arith.addf %253, %254 : vector<8x8xf32>
    %cst_107 = arith.constant dense<0xFF800000> : vector<8xf32>
    %256 = vector.multi_reduction <maximumf>, %255, %cst_107 [1] : vector<8x8xf32> to vector<8xf32>
    %257 = vector.shape_cast %256 : vector<8xf32> to vector<8x1xf32>
    %258 = vector.broadcast %257 : vector<8x1xf32> to vector<8x8xf32>
    %259 = arith.subf %255, %258 : vector<8x8xf32>
    %260 = math.exp %259 : vector<8x8xf32>
    %cst_108 = arith.constant dense<0.000000e+00> : vector<8xf32>
    %261 = vector.multi_reduction <add>, %260, %cst_108 [1] : vector<8x8xf32> to vector<8xf32>
    %262 = vector.shape_cast %261 : vector<8xf32> to vector<8x1xf32>
    %263 = tpu.reciprocal %262 {approx = true} : vector<8x1xf32> -> vector<8x1xf32>
    %264 = vector.broadcast %263 : vector<8x1xf32> to vector<8x8xf32>
    %265 = arith.mulf %260, %264 : vector<8x8xf32>
    %cst_109 = arith.constant dense<0.000000e+00> : vector<8x8xf32>
    %266 = tpu.matmul %265, %250, %cst_109 {dimension_numbers = #tpu.dot_dimension_numbers<[1], [0], [0], [1], [0, 0, 1, 1], [], []>} : vector<8x8xf32>, vector<8x8xf32>, vector<8x8xf32> -> vector<8x8xf32>
    %267 = tpu.concatenate %209, %228, %247, %266 in 1 : vector<8x8xf32>, vector<8x8xf32>, vector<8x8xf32>, vector<8x8xf32> -> vector<8x32xf32>
    %cst_110 = arith.constant dense<0.000000e+00> : vector<8x32xf32>
    %268 = tpu.matmul %267, %182, %cst_110 {dimension_numbers = #tpu.dot_dimension_numbers<[1], [1], [0], [0], [0, 0, 1, 0], [], []>} : vector<8x32xf32>, vector<32x32xf32>, vector<8x32xf32> -> vector<8x32xf32>
    %269 = vector.broadcast %184 : vector<1x32xf32> to vector<8x32xf32>
    %270 = arith.addf %268, %269 : vector<8x32xf32>
    %c1_111 = arith.constant 1 : index
    %c0_112 = arith.constant 0 : index
    %c0_113 = arith.constant 0 : index
    %271 = vector.load %arg7[%c1_111, %c0_112, %c0_113] : memref<2x1x32xf32, #tpu.memory_space<vmem>>, vector<1x1x32xf32>
    %272 = vector.shape_cast %271 : vector<1x1x32xf32> to vector<1x32xf32>
    %c1_114 = arith.constant 1 : index
    %c0_115 = arith.constant 0 : index
    %c0_116 = arith.constant 0 : index
    %273 = vector.load %arg8[%c1_114, %c0_115, %c0_116] : memref<2x1x32xf32, #tpu.memory_space<vmem>>, vector<1x1x32xf32>
    %274 = vector.shape_cast %273 : vector<1x1x32xf32> to vector<1x32xf32>
    %275 = arith.addf %176, %270 : vector<8x32xf32>
    %cst_117 = arith.constant dense<0.000000e+00> : vector<8xf32>
    %276 = vector.multi_reduction <add>, %275, %cst_117 [1] : vector<8x32xf32> to vector<8xf32>
    %277 = vector.shape_cast %276 : vector<8xf32> to vector<8x1xf32>
    %cst_118 = arith.constant 3.200000e+01 : f32
    %278 = vector.broadcast %cst_118 : f32 to vector<8x1xf32>
    %279 = arith.divf %277, %278 : vector<8x1xf32>
    %280 = vector.broadcast %279 : vector<8x1xf32> to vector<8x32xf32>
    %281 = arith.subf %275, %280 : vector<8x32xf32>
    %282 = vector.broadcast %279 : vector<8x1xf32> to vector<8x32xf32>
    %283 = arith.subf %275, %282 : vector<8x32xf32>
    %284 = arith.mulf %281, %283 : vector<8x32xf32>
    %cst_119 = arith.constant dense<0.000000e+00> : vector<8xf32>
    %285 = vector.multi_reduction <add>, %284, %cst_119 [1] : vector<8x32xf32> to vector<8xf32>
    %286 = vector.shape_cast %285 : vector<8xf32> to vector<8x1xf32>
    %cst_120 = arith.constant 3.200000e+01 : f32
    %287 = vector.broadcast %cst_120 : f32 to vector<8x1xf32>
    %288 = arith.divf %286, %287 : vector<8x1xf32>
    %289 = vector.broadcast %279 : vector<8x1xf32> to vector<8x32xf32>
    %290 = arith.subf %275, %289 : vector<8x32xf32>
    %cst_121 = arith.constant 9.99999974E-6 : f32
    %291 = vector.broadcast %cst_121 : f32 to vector<8x1xf32>
    %292 = arith.addf %288, %291 : vector<8x1xf32>
    %293 = math.rsqrt %292 : vector<8x1xf32>
    %294 = vector.broadcast %293 : vector<8x1xf32> to vector<8x32xf32>
    %295 = arith.mulf %290, %294 : vector<8x32xf32>
    %296 = vector.broadcast %272 : vector<1x32xf32> to vector<8x32xf32>
    %297 = arith.mulf %295, %296 : vector<8x32xf32>
    %298 = vector.broadcast %274 : vector<1x32xf32> to vector<8x32xf32>
    %299 = arith.addf %297, %298 : vector<8x32xf32>
    %c1_122 = arith.constant 1 : index
    %c0_123 = arith.constant 0 : index
    %c0_124 = arith.constant 0 : index
    %300 = vector.load %arg11[%c1_122, %c0_123, %c0_124] : memref<2x64x32xf32, #tpu.memory_space<vmem>>, vector<1x64x32xf32>
    %301 = vector.shape_cast %300 : vector<1x64x32xf32> to vector<64x32xf32>
    %c1_125 = arith.constant 1 : index
    %c0_126 = arith.constant 0 : index
    %c0_127 = arith.constant 0 : index
    %302 = vector.load %arg12[%c1_125, %c0_126, %c0_127] : memref<2x1x64xf32, #tpu.memory_space<vmem>>, vector<1x1x64xf32>
    %303 = vector.shape_cast %302 : vector<1x1x64xf32> to vector<1x64xf32>
    %c1_128 = arith.constant 1 : index
    %c0_129 = arith.constant 0 : index
    %c0_130 = arith.constant 0 : index
    %304 = vector.load %arg13[%c1_128, %c0_129, %c0_130] : memref<2x32x64xf32, #tpu.memory_space<vmem>>, vector<1x32x64xf32>
    %305 = vector.shape_cast %304 : vector<1x32x64xf32> to vector<32x64xf32>
    %c1_131 = arith.constant 1 : index
    %c0_132 = arith.constant 0 : index
    %c0_133 = arith.constant 0 : index
    %306 = vector.load %arg14[%c1_131, %c0_132, %c0_133] : memref<2x1x32xf32, #tpu.memory_space<vmem>>, vector<1x1x32xf32>
    %307 = vector.shape_cast %306 : vector<1x1x32xf32> to vector<1x32xf32>
    %cst_134 = arith.constant dense<0.000000e+00> : vector<8x64xf32>
    %308 = tpu.matmul %299, %301, %cst_134 {dimension_numbers = #tpu.dot_dimension_numbers<[1], [1], [0], [0], [0, 0, 1, 0], [], []>} : vector<8x32xf32>, vector<64x32xf32>, vector<8x64xf32> -> vector<8x64xf32>
    %309 = vector.broadcast %303 : vector<1x64xf32> to vector<8x64xf32>
    %310 = arith.addf %308, %309 : vector<8x64xf32>
    %cst_135 = arith.constant 0.000000e+00 : f32
    %311 = vector.broadcast %cst_135 : f32 to vector<8x64xf32>
    %312 = arith.maximumf %310, %311 : vector<8x64xf32>
    %cst_136 = arith.constant dense<0.000000e+00> : vector<8x32xf32>
    %313 = tpu.matmul %312, %305, %cst_136 {dimension_numbers = #tpu.dot_dimension_numbers<[1], [1], [0], [0], [0, 0, 1, 0], [], []>} : vector<8x64xf32>, vector<32x64xf32>, vector<8x32xf32> -> vector<8x32xf32>
    %314 = vector.broadcast %307 : vector<1x32xf32> to vector<8x32xf32>
    %315 = arith.addf %313, %314 : vector<8x32xf32>
    %c1_137 = arith.constant 1 : index
    %c0_138 = arith.constant 0 : index
    %c0_139 = arith.constant 0 : index
    %316 = vector.load %arg9[%c1_137, %c0_138, %c0_139] : memref<2x1x32xf32, #tpu.memory_space<vmem>>, vector<1x1x32xf32>
    %317 = vector.shape_cast %316 : vector<1x1x32xf32> to vector<1x32xf32>
    %c1_140 = arith.constant 1 : index
    %c0_141 = arith.constant 0 : index
    %c0_142 = arith.constant 0 : index
    %318 = vector.load %arg10[%c1_140, %c0_141, %c0_142] : memref<2x1x32xf32, #tpu.memory_space<vmem>>, vector<1x1x32xf32>
    %319 = vector.shape_cast %318 : vector<1x1x32xf32> to vector<1x32xf32>
    %320 = arith.addf %299, %315 : vector<8x32xf32>
    %cst_143 = arith.constant dense<0.000000e+00> : vector<8xf32>
    %321 = vector.multi_reduction <add>, %320, %cst_143 [1] : vector<8x32xf32> to vector<8xf32>
    %322 = vector.shape_cast %321 : vector<8xf32> to vector<8x1xf32>
    %cst_144 = arith.constant 3.200000e+01 : f32
    %323 = vector.broadcast %cst_144 : f32 to vector<8x1xf32>
    %324 = arith.divf %322, %323 : vector<8x1xf32>
    %325 = vector.broadcast %324 : vector<8x1xf32> to vector<8x32xf32>
    %326 = arith.subf %320, %325 : vector<8x32xf32>
    %327 = vector.broadcast %324 : vector<8x1xf32> to vector<8x32xf32>
    %328 = arith.subf %320, %327 : vector<8x32xf32>
    %329 = arith.mulf %326, %328 : vector<8x32xf32>
    %cst_145 = arith.constant dense<0.000000e+00> : vector<8xf32>
    %330 = vector.multi_reduction <add>, %329, %cst_145 [1] : vector<8x32xf32> to vector<8xf32>
    %331 = vector.shape_cast %330 : vector<8xf32> to vector<8x1xf32>
    %cst_146 = arith.constant 3.200000e+01 : f32
    %332 = vector.broadcast %cst_146 : f32 to vector<8x1xf32>
    %333 = arith.divf %331, %332 : vector<8x1xf32>
    %334 = vector.broadcast %324 : vector<8x1xf32> to vector<8x32xf32>
    %335 = arith.subf %320, %334 : vector<8x32xf32>
    %cst_147 = arith.constant 9.99999974E-6 : f32
    %336 = vector.broadcast %cst_147 : f32 to vector<8x1xf32>
    %337 = arith.addf %333, %336 : vector<8x1xf32>
    %338 = math.rsqrt %337 : vector<8x1xf32>
    %339 = vector.broadcast %338 : vector<8x1xf32> to vector<8x32xf32>
    %340 = arith.mulf %335, %339 : vector<8x32xf32>
    %341 = vector.broadcast %317 : vector<1x32xf32> to vector<8x32xf32>
    %342 = arith.mulf %340, %341 : vector<8x32xf32>
    %343 = vector.broadcast %319 : vector<1x32xf32> to vector<8x32xf32>
    %344 = arith.addf %342, %343 : vector<8x32xf32>
    %c0_148 = arith.constant 0 : index
    %c0_149 = arith.constant 0 : index
    %c0_150 = arith.constant 0 : index
    %345 = vector.load %arg15[%c0_148, %c0_149, %c0_150] : memref<1x8x32xf32, #tpu.memory_space<vmem>>, vector<1x8x32xf32>
    %346 = vector.shape_cast %345 : vector<1x8x32xf32> to vector<8x32xf32>
    %347 = vector.shape_cast %344 : vector<8x32xf32> to vector<1x8x32xf32>
    tpu.vector_store %arg15[%c0_148, %c0_149, %c0_150], %347 {strides = array<i32>} : memref<1x8x32xf32, #tpu.memory_space<vmem>>, vector<1x8x32xf32>,
    return
  }
  func.func @transform_0(%arg0: i32) -> (i32, i32, i32) {
    %c0_i32 = arith.constant 0 : i32
    %c0_i32_0 = arith.constant 0 : i32
    %c0_i32_1 = arith.constant 0 : i32
    return %arg0, %c0_i32, %c0_i32_0 : i32, i32, i32
  }
  func.func @transform_1(%arg0: i32) -> (i32, i32, i32) {
    %c0_i32 = arith.constant 0 : i32
    %c0_i32_0 = arith.constant 0 : i32
    %c0_i32_1 = arith.constant 0 : i32
    return %arg0, %c0_i32, %c0_i32_0 : i32, i32, i32
  }
  func.func @transform_2(%arg0: i32) -> (i32, i32, i32) {
    %c0_i32 = arith.constant 0 : i32
    %c0_i32_0 = arith.constant 0 : i32
    %c0_i32_1 = arith.constant 0 : i32
    %c0_i32_2 = arith.constant 0 : i32
    return %c0_i32, %c0_i32_0, %c0_i32_1 : i32, i32, i32
  }
  func.func @transform_3(%arg0: i32) -> (i32, i32, i32) {
    %c0_i32 = arith.constant 0 : i32
    %c0_i32_0 = arith.constant 0 : i32
    %c0_i32_1 = arith.constant 0 : i32
    %c0_i32_2 = arith.constant 0 : i32
    return %c0_i32, %c0_i32_0, %c0_i32_1 : i32, i32, i32
  }
  func.func @transform_4(%arg0: i32) -> (i32, i32, i32) {
    %c0_i32 = arith.constant 0 : i32
    %c0_i32_0 = arith.constant 0 : i32
    %c0_i32_1 = arith.constant 0 : i32
    %c0_i32_2 = arith.constant 0 : i32
    return %c0_i32, %c0_i32_0, %c0_i32_1 : i32, i32, i32
  }
  func.func @transform_5(%arg0: i32) -> (i32, i32, i32) {
    %c0_i32 = arith.constant 0 : i32
    %c0_i32_0 = arith.constant 0 : i32
    %c0_i32_1 = arith.constant 0 : i32
    %c0_i32_2 = arith.constant 0 : i32
    return %c0_i32, %c0_i32_0, %c0_i32_1 : i32, i32, i32
  }
  func.func @transform_6(%arg0: i32) -> (i32, i32, i32) {
    %c0_i32 = arith.constant 0 : i32
    %c0_i32_0 = arith.constant 0 : i32
    %c0_i32_1 = arith.constant 0 : i32
    %c0_i32_2 = arith.constant 0 : i32
    return %c0_i32, %c0_i32_0, %c0_i32_1 : i32, i32, i32
  }
  func.func @transform_7(%arg0: i32) -> (i32, i32, i32) {
    %c0_i32 = arith.constant 0 : i32
    %c0_i32_0 = arith.constant 0 : i32
    %c0_i32_1 = arith.constant 0 : i32
    %c0_i32_2 = arith.constant 0 : i32
    return %c0_i32, %c0_i32_0, %c0_i32_1 : i32, i32, i32
  }
  func.func @transform_8(%arg0: i32) -> (i32, i32, i32) {
    %c0_i32 = arith.constant 0 : i32
    %c0_i32_0 = arith.constant 0 : i32
    %c0_i32_1 = arith.constant 0 : i32
    %c0_i32_2 = arith.constant 0 : i32
    return %c0_i32, %c0_i32_0, %c0_i32_1 : i32, i32, i32
  }
  func.func @transform_9(%arg0: i32) -> (i32, i32, i32) {
    %c0_i32 = arith.constant 0 : i32
    %c0_i32_0 = arith.constant 0 : i32
    %c0_i32_1 = arith.constant 0 : i32
    %c0_i32_2 = arith.constant 0 : i32
    return %c0_i32, %c0_i32_0, %c0_i32_1 : i32, i32, i32
  }
  func.func @transform_10(%arg0: i32) -> (i32, i32, i32) {
    %c0_i32 = arith.constant 0 : i32
    %c0_i32_0 = arith.constant 0 : i32
    %c0_i32_1 = arith.constant 0 : i32
    %c0_i32_2 = arith.constant 0 : i32
    return %c0_i32, %c0_i32_0, %c0_i32_1 : i32, i32, i32
  }
  func.func @transform_11(%arg0: i32) -> (i32, i32, i32) {
    %c0_i32 = arith.constant 0 : i32
    %c0_i32_0 = arith.constant 0 : i32
    %c0_i32_1 = arith.constant 0 : i32
    %c0_i32_2 = arith.constant 0 : i32
    return %c0_i32, %c0_i32_0, %c0_i32_1 : i32, i32, i32
  }
  func.func @transform_12(%arg0: i32) -> (i32, i32, i32) {
    %c0_i32 = arith.constant 0 : i32
    %c0_i32_0 = arith.constant 0 : i32
    %c0_i32_1 = arith.constant 0 : i32
    %c0_i32_2 = arith.constant 0 : i32
    return %c0_i32, %c0_i32_0, %c0_i32_1 : i32, i32, i32
  }
  func.func @transform_13(%arg0: i32) -> (i32, i32, i32) {
    %c0_i32 = arith.constant 0 : i32
    %c0_i32_0 = arith.constant 0 : i32
    %c0_i32_1 = arith.constant 0 : i32
    %c0_i32_2 = arith.constant 0 : i32
    return %c0_i32, %c0_i32_0, %c0_i32_1 : i32, i32, i32
  }
  func.func @transform_14(%arg0: i32) -> (i32, i32, i32) {
    %c0_i32 = arith.constant 0 : i32
    %c0_i32_0 = arith.constant 0 : i32
    %c0_i32_1 = arith.constant 0 : i32
    return %arg0, %c0_i32, %c0_i32_0 : i32, i32, i32
  }
}

module attributes {stable_mosaic.version = 11 : i64} {
  func.func @decoder_kernel(%arg0: i32, %arg1: memref<1x8x32xf32, #tpu.memory_space<vmem>>, %arg2: memref<1x8x32xf32, #tpu.memory_space<vmem>>, %arg3: memref<1x1x8xf32, #tpu.memory_space<vmem>>, %arg4: memref<1x1x8xf32, #tpu.memory_space<vmem>>, %arg5: memref<2x96x32xf32, #tpu.memory_space<vmem>>, %arg6: memref<2x1x96xf32, #tpu.memory_space<vmem>>, %arg7: memref<2x32x32xf32, #tpu.memory_space<vmem>>, %arg8: memref<2x1x32xf32, #tpu.memory_space<vmem>>, %arg9: memref<2x96x32xf32, #tpu.memory_space<vmem>>, %arg10: memref<2x1x96xf32, #tpu.memory_space<vmem>>, %arg11: memref<2x32x32xf32, #tpu.memory_space<vmem>>, %arg12: memref<2x1x32xf32, #tpu.memory_space<vmem>>, %arg13: memref<2x1x32xf32, #tpu.memory_space<vmem>>, %arg14: memref<2x1x32xf32, #tpu.memory_space<vmem>>, %arg15: memref<2x1x32xf32, #tpu.memory_space<vmem>>, %arg16: memref<2x1x32xf32, #tpu.memory_space<vmem>>, %arg17: memref<2x1x32xf32, #tpu.memory_space<vmem>>, %arg18: memref<2x1x32xf32, #tpu.memory_space<vmem>>, %arg19: memref<2x64x32xf32, #tpu.memory_space<vmem>>, %arg20: memref<2x1x64xf32, #tpu.memory_space<vmem>>, %arg21: memref<2x32x64xf32, #tpu.memory_space<vmem>>, %arg22: memref<2x1x32xf32, #tpu.memory_space<vmem>>, %arg23: memref<16x32xf32, #tpu.memory_space<vmem>>, %arg24: memref<1x16xf32, #tpu.memory_space<vmem>>, %arg25: memref<1x8x16xf32, #tpu.memory_space<vmem>>, %arg26: memref<1x4x8x8xf32, #tpu.memory_space<vmem>>) attributes {dimension_semantics = [#tpu.dimension_semantics<parallel>], iteration_bounds = array<i64: 2>, scalar_prefetch = 0 : i64, scratch_operands = 0 : i64, tpu.core_type = #tpu.core_type<tc>, window_params = [{transform_indices = @transform_0, window_bounds = array<i64: 1, 8, 32>}, {transform_indices = @transform_1, window_bounds = array<i64: 1, 8, 32>}, {transform_indices = @transform_2, window_bounds = array<i64: 1, 1, 8>}, {transform_indices = @transform_3, window_bounds = array<i64: 1, 1, 8>}, {pipeline_mode = #tpu.pipeline_mode<synchronous>, transform_indices = @transform_4, window_bounds = array<i64: 2, 96, 32>}, {pipeline_mode = #tpu.pipeline_mode<synchronous>, transform_indices = @transform_5, window_bounds = array<i64: 2, 1, 96>}, {pipeline_mode = #tpu.pipeline_mode<synchronous>, transform_indices = @transform_6, window_bounds = array<i64: 2, 32, 32>}, {pipeline_mode = #tpu.pipeline_mode<synchronous>, transform_indices = @transform_7, window_bounds = array<i64: 2, 1, 32>}, {pipeline_mode = #tpu.pipeline_mode<synchronous>, transform_indices = @transform_8, window_bounds = array<i64: 2, 96, 32>}, {pipeline_mode = #tpu.pipeline_mode<synchronous>, transform_indices = @transform_9, window_bounds = array<i64: 2, 1, 96>}, {pipeline_mode = #tpu.pipeline_mode<synchronous>, transform_indices = @transform_10, window_bounds = array<i64: 2, 32, 32>}, {pipeline_mode = #tpu.pipeline_mode<synchronous>, transform_indices = @transform_11, window_bounds = array<i64: 2, 1, 32>}, {pipeline_mode = #tpu.pipeline_mode<synchronous>, transform_indices = @transform_12, window_bounds = array<i64: 2, 1, 32>}, {pipeline_mode = #tpu.pipeline_mode<synchronous>, transform_indices = @transform_13, window_bounds = array<i64: 2, 1, 32>}, {pipeline_mode = #tpu.pipeline_mode<synchronous>, transform_indices = @transform_14, window_bounds = array<i64: 2, 1, 32>}, {pipeline_mode = #tpu.pipeline_mode<synchronous>, transform_indices = @transform_15, window_bounds = array<i64: 2, 1, 32>}, {pipeline_mode = #tpu.pipeline_mode<synchronous>, transform_indices = @transform_16, window_bounds = array<i64: 2, 1, 32>}, {pipeline_mode = #tpu.pipeline_mode<synchronous>, transform_indices = @transform_17, window_bounds = array<i64: 2, 1, 32>}, {pipeline_mode = #tpu.pipeline_mode<synchronous>, transform_indices = @transform_18, window_bounds = array<i64: 2, 64, 32>}, {pipeline_mode = #tpu.pipeline_mode<synchronous>, transform_indices = @transform_19, window_bounds = array<i64: 2, 1, 64>}, {pipeline_mode = #tpu.pipeline_mode<synchronous>, transform_indices = @transform_20, window_bounds = array<i64: 2, 32, 64>}, {pipeline_mode = #tpu.pipeline_mode<synchronous>, transform_indices = @transform_21, window_bounds = array<i64: 2, 1, 32>}, {pipeline_mode = #tpu.pipeline_mode<synchronous>, transform_indices = @transform_22, window_bounds = array<i64: 16, 32>}, {pipeline_mode = #tpu.pipeline_mode<synchronous>, transform_indices = @transform_23, window_bounds = array<i64: 1, 16>}, {transform_indices = @transform_24, window_bounds = array<i64: 1, 8, 16>}, {transform_indices = @transform_25, window_bounds = array<i64: 1, 4, 8, 8>}]} {
    %c0 = arith.constant 0 : index
    %c0_0 = arith.constant 0 : index
    %c0_1 = arith.constant 0 : index
    %0 = vector.load %arg1[%c0, %c0_0, %c0_1] : memref<1x8x32xf32, #tpu.memory_space<vmem>>, vector<1x8x32xf32>
    %1 = vector.shape_cast %0 : vector<1x8x32xf32> to vector<8x32xf32>
    %c0_2 = arith.constant 0 : index
    %c0_3 = arith.constant 0 : index
    %c0_4 = arith.constant 0 : index
    %2 = vector.load %arg2[%c0_2, %c0_3, %c0_4] : memref<1x8x32xf32, #tpu.memory_space<vmem>>, vector<1x8x32xf32>
    %3 = vector.shape_cast %2 : vector<1x8x32xf32> to vector<8x32xf32>
    %c0_5 = arith.constant 0 : index
    %c0_6 = arith.constant 0 : index
    %c0_7 = arith.constant 0 : index
    %4 = vector.load %arg3[%c0_5, %c0_6, %c0_7] : memref<1x1x8xf32, #tpu.memory_space<vmem>>, vector<1x1x8xf32>
    %5 = vector.shape_cast %4 : vector<1x1x8xf32> to vector<1x8xf32>
    %c0_8 = arith.constant 0 : index
    %c0_9 = arith.constant 0 : index
    %c0_10 = arith.constant 0 : index
    %6 = vector.load %arg4[%c0_8, %c0_9, %c0_10] : memref<1x1x8xf32, #tpu.memory_space<vmem>>, vector<1x1x8xf32>
    %7 = vector.shape_cast %6 : vector<1x1x8xf32> to vector<1x8xf32>
    %cst = arith.constant 5.000000e-01 : f32
    %8 = vector.broadcast %cst : f32 to vector<1x8xf32>
    %9 = arith.cmpf ogt, %5, %8 : vector<1x8xf32>
    %cst_11 = arith.constant 0.000000e+00 : f32
    %cst_12 = arith.constant -1.000000e+09 : f32
    %10 = vector.broadcast %cst_11 : f32 to vector<1x8xf32>
    %11 = vector.broadcast %cst_12 : f32 to vector<1x8xf32>
    %12 = arith.select %9, %10, %11 : vector<1x8xi1>, vector<1x8xf32>
    %13 = tpu.iota {dimensions = array<i32: 0>} : vector<8x8xi32>
    %14 = tpu.iota {dimensions = array<i32: 1>} : vector<8x8xi32>
    %15 = arith.cmpi sge, %13, %14 : vector<8x8xi32>
    %cst_13 = arith.constant 5.000000e-01 : f32
    %16 = vector.broadcast %cst_13 : f32 to vector<1x8xf32>
    %17 = arith.cmpf ogt, %7, %16 : vector<1x8xf32>
    %18 = vector.broadcast %17 : vector<1x8xi1> to vector<8x8xi1>
    %19 = arith.andi %15, %18 : vector<8x8xi1>
    %cst_14 = arith.constant 0.000000e+00 : f32
    %cst_15 = arith.constant -1.000000e+09 : f32
    %20 = vector.broadcast %cst_14 : f32 to vector<8x8xf32>
    %21 = vector.broadcast %cst_15 : f32 to vector<8x8xf32>
    %22 = arith.select %19, %20, %21 : vector<8x8xi1>, vector<8x8xf32>
    %c0_16 = arith.constant 0 : index
    %c0_17 = arith.constant 0 : index
    %c0_18 = arith.constant 0 : index
    %23 = vector.load %arg5[%c0_16, %c0_17, %c0_18] : memref<2x96x32xf32, #tpu.memory_space<vmem>>, vector<1x96x32xf32>
    %24 = vector.shape_cast %23 : vector<1x96x32xf32> to vector<96x32xf32>
    %c0_19 = arith.constant 0 : index
    %c0_20 = arith.constant 0 : index
    %c0_21 = arith.constant 0 : index
    %25 = vector.load %arg6[%c0_19, %c0_20, %c0_21] : memref<2x1x96xf32, #tpu.memory_space<vmem>>, vector<1x1x96xf32>
    %26 = vector.shape_cast %25 : vector<1x1x96xf32> to vector<1x96xf32>
    %c0_22 = arith.constant 0 : index
    %c0_23 = arith.constant 0 : index
    %c0_24 = arith.constant 0 : index
    %27 = vector.load %arg7[%c0_22, %c0_23, %c0_24] : memref<2x32x32xf32, #tpu.memory_space<vmem>>, vector<1x32x32xf32>
    %28 = vector.shape_cast %27 : vector<1x32x32xf32> to vector<32x32xf32>
    %c0_25 = arith.constant 0 : index
    %c0_26 = arith.constant 0 : index
    %c0_27 = arith.constant 0 : index
    %29 = vector.load %arg8[%c0_25, %c0_26, %c0_27] : memref<2x1x32xf32, #tpu.memory_space<vmem>>, vector<1x1x32xf32>
    %30 = vector.shape_cast %29 : vector<1x1x32xf32> to vector<1x32xf32>
    %cst_28 = arith.constant dense<0.000000e+00> : vector<8x96xf32>
    %31 = tpu.matmul %1, %24, %cst_28 {dimension_numbers = #tpu.dot_dimension_numbers<[1], [1], [0], [0], [0, 0, 1, 0], [], []>} : vector<8x32xf32>, vector<96x32xf32>, vector<8x96xf32> -> vector<8x96xf32>
    %32 = vector.broadcast %26 : vector<1x96xf32> to vector<8x96xf32>
    %33 = arith.addf %31, %32 : vector<8x96xf32>
    %34 = vector.extract_strided_slice %33 {offsets = [0, 0], sizes = [8, 32], strides = [1, 1]} : vector<8x96xf32> to vector<8x32xf32>
    %35 = vector.extract_strided_slice %33 {offsets = [0, 32], sizes = [8, 32], strides = [1, 1]} : vector<8x96xf32> to vector<8x32xf32>
    %36 = vector.extract_strided_slice %33 {offsets = [0, 64], sizes = [8, 32], strides = [1, 1]} : vector<8x96xf32> to vector<8x32xf32>
    %37 = vector.extract_strided_slice %34 {offsets = [0, 0], sizes = [8, 8], strides = [1, 1]} : vector<8x32xf32> to vector<8x8xf32>
    %38 = vector.extract_strided_slice %35 {offsets = [0, 0], sizes = [8, 8], strides = [1, 1]} : vector<8x32xf32> to vector<8x8xf32>
    %39 = vector.extract_strided_slice %36 {offsets = [0, 0], sizes = [8, 8], strides = [1, 1]} : vector<8x32xf32> to vector<8x8xf32>
    %cst_29 = arith.constant dense<0.000000e+00> : vector<8x8xf32>
    %40 = tpu.matmul %37, %38, %cst_29 {dimension_numbers = #tpu.dot_dimension_numbers<[1], [1], [0], [0], [0, 0, 1, 0], [], []>} : vector<8x8xf32>, vector<8x8xf32>, vector<8x8xf32> -> vector<8x8xf32>
    %cst_30 = arith.constant 0.353553385 : f32
    %41 = vector.broadcast %cst_30 : f32 to vector<8x8xf32>
    %42 = arith.mulf %40, %41 : vector<8x8xf32>
    %43 = arith.addf %42, %22 : vector<8x8xf32>
    %cst_31 = arith.constant dense<0xFF800000> : vector<8xf32>
    %44 = vector.multi_reduction <maximumf>, %43, %cst_31 [1] : vector<8x8xf32> to vector<8xf32>
    %45 = vector.shape_cast %44 : vector<8xf32> to vector<8x1xf32>
    %46 = vector.broadcast %45 : vector<8x1xf32> to vector<8x8xf32>
    %47 = arith.subf %43, %46 : vector<8x8xf32>
    %48 = math.exp %47 : vector<8x8xf32>
    %cst_32 = arith.constant dense<0.000000e+00> : vector<8xf32>
    %49 = vector.multi_reduction <add>, %48, %cst_32 [1] : vector<8x8xf32> to vector<8xf32>
    %50 = vector.shape_cast %49 : vector<8xf32> to vector<8x1xf32>
    %51 = tpu.reciprocal %50 {approx = true} : vector<8x1xf32> -> vector<8x1xf32>
    %52 = vector.broadcast %51 : vector<8x1xf32> to vector<8x8xf32>
    %53 = arith.mulf %48, %52 : vector<8x8xf32>
    %cst_33 = arith.constant dense<0.000000e+00> : vector<8x8xf32>
    %54 = tpu.matmul %53, %39, %cst_33 {dimension_numbers = #tpu.dot_dimension_numbers<[1], [0], [0], [1], [0, 0, 1, 1], [], []>} : vector<8x8xf32>, vector<8x8xf32>, vector<8x8xf32> -> vector<8x8xf32>
    %55 = vector.extract_strided_slice %34 {offsets = [0, 8], sizes = [8, 8], strides = [1, 1]} : vector<8x32xf32> to vector<8x8xf32>
    %56 = vector.extract_strided_slice %35 {offsets = [0, 8], sizes = [8, 8], strides = [1, 1]} : vector<8x32xf32> to vector<8x8xf32>
    %57 = vector.extract_strided_slice %36 {offsets = [0, 8], sizes = [8, 8], strides = [1, 1]} : vector<8x32xf32> to vector<8x8xf32>
    %cst_34 = arith.constant dense<0.000000e+00> : vector<8x8xf32>
    %58 = tpu.matmul %55, %56, %cst_34 {dimension_numbers = #tpu.dot_dimension_numbers<[1], [1], [0], [0], [0, 0, 1, 0], [], []>} : vector<8x8xf32>, vector<8x8xf32>, vector<8x8xf32> -> vector<8x8xf32>
    %cst_35 = arith.constant 0.353553385 : f32
    %59 = vector.broadcast %cst_35 : f32 to vector<8x8xf32>
    %60 = arith.mulf %58, %59 : vector<8x8xf32>
    %61 = arith.addf %60, %22 : vector<8x8xf32>
    %cst_36 = arith.constant dense<0xFF800000> : vector<8xf32>
    %62 = vector.multi_reduction <maximumf>, %61, %cst_36 [1] : vector<8x8xf32> to vector<8xf32>
    %63 = vector.shape_cast %62 : vector<8xf32> to vector<8x1xf32>
    %64 = vector.broadcast %63 : vector<8x1xf32> to vector<8x8xf32>
    %65 = arith.subf %61, %64 : vector<8x8xf32>
    %66 = math.exp %65 : vector<8x8xf32>
    %cst_37 = arith.constant dense<0.000000e+00> : vector<8xf32>
    %67 = vector.multi_reduction <add>, %66, %cst_37 [1] : vector<8x8xf32> to vector<8xf32>
    %68 = vector.shape_cast %67 : vector<8xf32> to vector<8x1xf32>
    %69 = tpu.reciprocal %68 {approx = true} : vector<8x1xf32> -> vector<8x1xf32>
    %70 = vector.broadcast %69 : vector<8x1xf32> to vector<8x8xf32>
    %71 = arith.mulf %66, %70 : vector<8x8xf32>
    %cst_38 = arith.constant dense<0.000000e+00> : vector<8x8xf32>
    %72 = tpu.matmul %71, %57, %cst_38 {dimension_numbers = #tpu.dot_dimension_numbers<[1], [0], [0], [1], [0, 0, 1, 1], [], []>} : vector<8x8xf32>, vector<8x8xf32>, vector<8x8xf32> -> vector<8x8xf32>
    %73 = vector.extract_strided_slice %34 {offsets = [0, 16], sizes = [8, 8], strides = [1, 1]} : vector<8x32xf32> to vector<8x8xf32>
    %74 = vector.extract_strided_slice %35 {offsets = [0, 16], sizes = [8, 8], strides = [1, 1]} : vector<8x32xf32> to vector<8x8xf32>
    %75 = vector.extract_strided_slice %36 {offsets = [0, 16], sizes = [8, 8], strides = [1, 1]} : vector<8x32xf32> to vector<8x8xf32>
    %cst_39 = arith.constant dense<0.000000e+00> : vector<8x8xf32>
    %76 = tpu.matmul %73, %74, %cst_39 {dimension_numbers = #tpu.dot_dimension_numbers<[1], [1], [0], [0], [0, 0, 1, 0], [], []>} : vector<8x8xf32>, vector<8x8xf32>, vector<8x8xf32> -> vector<8x8xf32>
    %cst_40 = arith.constant 0.353553385 : f32
    %77 = vector.broadcast %cst_40 : f32 to vector<8x8xf32>
    %78 = arith.mulf %76, %77 : vector<8x8xf32>
    %79 = arith.addf %78, %22 : vector<8x8xf32>
    %cst_41 = arith.constant dense<0xFF800000> : vector<8xf32>
    %80 = vector.multi_reduction <maximumf>, %79, %cst_41 [1] : vector<8x8xf32> to vector<8xf32>
    %81 = vector.shape_cast %80 : vector<8xf32> to vector<8x1xf32>
    %82 = vector.broadcast %81 : vector<8x1xf32> to vector<8x8xf32>
    %83 = arith.subf %79, %82 : vector<8x8xf32>
    %84 = math.exp %83 : vector<8x8xf32>
    %cst_42 = arith.constant dense<0.000000e+00> : vector<8xf32>
    %85 = vector.multi_reduction <add>, %84, %cst_42 [1] : vector<8x8xf32> to vector<8xf32>
    %86 = vector.shape_cast %85 : vector<8xf32> to vector<8x1xf32>
    %87 = tpu.reciprocal %86 {approx = true} : vector<8x1xf32> -> vector<8x1xf32>
    %88 = vector.broadcast %87 : vector<8x1xf32> to vector<8x8xf32>
    %89 = arith.mulf %84, %88 : vector<8x8xf32>
    %cst_43 = arith.constant dense<0.000000e+00> : vector<8x8xf32>
    %90 = tpu.matmul %89, %75, %cst_43 {dimension_numbers = #tpu.dot_dimension_numbers<[1], [0], [0], [1], [0, 0, 1, 1], [], []>} : vector<8x8xf32>, vector<8x8xf32>, vector<8x8xf32> -> vector<8x8xf32>
    %91 = vector.extract_strided_slice %34 {offsets = [0, 24], sizes = [8, 8], strides = [1, 1]} : vector<8x32xf32> to vector<8x8xf32>
    %92 = vector.extract_strided_slice %35 {offsets = [0, 24], sizes = [8, 8], strides = [1, 1]} : vector<8x32xf32> to vector<8x8xf32>
    %93 = vector.extract_strided_slice %36 {offsets = [0, 24], sizes = [8, 8], strides = [1, 1]} : vector<8x32xf32> to vector<8x8xf32>
    %cst_44 = arith.constant dense<0.000000e+00> : vector<8x8xf32>
    %94 = tpu.matmul %91, %92, %cst_44 {dimension_numbers = #tpu.dot_dimension_numbers<[1], [1], [0], [0], [0, 0, 1, 0], [], []>} : vector<8x8xf32>, vector<8x8xf32>, vector<8x8xf32> -> vector<8x8xf32>
    %cst_45 = arith.constant 0.353553385 : f32
    %95 = vector.broadcast %cst_45 : f32 to vector<8x8xf32>
    %96 = arith.mulf %94, %95 : vector<8x8xf32>
    %97 = arith.addf %96, %22 : vector<8x8xf32>
    %cst_46 = arith.constant dense<0xFF800000> : vector<8xf32>
    %98 = vector.multi_reduction <maximumf>, %97, %cst_46 [1] : vector<8x8xf32> to vector<8xf32>
    %99 = vector.shape_cast %98 : vector<8xf32> to vector<8x1xf32>
    %100 = vector.broadcast %99 : vector<8x1xf32> to vector<8x8xf32>
    %101 = arith.subf %97, %100 : vector<8x8xf32>
    %102 = math.exp %101 : vector<8x8xf32>
    %cst_47 = arith.constant dense<0.000000e+00> : vector<8xf32>
    %103 = vector.multi_reduction <add>, %102, %cst_47 [1] : vector<8x8xf32> to vector<8xf32>
    %104 = vector.shape_cast %103 : vector<8xf32> to vector<8x1xf32>
    %105 = tpu.reciprocal %104 {approx = true} : vector<8x1xf32> -> vector<8x1xf32>
    %106 = vector.broadcast %105 : vector<8x1xf32> to vector<8x8xf32>
    %107 = arith.mulf %102, %106 : vector<8x8xf32>
    %cst_48 = arith.constant dense<0.000000e+00> : vector<8x8xf32>
    %108 = tpu.matmul %107, %93, %cst_48 {dimension_numbers = #tpu.dot_dimension_numbers<[1], [0], [0], [1], [0, 0, 1, 1], [], []>} : vector<8x8xf32>, vector<8x8xf32>, vector<8x8xf32> -> vector<8x8xf32>
    %109 = tpu.concatenate %54, %72, %90, %108 in 1 : vector<8x8xf32>, vector<8x8xf32>, vector<8x8xf32>, vector<8x8xf32> -> vector<8x32xf32>
    %cst_49 = arith.constant dense<0.000000e+00> : vector<8x32xf32>
    %110 = tpu.matmul %109, %28, %cst_49 {dimension_numbers = #tpu.dot_dimension_numbers<[1], [1], [0], [0], [0, 0, 1, 0], [], []>} : vector<8x32xf32>, vector<32x32xf32>, vector<8x32xf32> -> vector<8x32xf32>
    %111 = vector.broadcast %30 : vector<1x32xf32> to vector<8x32xf32>
    %112 = arith.addf %110, %111 : vector<8x32xf32>
    %c0_50 = arith.constant 0 : index
    %c0_51 = arith.constant 0 : index
    %c0_52 = arith.constant 0 : index
    %113 = vector.load %arg13[%c0_50, %c0_51, %c0_52] : memref<2x1x32xf32, #tpu.memory_space<vmem>>, vector<1x1x32xf32>
    %114 = vector.shape_cast %113 : vector<1x1x32xf32> to vector<1x32xf32>
    %c0_53 = arith.constant 0 : index
    %c0_54 = arith.constant 0 : index
    %c0_55 = arith.constant 0 : index
    %115 = vector.load %arg14[%c0_53, %c0_54, %c0_55] : memref<2x1x32xf32, #tpu.memory_space<vmem>>, vector<1x1x32xf32>
    %116 = vector.shape_cast %115 : vector<1x1x32xf32> to vector<1x32xf32>
    %117 = arith.addf %1, %112 : vector<8x32xf32>
    %cst_56 = arith.constant dense<0.000000e+00> : vector<8xf32>
    %118 = vector.multi_reduction <add>, %117, %cst_56 [1] : vector<8x32xf32> to vector<8xf32>
    %119 = vector.shape_cast %118 : vector<8xf32> to vector<8x1xf32>
    %cst_57 = arith.constant 3.200000e+01 : f32
    %120 = vector.broadcast %cst_57 : f32 to vector<8x1xf32>
    %121 = arith.divf %119, %120 : vector<8x1xf32>
    %122 = vector.broadcast %121 : vector<8x1xf32> to vector<8x32xf32>
    %123 = arith.subf %117, %122 : vector<8x32xf32>
    %124 = vector.broadcast %121 : vector<8x1xf32> to vector<8x32xf32>
    %125 = arith.subf %117, %124 : vector<8x32xf32>
    %126 = arith.mulf %123, %125 : vector<8x32xf32>
    %cst_58 = arith.constant dense<0.000000e+00> : vector<8xf32>
    %127 = vector.multi_reduction <add>, %126, %cst_58 [1] : vector<8x32xf32> to vector<8xf32>
    %128 = vector.shape_cast %127 : vector<8xf32> to vector<8x1xf32>
    %cst_59 = arith.constant 3.200000e+01 : f32
    %129 = vector.broadcast %cst_59 : f32 to vector<8x1xf32>
    %130 = arith.divf %128, %129 : vector<8x1xf32>
    %131 = vector.broadcast %121 : vector<8x1xf32> to vector<8x32xf32>
    %132 = arith.subf %117, %131 : vector<8x32xf32>
    %cst_60 = arith.constant 9.99999974E-6 : f32
    %133 = vector.broadcast %cst_60 : f32 to vector<8x1xf32>
    %134 = arith.addf %130, %133 : vector<8x1xf32>
    %135 = math.rsqrt %134 : vector<8x1xf32>
    %136 = vector.broadcast %135 : vector<8x1xf32> to vector<8x32xf32>
    %137 = arith.mulf %132, %136 : vector<8x32xf32>
    %138 = vector.broadcast %114 : vector<1x32xf32> to vector<8x32xf32>
    %139 = arith.mulf %137, %138 : vector<8x32xf32>
    %140 = vector.broadcast %116 : vector<1x32xf32> to vector<8x32xf32>
    %141 = arith.addf %139, %140 : vector<8x32xf32>
    %c0_61 = arith.constant 0 : index
    %c0_62 = arith.constant 0 : index
    %c0_63 = arith.constant 0 : index
    %142 = vector.load %arg9[%c0_61, %c0_62, %c0_63] : memref<2x96x32xf32, #tpu.memory_space<vmem>>, vector<1x96x32xf32>
    %143 = vector.shape_cast %142 : vector<1x96x32xf32> to vector<96x32xf32>
    %c0_64 = arith.constant 0 : index
    %c0_65 = arith.constant 0 : index
    %c0_66 = arith.constant 0 : index
    %144 = vector.load %arg10[%c0_64, %c0_65, %c0_66] : memref<2x1x96xf32, #tpu.memory_space<vmem>>, vector<1x1x96xf32>
    %145 = vector.shape_cast %144 : vector<1x1x96xf32> to vector<1x96xf32>
    %c0_67 = arith.constant 0 : index
    %c0_68 = arith.constant 0 : index
    %c0_69 = arith.constant 0 : index
    %146 = vector.load %arg11[%c0_67, %c0_68, %c0_69] : memref<2x32x32xf32, #tpu.memory_space<vmem>>, vector<1x32x32xf32>
    %147 = vector.shape_cast %146 : vector<1x32x32xf32> to vector<32x32xf32>
    %c0_70 = arith.constant 0 : index
    %c0_71 = arith.constant 0 : index
    %c0_72 = arith.constant 0 : index
    %148 = vector.load %arg12[%c0_70, %c0_71, %c0_72] : memref<2x1x32xf32, #tpu.memory_space<vmem>>, vector<1x1x32xf32>
    %149 = vector.shape_cast %148 : vector<1x1x32xf32> to vector<1x32xf32>
    %150 = vector.extract_strided_slice %143 {offsets = [0, 0], sizes = [32, 32], strides = [1, 1]} : vector<96x32xf32> to vector<32x32xf32>
    %cst_73 = arith.constant dense<0.000000e+00> : vector<8x32xf32>
    %151 = tpu.matmul %141, %150, %cst_73 {dimension_numbers = #tpu.dot_dimension_numbers<[1], [1], [0], [0], [0, 0, 1, 0], [], []>} : vector<8x32xf32>, vector<32x32xf32>, vector<8x32xf32> -> vector<8x32xf32>
    %152 = vector.extract_strided_slice %145 {offsets = [0, 0], sizes = [1, 32], strides = [1, 1]} : vector<1x96xf32> to vector<1x32xf32>
    %153 = vector.broadcast %152 : vector<1x32xf32> to vector<8x32xf32>
    %154 = arith.addf %151, %153 : vector<8x32xf32>
    %155 = vector.extract_strided_slice %143 {offsets = [32, 0], sizes = [64, 32], strides = [1, 1]} : vector<96x32xf32> to vector<64x32xf32>
    %cst_74 = arith.constant dense<0.000000e+00> : vector<8x64xf32>
    %156 = tpu.matmul %3, %155, %cst_74 {dimension_numbers = #tpu.dot_dimension_numbers<[1], [1], [0], [0], [0, 0, 1, 0], [], []>} : vector<8x32xf32>, vector<64x32xf32>, vector<8x64xf32> -> vector<8x64xf32>
    %157 = vector.extract_strided_slice %145 {offsets = [0, 32], sizes = [1, 64], strides = [1, 1]} : vector<1x96xf32> to vector<1x64xf32>
    %158 = vector.broadcast %157 : vector<1x64xf32> to vector<8x64xf32>
    %159 = arith.addf %156, %158 : vector<8x64xf32>
    %160 = vector.extract_strided_slice %159 {offsets = [0, 0], sizes = [8, 32], strides = [1, 1]} : vector<8x64xf32> to vector<8x32xf32>
    %161 = vector.extract_strided_slice %159 {offsets = [0, 32], sizes = [8, 32], strides = [1, 1]} : vector<8x64xf32> to vector<8x32xf32>
    %162 = vector.extract_strided_slice %154 {offsets = [0, 0], sizes = [8, 8], strides = [1, 1]} : vector<8x32xf32> to vector<8x8xf32>
    %163 = vector.extract_strided_slice %160 {offsets = [0, 0], sizes = [8, 8], strides = [1, 1]} : vector<8x32xf32> to vector<8x8xf32>
    %164 = vector.extract_strided_slice %161 {offsets = [0, 0], sizes = [8, 8], strides = [1, 1]} : vector<8x32xf32> to vector<8x8xf32>
    %cst_75 = arith.constant dense<0.000000e+00> : vector<8x8xf32>
    %165 = tpu.matmul %162, %163, %cst_75 {dimension_numbers = #tpu.dot_dimension_numbers<[1], [1], [0], [0], [0, 0, 1, 0], [], []>} : vector<8x8xf32>, vector<8x8xf32>, vector<8x8xf32> -> vector<8x8xf32>
    %cst_76 = arith.constant 0.353553385 : f32
    %166 = vector.broadcast %cst_76 : f32 to vector<8x8xf32>
    %167 = arith.mulf %165, %166 : vector<8x8xf32>
    %168 = vector.broadcast %12 : vector<1x8xf32> to vector<8x8xf32>
    %169 = arith.addf %167, %168 : vector<8x8xf32>
    %cst_77 = arith.constant dense<0xFF800000> : vector<8xf32>
    %170 = vector.multi_reduction <maximumf>, %169, %cst_77 [1] : vector<8x8xf32> to vector<8xf32>
    %171 = vector.shape_cast %170 : vector<8xf32> to vector<8x1xf32>
    %172 = vector.broadcast %171 : vector<8x1xf32> to vector<8x8xf32>
    %173 = arith.subf %169, %172 : vector<8x8xf32>
    %174 = math.exp %173 : vector<8x8xf32>
    %cst_78 = arith.constant dense<0.000000e+00> : vector<8xf32>
    %175 = vector.multi_reduction <add>, %174, %cst_78 [1] : vector<8x8xf32> to vector<8xf32>
    %176 = vector.shape_cast %175 : vector<8xf32> to vector<8x1xf32>
    %177 = tpu.reciprocal %176 {approx = true} : vector<8x1xf32> -> vector<8x1xf32>
    %178 = vector.broadcast %177 : vector<8x1xf32> to vector<8x8xf32>
    %179 = arith.mulf %174, %178 : vector<8x8xf32>
    %cst_79 = arith.constant dense<0.000000e+00> : vector<8x8xf32>
    %180 = tpu.matmul %179, %164, %cst_79 {dimension_numbers = #tpu.dot_dimension_numbers<[1], [0], [0], [1], [0, 0, 1, 1], [], []>} : vector<8x8xf32>, vector<8x8xf32>, vector<8x8xf32> -> vector<8x8xf32>
    %181 = vector.extract_strided_slice %154 {offsets = [0, 8], sizes = [8, 8], strides = [1, 1]} : vector<8x32xf32> to vector<8x8xf32>
    %182 = vector.extract_strided_slice %160 {offsets = [0, 8], sizes = [8, 8], strides = [1, 1]} : vector<8x32xf32> to vector<8x8xf32>
    %183 = vector.extract_strided_slice %161 {offsets = [0, 8], sizes = [8, 8], strides = [1, 1]} : vector<8x32xf32> to vector<8x8xf32>
    %cst_80 = arith.constant dense<0.000000e+00> : vector<8x8xf32>
    %184 = tpu.matmul %181, %182, %cst_80 {dimension_numbers = #tpu.dot_dimension_numbers<[1], [1], [0], [0], [0, 0, 1, 0], [], []>} : vector<8x8xf32>, vector<8x8xf32>, vector<8x8xf32> -> vector<8x8xf32>
    %cst_81 = arith.constant 0.353553385 : f32
    %185 = vector.broadcast %cst_81 : f32 to vector<8x8xf32>
    %186 = arith.mulf %184, %185 : vector<8x8xf32>
    %187 = vector.broadcast %12 : vector<1x8xf32> to vector<8x8xf32>
    %188 = arith.addf %186, %187 : vector<8x8xf32>
    %cst_82 = arith.constant dense<0xFF800000> : vector<8xf32>
    %189 = vector.multi_reduction <maximumf>, %188, %cst_82 [1] : vector<8x8xf32> to vector<8xf32>
    %190 = vector.shape_cast %189 : vector<8xf32> to vector<8x1xf32>
    %191 = vector.broadcast %190 : vector<8x1xf32> to vector<8x8xf32>
    %192 = arith.subf %188, %191 : vector<8x8xf32>
    %193 = math.exp %192 : vector<8x8xf32>
    %cst_83 = arith.constant dense<0.000000e+00> : vector<8xf32>
    %194 = vector.multi_reduction <add>, %193, %cst_83 [1] : vector<8x8xf32> to vector<8xf32>
    %195 = vector.shape_cast %194 : vector<8xf32> to vector<8x1xf32>
    %196 = tpu.reciprocal %195 {approx = true} : vector<8x1xf32> -> vector<8x1xf32>
    %197 = vector.broadcast %196 : vector<8x1xf32> to vector<8x8xf32>
    %198 = arith.mulf %193, %197 : vector<8x8xf32>
    %cst_84 = arith.constant dense<0.000000e+00> : vector<8x8xf32>
    %199 = tpu.matmul %198, %183, %cst_84 {dimension_numbers = #tpu.dot_dimension_numbers<[1], [0], [0], [1], [0, 0, 1, 1], [], []>} : vector<8x8xf32>, vector<8x8xf32>, vector<8x8xf32> -> vector<8x8xf32>
    %200 = vector.extract_strided_slice %154 {offsets = [0, 16], sizes = [8, 8], strides = [1, 1]} : vector<8x32xf32> to vector<8x8xf32>
    %201 = vector.extract_strided_slice %160 {offsets = [0, 16], sizes = [8, 8], strides = [1, 1]} : vector<8x32xf32> to vector<8x8xf32>
    %202 = vector.extract_strided_slice %161 {offsets = [0, 16], sizes = [8, 8], strides = [1, 1]} : vector<8x32xf32> to vector<8x8xf32>
    %cst_85 = arith.constant dense<0.000000e+00> : vector<8x8xf32>
    %203 = tpu.matmul %200, %201, %cst_85 {dimension_numbers = #tpu.dot_dimension_numbers<[1], [1], [0], [0], [0, 0, 1, 0], [], []>} : vector<8x8xf32>, vector<8x8xf32>, vector<8x8xf32> -> vector<8x8xf32>
    %cst_86 = arith.constant 0.353553385 : f32
    %204 = vector.broadcast %cst_86 : f32 to vector<8x8xf32>
    %205 = arith.mulf %203, %204 : vector<8x8xf32>
    %206 = vector.broadcast %12 : vector<1x8xf32> to vector<8x8xf32>
    %207 = arith.addf %205, %206 : vector<8x8xf32>
    %cst_87 = arith.constant dense<0xFF800000> : vector<8xf32>
    %208 = vector.multi_reduction <maximumf>, %207, %cst_87 [1] : vector<8x8xf32> to vector<8xf32>
    %209 = vector.shape_cast %208 : vector<8xf32> to vector<8x1xf32>
    %210 = vector.broadcast %209 : vector<8x1xf32> to vector<8x8xf32>
    %211 = arith.subf %207, %210 : vector<8x8xf32>
    %212 = math.exp %211 : vector<8x8xf32>
    %cst_88 = arith.constant dense<0.000000e+00> : vector<8xf32>
    %213 = vector.multi_reduction <add>, %212, %cst_88 [1] : vector<8x8xf32> to vector<8xf32>
    %214 = vector.shape_cast %213 : vector<8xf32> to vector<8x1xf32>
    %215 = tpu.reciprocal %214 {approx = true} : vector<8x1xf32> -> vector<8x1xf32>
    %216 = vector.broadcast %215 : vector<8x1xf32> to vector<8x8xf32>
    %217 = arith.mulf %212, %216 : vector<8x8xf32>
    %cst_89 = arith.constant dense<0.000000e+00> : vector<8x8xf32>
    %218 = tpu.matmul %217, %202, %cst_89 {dimension_numbers = #tpu.dot_dimension_numbers<[1], [0], [0], [1], [0, 0, 1, 1], [], []>} : vector<8x8xf32>, vector<8x8xf32>, vector<8x8xf32> -> vector<8x8xf32>
    %219 = vector.extract_strided_slice %154 {offsets = [0, 24], sizes = [8, 8], strides = [1, 1]} : vector<8x32xf32> to vector<8x8xf32>
    %220 = vector.extract_strided_slice %160 {offsets = [0, 24], sizes = [8, 8], strides = [1, 1]} : vector<8x32xf32> to vector<8x8xf32>
    %221 = vector.extract_strided_slice %161 {offsets = [0, 24], sizes = [8, 8], strides = [1, 1]} : vector<8x32xf32> to vector<8x8xf32>
    %cst_90 = arith.constant dense<0.000000e+00> : vector<8x8xf32>
    %222 = tpu.matmul %219, %220, %cst_90 {dimension_numbers = #tpu.dot_dimension_numbers<[1], [1], [0], [0], [0, 0, 1, 0], [], []>} : vector<8x8xf32>, vector<8x8xf32>, vector<8x8xf32> -> vector<8x8xf32>
    %cst_91 = arith.constant 0.353553385 : f32
    %223 = vector.broadcast %cst_91 : f32 to vector<8x8xf32>
    %224 = arith.mulf %222, %223 : vector<8x8xf32>
    %225 = vector.broadcast %12 : vector<1x8xf32> to vector<8x8xf32>
    %226 = arith.addf %224, %225 : vector<8x8xf32>
    %cst_92 = arith.constant dense<0xFF800000> : vector<8xf32>
    %227 = vector.multi_reduction <maximumf>, %226, %cst_92 [1] : vector<8x8xf32> to vector<8xf32>
    %228 = vector.shape_cast %227 : vector<8xf32> to vector<8x1xf32>
    %229 = vector.broadcast %228 : vector<8x1xf32> to vector<8x8xf32>
    %230 = arith.subf %226, %229 : vector<8x8xf32>
    %231 = math.exp %230 : vector<8x8xf32>
    %cst_93 = arith.constant dense<0.000000e+00> : vector<8xf32>
    %232 = vector.multi_reduction <add>, %231, %cst_93 [1] : vector<8x8xf32> to vector<8xf32>
    %233 = vector.shape_cast %232 : vector<8xf32> to vector<8x1xf32>
    %234 = tpu.reciprocal %233 {approx = true} : vector<8x1xf32> -> vector<8x1xf32>
    %235 = vector.broadcast %234 : vector<8x1xf32> to vector<8x8xf32>
    %236 = arith.mulf %231, %235 : vector<8x8xf32>
    %cst_94 = arith.constant dense<0.000000e+00> : vector<8x8xf32>
    %237 = tpu.matmul %236, %221, %cst_94 {dimension_numbers = #tpu.dot_dimension_numbers<[1], [0], [0], [1], [0, 0, 1, 1], [], []>} : vector<8x8xf32>, vector<8x8xf32>, vector<8x8xf32> -> vector<8x8xf32>
    %238 = tpu.concatenate %180, %199, %218, %237 in 1 : vector<8x8xf32>, vector<8x8xf32>, vector<8x8xf32>, vector<8x8xf32> -> vector<8x32xf32>
    %cst_95 = arith.constant dense<0.000000e+00> : vector<8x32xf32>
    %239 = tpu.matmul %238, %147, %cst_95 {dimension_numbers = #tpu.dot_dimension_numbers<[1], [1], [0], [0], [0, 0, 1, 0], [], []>} : vector<8x32xf32>, vector<32x32xf32>, vector<8x32xf32> -> vector<8x32xf32>
    %240 = vector.broadcast %149 : vector<1x32xf32> to vector<8x32xf32>
    %241 = arith.addf %239, %240 : vector<8x32xf32>
    %c0_96 = arith.constant 0 : index
    %c0_97 = arith.constant 0 : index
    %c0_98 = arith.constant 0 : index
    %242 = vector.load %arg15[%c0_96, %c0_97, %c0_98] : memref<2x1x32xf32, #tpu.memory_space<vmem>>, vector<1x1x32xf32>
    %243 = vector.shape_cast %242 : vector<1x1x32xf32> to vector<1x32xf32>
    %c0_99 = arith.constant 0 : index
    %c0_100 = arith.constant 0 : index
    %c0_101 = arith.constant 0 : index
    %244 = vector.load %arg16[%c0_99, %c0_100, %c0_101] : memref<2x1x32xf32, #tpu.memory_space<vmem>>, vector<1x1x32xf32>
    %245 = vector.shape_cast %244 : vector<1x1x32xf32> to vector<1x32xf32>
    %246 = arith.addf %141, %241 : vector<8x32xf32>
    %cst_102 = arith.constant dense<0.000000e+00> : vector<8xf32>
    %247 = vector.multi_reduction <add>, %246, %cst_102 [1] : vector<8x32xf32> to vector<8xf32>
    %248 = vector.shape_cast %247 : vector<8xf32> to vector<8x1xf32>
    %cst_103 = arith.constant 3.200000e+01 : f32
    %249 = vector.broadcast %cst_103 : f32 to vector<8x1xf32>
    %250 = arith.divf %248, %249 : vector<8x1xf32>
    %251 = vector.broadcast %250 : vector<8x1xf32> to vector<8x32xf32>
    %252 = arith.subf %246, %251 : vector<8x32xf32>
    %253 = vector.broadcast %250 : vector<8x1xf32> to vector<8x32xf32>
    %254 = arith.subf %246, %253 : vector<8x32xf32>
    %255 = arith.mulf %252, %254 : vector<8x32xf32>
    %cst_104 = arith.constant dense<0.000000e+00> : vector<8xf32>
    %256 = vector.multi_reduction <add>, %255, %cst_104 [1] : vector<8x32xf32> to vector<8xf32>
    %257 = vector.shape_cast %256 : vector<8xf32> to vector<8x1xf32>
    %cst_105 = arith.constant 3.200000e+01 : f32
    %258 = vector.broadcast %cst_105 : f32 to vector<8x1xf32>
    %259 = arith.divf %257, %258 : vector<8x1xf32>
    %260 = vector.broadcast %250 : vector<8x1xf32> to vector<8x32xf32>
    %261 = arith.subf %246, %260 : vector<8x32xf32>
    %cst_106 = arith.constant 9.99999974E-6 : f32
    %262 = vector.broadcast %cst_106 : f32 to vector<8x1xf32>
    %263 = arith.addf %259, %262 : vector<8x1xf32>
    %264 = math.rsqrt %263 : vector<8x1xf32>
    %265 = vector.broadcast %264 : vector<8x1xf32> to vector<8x32xf32>
    %266 = arith.mulf %261, %265 : vector<8x32xf32>
    %267 = vector.broadcast %243 : vector<1x32xf32> to vector<8x32xf32>
    %268 = arith.mulf %266, %267 : vector<8x32xf32>
    %269 = vector.broadcast %245 : vector<1x32xf32> to vector<8x32xf32>
    %270 = arith.addf %268, %269 : vector<8x32xf32>
    %c0_107 = arith.constant 0 : index
    %c0_108 = arith.constant 0 : index
    %c0_109 = arith.constant 0 : index
    %271 = vector.load %arg19[%c0_107, %c0_108, %c0_109] : memref<2x64x32xf32, #tpu.memory_space<vmem>>, vector<1x64x32xf32>
    %272 = vector.shape_cast %271 : vector<1x64x32xf32> to vector<64x32xf32>
    %c0_110 = arith.constant 0 : index
    %c0_111 = arith.constant 0 : index
    %c0_112 = arith.constant 0 : index
    %273 = vector.load %arg20[%c0_110, %c0_111, %c0_112] : memref<2x1x64xf32, #tpu.memory_space<vmem>>, vector<1x1x64xf32>
    %274 = vector.shape_cast %273 : vector<1x1x64xf32> to vector<1x64xf32>
    %c0_113 = arith.constant 0 : index
    %c0_114 = arith.constant 0 : index
    %c0_115 = arith.constant 0 : index
    %275 = vector.load %arg21[%c0_113, %c0_114, %c0_115] : memref<2x32x64xf32, #tpu.memory_space<vmem>>, vector<1x32x64xf32>
    %276 = vector.shape_cast %275 : vector<1x32x64xf32> to vector<32x64xf32>
    %c0_116 = arith.constant 0 : index
    %c0_117 = arith.constant 0 : index
    %c0_118 = arith.constant 0 : index
    %277 = vector.load %arg22[%c0_116, %c0_117, %c0_118] : memref<2x1x32xf32, #tpu.memory_space<vmem>>, vector<1x1x32xf32>
    %278 = vector.shape_cast %277 : vector<1x1x32xf32> to vector<1x32xf32>
    %cst_119 = arith.constant dense<0.000000e+00> : vector<8x64xf32>
    %279 = tpu.matmul %270, %272, %cst_119 {dimension_numbers = #tpu.dot_dimension_numbers<[1], [1], [0], [0], [0, 0, 1, 0], [], []>} : vector<8x32xf32>, vector<64x32xf32>, vector<8x64xf32> -> vector<8x64xf32>
    %280 = vector.broadcast %274 : vector<1x64xf32> to vector<8x64xf32>
    %281 = arith.addf %279, %280 : vector<8x64xf32>
    %cst_120 = arith.constant 0.000000e+00 : f32
    %282 = vector.broadcast %cst_120 : f32 to vector<8x64xf32>
    %283 = arith.maximumf %281, %282 : vector<8x64xf32>
    %cst_121 = arith.constant dense<0.000000e+00> : vector<8x32xf32>
    %284 = tpu.matmul %283, %276, %cst_121 {dimension_numbers = #tpu.dot_dimension_numbers<[1], [1], [0], [0], [0, 0, 1, 0], [], []>} : vector<8x64xf32>, vector<32x64xf32>, vector<8x32xf32> -> vector<8x32xf32>
    %285 = vector.broadcast %278 : vector<1x32xf32> to vector<8x32xf32>
    %286 = arith.addf %284, %285 : vector<8x32xf32>
    %c0_122 = arith.constant 0 : index
    %c0_123 = arith.constant 0 : index
    %c0_124 = arith.constant 0 : index
    %287 = vector.load %arg17[%c0_122, %c0_123, %c0_124] : memref<2x1x32xf32, #tpu.memory_space<vmem>>, vector<1x1x32xf32>
    %288 = vector.shape_cast %287 : vector<1x1x32xf32> to vector<1x32xf32>
    %c0_125 = arith.constant 0 : index
    %c0_126 = arith.constant 0 : index
    %c0_127 = arith.constant 0 : index
    %289 = vector.load %arg18[%c0_125, %c0_126, %c0_127] : memref<2x1x32xf32, #tpu.memory_space<vmem>>, vector<1x1x32xf32>
    %290 = vector.shape_cast %289 : vector<1x1x32xf32> to vector<1x32xf32>
    %291 = arith.addf %270, %286 : vector<8x32xf32>
    %cst_128 = arith.constant dense<0.000000e+00> : vector<8xf32>
    %292 = vector.multi_reduction <add>, %291, %cst_128 [1] : vector<8x32xf32> to vector<8xf32>
    %293 = vector.shape_cast %292 : vector<8xf32> to vector<8x1xf32>
    %cst_129 = arith.constant 3.200000e+01 : f32
    %294 = vector.broadcast %cst_129 : f32 to vector<8x1xf32>
    %295 = arith.divf %293, %294 : vector<8x1xf32>
    %296 = vector.broadcast %295 : vector<8x1xf32> to vector<8x32xf32>
    %297 = arith.subf %291, %296 : vector<8x32xf32>
    %298 = vector.broadcast %295 : vector<8x1xf32> to vector<8x32xf32>
    %299 = arith.subf %291, %298 : vector<8x32xf32>
    %300 = arith.mulf %297, %299 : vector<8x32xf32>
    %cst_130 = arith.constant dense<0.000000e+00> : vector<8xf32>
    %301 = vector.multi_reduction <add>, %300, %cst_130 [1] : vector<8x32xf32> to vector<8xf32>
    %302 = vector.shape_cast %301 : vector<8xf32> to vector<8x1xf32>
    %cst_131 = arith.constant 3.200000e+01 : f32
    %303 = vector.broadcast %cst_131 : f32 to vector<8x1xf32>
    %304 = arith.divf %302, %303 : vector<8x1xf32>
    %305 = vector.broadcast %295 : vector<8x1xf32> to vector<8x32xf32>
    %306 = arith.subf %291, %305 : vector<8x32xf32>
    %cst_132 = arith.constant 9.99999974E-6 : f32
    %307 = vector.broadcast %cst_132 : f32 to vector<8x1xf32>
    %308 = arith.addf %304, %307 : vector<8x1xf32>
    %309 = math.rsqrt %308 : vector<8x1xf32>
    %310 = vector.broadcast %309 : vector<8x1xf32> to vector<8x32xf32>
    %311 = arith.mulf %306, %310 : vector<8x32xf32>
    %312 = vector.broadcast %288 : vector<1x32xf32> to vector<8x32xf32>
    %313 = arith.mulf %311, %312 : vector<8x32xf32>
    %314 = vector.broadcast %290 : vector<1x32xf32> to vector<8x32xf32>
    %315 = arith.addf %313, %314 : vector<8x32xf32>
    %c1 = arith.constant 1 : index
    %c0_133 = arith.constant 0 : index
    %c0_134 = arith.constant 0 : index
    %316 = vector.load %arg5[%c1, %c0_133, %c0_134] : memref<2x96x32xf32, #tpu.memory_space<vmem>>, vector<1x96x32xf32>
    %317 = vector.shape_cast %316 : vector<1x96x32xf32> to vector<96x32xf32>
    %c1_135 = arith.constant 1 : index
    %c0_136 = arith.constant 0 : index
    %c0_137 = arith.constant 0 : index
    %318 = vector.load %arg6[%c1_135, %c0_136, %c0_137] : memref<2x1x96xf32, #tpu.memory_space<vmem>>, vector<1x1x96xf32>
    %319 = vector.shape_cast %318 : vector<1x1x96xf32> to vector<1x96xf32>
    %c1_138 = arith.constant 1 : index
    %c0_139 = arith.constant 0 : index
    %c0_140 = arith.constant 0 : index
    %320 = vector.load %arg7[%c1_138, %c0_139, %c0_140] : memref<2x32x32xf32, #tpu.memory_space<vmem>>, vector<1x32x32xf32>
    %321 = vector.shape_cast %320 : vector<1x32x32xf32> to vector<32x32xf32>
    %c1_141 = arith.constant 1 : index
    %c0_142 = arith.constant 0 : index
    %c0_143 = arith.constant 0 : index
    %322 = vector.load %arg8[%c1_141, %c0_142, %c0_143] : memref<2x1x32xf32, #tpu.memory_space<vmem>>, vector<1x1x32xf32>
    %323 = vector.shape_cast %322 : vector<1x1x32xf32> to vector<1x32xf32>
    %cst_144 = arith.constant dense<0.000000e+00> : vector<8x96xf32>
    %324 = tpu.matmul %315, %317, %cst_144 {dimension_numbers = #tpu.dot_dimension_numbers<[1], [1], [0], [0], [0, 0, 1, 0], [], []>} : vector<8x32xf32>, vector<96x32xf32>, vector<8x96xf32> -> vector<8x96xf32>
    %325 = vector.broadcast %319 : vector<1x96xf32> to vector<8x96xf32>
    %326 = arith.addf %324, %325 : vector<8x96xf32>
    %327 = vector.extract_strided_slice %326 {offsets = [0, 0], sizes = [8, 32], strides = [1, 1]} : vector<8x96xf32> to vector<8x32xf32>
    %328 = vector.extract_strided_slice %326 {offsets = [0, 32], sizes = [8, 32], strides = [1, 1]} : vector<8x96xf32> to vector<8x32xf32>
    %329 = vector.extract_strided_slice %326 {offsets = [0, 64], sizes = [8, 32], strides = [1, 1]} : vector<8x96xf32> to vector<8x32xf32>
    %330 = vector.extract_strided_slice %327 {offsets = [0, 0], sizes = [8, 8], strides = [1, 1]} : vector<8x32xf32> to vector<8x8xf32>
    %331 = vector.extract_strided_slice %328 {offsets = [0, 0], sizes = [8, 8], strides = [1, 1]} : vector<8x32xf32> to vector<8x8xf32>
    %332 = vector.extract_strided_slice %329 {offsets = [0, 0], sizes = [8, 8], strides = [1, 1]} : vector<8x32xf32> to vector<8x8xf32>
    %cst_145 = arith.constant dense<0.000000e+00> : vector<8x8xf32>
    %333 = tpu.matmul %330, %331, %cst_145 {dimension_numbers = #tpu.dot_dimension_numbers<[1], [1], [0], [0], [0, 0, 1, 0], [], []>} : vector<8x8xf32>, vector<8x8xf32>, vector<8x8xf32> -> vector<8x8xf32>
    %cst_146 = arith.constant 0.353553385 : f32
    %334 = vector.broadcast %cst_146 : f32 to vector<8x8xf32>
    %335 = arith.mulf %333, %334 : vector<8x8xf32>
    %336 = arith.addf %335, %22 : vector<8x8xf32>
    %cst_147 = arith.constant dense<0xFF800000> : vector<8xf32>
    %337 = vector.multi_reduction <maximumf>, %336, %cst_147 [1] : vector<8x8xf32> to vector<8xf32>
    %338 = vector.shape_cast %337 : vector<8xf32> to vector<8x1xf32>
    %339 = vector.broadcast %338 : vector<8x1xf32> to vector<8x8xf32>
    %340 = arith.subf %336, %339 : vector<8x8xf32>
    %341 = math.exp %340 : vector<8x8xf32>
    %cst_148 = arith.constant dense<0.000000e+00> : vector<8xf32>
    %342 = vector.multi_reduction <add>, %341, %cst_148 [1] : vector<8x8xf32> to vector<8xf32>
    %343 = vector.shape_cast %342 : vector<8xf32> to vector<8x1xf32>
    %344 = tpu.reciprocal %343 {approx = true} : vector<8x1xf32> -> vector<8x1xf32>
    %345 = vector.broadcast %344 : vector<8x1xf32> to vector<8x8xf32>
    %346 = arith.mulf %341, %345 : vector<8x8xf32>
    %cst_149 = arith.constant dense<0.000000e+00> : vector<8x8xf32>
    %347 = tpu.matmul %346, %332, %cst_149 {dimension_numbers = #tpu.dot_dimension_numbers<[1], [0], [0], [1], [0, 0, 1, 1], [], []>} : vector<8x8xf32>, vector<8x8xf32>, vector<8x8xf32> -> vector<8x8xf32>
    %348 = vector.extract_strided_slice %327 {offsets = [0, 8], sizes = [8, 8], strides = [1, 1]} : vector<8x32xf32> to vector<8x8xf32>
    %349 = vector.extract_strided_slice %328 {offsets = [0, 8], sizes = [8, 8], strides = [1, 1]} : vector<8x32xf32> to vector<8x8xf32>
    %350 = vector.extract_strided_slice %329 {offsets = [0, 8], sizes = [8, 8], strides = [1, 1]} : vector<8x32xf32> to vector<8x8xf32>
    %cst_150 = arith.constant dense<0.000000e+00> : vector<8x8xf32>
    %351 = tpu.matmul %348, %349, %cst_150 {dimension_numbers = #tpu.dot_dimension_numbers<[1], [1], [0], [0], [0, 0, 1, 0], [], []>} : vector<8x8xf32>, vector<8x8xf32>, vector<8x8xf32> -> vector<8x8xf32>
    %cst_151 = arith.constant 0.353553385 : f32
    %352 = vector.broadcast %cst_151 : f32 to vector<8x8xf32>
    %353 = arith.mulf %351, %352 : vector<8x8xf32>
    %354 = arith.addf %353, %22 : vector<8x8xf32>
    %cst_152 = arith.constant dense<0xFF800000> : vector<8xf32>
    %355 = vector.multi_reduction <maximumf>, %354, %cst_152 [1] : vector<8x8xf32> to vector<8xf32>
    %356 = vector.shape_cast %355 : vector<8xf32> to vector<8x1xf32>
    %357 = vector.broadcast %356 : vector<8x1xf32> to vector<8x8xf32>
    %358 = arith.subf %354, %357 : vector<8x8xf32>
    %359 = math.exp %358 : vector<8x8xf32>
    %cst_153 = arith.constant dense<0.000000e+00> : vector<8xf32>
    %360 = vector.multi_reduction <add>, %359, %cst_153 [1] : vector<8x8xf32> to vector<8xf32>
    %361 = vector.shape_cast %360 : vector<8xf32> to vector<8x1xf32>
    %362 = tpu.reciprocal %361 {approx = true} : vector<8x1xf32> -> vector<8x1xf32>
    %363 = vector.broadcast %362 : vector<8x1xf32> to vector<8x8xf32>
    %364 = arith.mulf %359, %363 : vector<8x8xf32>
    %cst_154 = arith.constant dense<0.000000e+00> : vector<8x8xf32>
    %365 = tpu.matmul %364, %350, %cst_154 {dimension_numbers = #tpu.dot_dimension_numbers<[1], [0], [0], [1], [0, 0, 1, 1], [], []>} : vector<8x8xf32>, vector<8x8xf32>, vector<8x8xf32> -> vector<8x8xf32>
    %366 = vector.extract_strided_slice %327 {offsets = [0, 16], sizes = [8, 8], strides = [1, 1]} : vector<8x32xf32> to vector<8x8xf32>
    %367 = vector.extract_strided_slice %328 {offsets = [0, 16], sizes = [8, 8], strides = [1, 1]} : vector<8x32xf32> to vector<8x8xf32>
    %368 = vector.extract_strided_slice %329 {offsets = [0, 16], sizes = [8, 8], strides = [1, 1]} : vector<8x32xf32> to vector<8x8xf32>
    %cst_155 = arith.constant dense<0.000000e+00> : vector<8x8xf32>
    %369 = tpu.matmul %366, %367, %cst_155 {dimension_numbers = #tpu.dot_dimension_numbers<[1], [1], [0], [0], [0, 0, 1, 0], [], []>} : vector<8x8xf32>, vector<8x8xf32>, vector<8x8xf32> -> vector<8x8xf32>
    %cst_156 = arith.constant 0.353553385 : f32
    %370 = vector.broadcast %cst_156 : f32 to vector<8x8xf32>
    %371 = arith.mulf %369, %370 : vector<8x8xf32>
    %372 = arith.addf %371, %22 : vector<8x8xf32>
    %cst_157 = arith.constant dense<0xFF800000> : vector<8xf32>
    %373 = vector.multi_reduction <maximumf>, %372, %cst_157 [1] : vector<8x8xf32> to vector<8xf32>
    %374 = vector.shape_cast %373 : vector<8xf32> to vector<8x1xf32>
    %375 = vector.broadcast %374 : vector<8x1xf32> to vector<8x8xf32>
    %376 = arith.subf %372, %375 : vector<8x8xf32>
    %377 = math.exp %376 : vector<8x8xf32>
    %cst_158 = arith.constant dense<0.000000e+00> : vector<8xf32>
    %378 = vector.multi_reduction <add>, %377, %cst_158 [1] : vector<8x8xf32> to vector<8xf32>
    %379 = vector.shape_cast %378 : vector<8xf32> to vector<8x1xf32>
    %380 = tpu.reciprocal %379 {approx = true} : vector<8x1xf32> -> vector<8x1xf32>
    %381 = vector.broadcast %380 : vector<8x1xf32> to vector<8x8xf32>
    %382 = arith.mulf %377, %381 : vector<8x8xf32>
    %cst_159 = arith.constant dense<0.000000e+00> : vector<8x8xf32>
    %383 = tpu.matmul %382, %368, %cst_159 {dimension_numbers = #tpu.dot_dimension_numbers<[1], [0], [0], [1], [0, 0, 1, 1], [], []>} : vector<8x8xf32>, vector<8x8xf32>, vector<8x8xf32> -> vector<8x8xf32>
    %384 = vector.extract_strided_slice %327 {offsets = [0, 24], sizes = [8, 8], strides = [1, 1]} : vector<8x32xf32> to vector<8x8xf32>
    %385 = vector.extract_strided_slice %328 {offsets = [0, 24], sizes = [8, 8], strides = [1, 1]} : vector<8x32xf32> to vector<8x8xf32>
    %386 = vector.extract_strided_slice %329 {offsets = [0, 24], sizes = [8, 8], strides = [1, 1]} : vector<8x32xf32> to vector<8x8xf32>
    %cst_160 = arith.constant dense<0.000000e+00> : vector<8x8xf32>
    %387 = tpu.matmul %384, %385, %cst_160 {dimension_numbers = #tpu.dot_dimension_numbers<[1], [1], [0], [0], [0, 0, 1, 0], [], []>} : vector<8x8xf32>, vector<8x8xf32>, vector<8x8xf32> -> vector<8x8xf32>
    %cst_161 = arith.constant 0.353553385 : f32
    %388 = vector.broadcast %cst_161 : f32 to vector<8x8xf32>
    %389 = arith.mulf %387, %388 : vector<8x8xf32>
    %390 = arith.addf %389, %22 : vector<8x8xf32>
    %cst_162 = arith.constant dense<0xFF800000> : vector<8xf32>
    %391 = vector.multi_reduction <maximumf>, %390, %cst_162 [1] : vector<8x8xf32> to vector<8xf32>
    %392 = vector.shape_cast %391 : vector<8xf32> to vector<8x1xf32>
    %393 = vector.broadcast %392 : vector<8x1xf32> to vector<8x8xf32>
    %394 = arith.subf %390, %393 : vector<8x8xf32>
    %395 = math.exp %394 : vector<8x8xf32>
    %cst_163 = arith.constant dense<0.000000e+00> : vector<8xf32>
    %396 = vector.multi_reduction <add>, %395, %cst_163 [1] : vector<8x8xf32> to vector<8xf32>
    %397 = vector.shape_cast %396 : vector<8xf32> to vector<8x1xf32>
    %398 = tpu.reciprocal %397 {approx = true} : vector<8x1xf32> -> vector<8x1xf32>
    %399 = vector.broadcast %398 : vector<8x1xf32> to vector<8x8xf32>
    %400 = arith.mulf %395, %399 : vector<8x8xf32>
    %cst_164 = arith.constant dense<0.000000e+00> : vector<8x8xf32>
    %401 = tpu.matmul %400, %386, %cst_164 {dimension_numbers = #tpu.dot_dimension_numbers<[1], [0], [0], [1], [0, 0, 1, 1], [], []>} : vector<8x8xf32>, vector<8x8xf32>, vector<8x8xf32> -> vector<8x8xf32>
    %402 = tpu.concatenate %347, %365, %383, %401 in 1 : vector<8x8xf32>, vector<8x8xf32>, vector<8x8xf32>, vector<8x8xf32> -> vector<8x32xf32>
    %cst_165 = arith.constant dense<0.000000e+00> : vector<8x32xf32>
    %403 = tpu.matmul %402, %321, %cst_165 {dimension_numbers = #tpu.dot_dimension_numbers<[1], [1], [0], [0], [0, 0, 1, 0], [], []>} : vector<8x32xf32>, vector<32x32xf32>, vector<8x32xf32> -> vector<8x32xf32>
    %404 = vector.broadcast %323 : vector<1x32xf32> to vector<8x32xf32>
    %405 = arith.addf %403, %404 : vector<8x32xf32>
    %c1_166 = arith.constant 1 : index
    %c0_167 = arith.constant 0 : index
    %c0_168 = arith.constant 0 : index
    %406 = vector.load %arg13[%c1_166, %c0_167, %c0_168] : memref<2x1x32xf32, #tpu.memory_space<vmem>>, vector<1x1x32xf32>
    %407 = vector.shape_cast %406 : vector<1x1x32xf32> to vector<1x32xf32>
    %c1_169 = arith.constant 1 : index
    %c0_170 = arith.constant 0 : index
    %c0_171 = arith.constant 0 : index
    %408 = vector.load %arg14[%c1_169, %c0_170, %c0_171] : memref<2x1x32xf32, #tpu.memory_space<vmem>>, vector<1x1x32xf32>
    %409 = vector.shape_cast %408 : vector<1x1x32xf32> to vector<1x32xf32>
    %410 = arith.addf %315, %405 : vector<8x32xf32>
    %cst_172 = arith.constant dense<0.000000e+00> : vector<8xf32>
    %411 = vector.multi_reduction <add>, %410, %cst_172 [1] : vector<8x32xf32> to vector<8xf32>
    %412 = vector.shape_cast %411 : vector<8xf32> to vector<8x1xf32>
    %cst_173 = arith.constant 3.200000e+01 : f32
    %413 = vector.broadcast %cst_173 : f32 to vector<8x1xf32>
    %414 = arith.divf %412, %413 : vector<8x1xf32>
    %415 = vector.broadcast %414 : vector<8x1xf32> to vector<8x32xf32>
    %416 = arith.subf %410, %415 : vector<8x32xf32>
    %417 = vector.broadcast %414 : vector<8x1xf32> to vector<8x32xf32>
    %418 = arith.subf %410, %417 : vector<8x32xf32>
    %419 = arith.mulf %416, %418 : vector<8x32xf32>
    %cst_174 = arith.constant dense<0.000000e+00> : vector<8xf32>
    %420 = vector.multi_reduction <add>, %419, %cst_174 [1] : vector<8x32xf32> to vector<8xf32>
    %421 = vector.shape_cast %420 : vector<8xf32> to vector<8x1xf32>
    %cst_175 = arith.constant 3.200000e+01 : f32
    %422 = vector.broadcast %cst_175 : f32 to vector<8x1xf32>
    %423 = arith.divf %421, %422 : vector<8x1xf32>
    %424 = vector.broadcast %414 : vector<8x1xf32> to vector<8x32xf32>
    %425 = arith.subf %410, %424 : vector<8x32xf32>
    %cst_176 = arith.constant 9.99999974E-6 : f32
    %426 = vector.broadcast %cst_176 : f32 to vector<8x1xf32>
    %427 = arith.addf %423, %426 : vector<8x1xf32>
    %428 = math.rsqrt %427 : vector<8x1xf32>
    %429 = vector.broadcast %428 : vector<8x1xf32> to vector<8x32xf32>
    %430 = arith.mulf %425, %429 : vector<8x32xf32>
    %431 = vector.broadcast %407 : vector<1x32xf32> to vector<8x32xf32>
    %432 = arith.mulf %430, %431 : vector<8x32xf32>
    %433 = vector.broadcast %409 : vector<1x32xf32> to vector<8x32xf32>
    %434 = arith.addf %432, %433 : vector<8x32xf32>
    %c1_177 = arith.constant 1 : index
    %c0_178 = arith.constant 0 : index
    %c0_179 = arith.constant 0 : index
    %435 = vector.load %arg9[%c1_177, %c0_178, %c0_179] : memref<2x96x32xf32, #tpu.memory_space<vmem>>, vector<1x96x32xf32>
    %436 = vector.shape_cast %435 : vector<1x96x32xf32> to vector<96x32xf32>
    %c1_180 = arith.constant 1 : index
    %c0_181 = arith.constant 0 : index
    %c0_182 = arith.constant 0 : index
    %437 = vector.load %arg10[%c1_180, %c0_181, %c0_182] : memref<2x1x96xf32, #tpu.memory_space<vmem>>, vector<1x1x96xf32>
    %438 = vector.shape_cast %437 : vector<1x1x96xf32> to vector<1x96xf32>
    %c1_183 = arith.constant 1 : index
    %c0_184 = arith.constant 0 : index
    %c0_185 = arith.constant 0 : index
    %439 = vector.load %arg11[%c1_183, %c0_184, %c0_185] : memref<2x32x32xf32, #tpu.memory_space<vmem>>, vector<1x32x32xf32>
    %440 = vector.shape_cast %439 : vector<1x32x32xf32> to vector<32x32xf32>
    %c1_186 = arith.constant 1 : index
    %c0_187 = arith.constant 0 : index
    %c0_188 = arith.constant 0 : index
    %441 = vector.load %arg12[%c1_186, %c0_187, %c0_188] : memref<2x1x32xf32, #tpu.memory_space<vmem>>, vector<1x1x32xf32>
    %442 = vector.shape_cast %441 : vector<1x1x32xf32> to vector<1x32xf32>
    %443 = vector.extract_strided_slice %436 {offsets = [0, 0], sizes = [32, 32], strides = [1, 1]} : vector<96x32xf32> to vector<32x32xf32>
    %cst_189 = arith.constant dense<0.000000e+00> : vector<8x32xf32>
    %444 = tpu.matmul %434, %443, %cst_189 {dimension_numbers = #tpu.dot_dimension_numbers<[1], [1], [0], [0], [0, 0, 1, 0], [], []>} : vector<8x32xf32>, vector<32x32xf32>, vector<8x32xf32> -> vector<8x32xf32>
    %445 = vector.extract_strided_slice %438 {offsets = [0, 0], sizes = [1, 32], strides = [1, 1]} : vector<1x96xf32> to vector<1x32xf32>
    %446 = vector.broadcast %445 : vector<1x32xf32> to vector<8x32xf32>
    %447 = arith.addf %444, %446 : vector<8x32xf32>
    %448 = vector.extract_strided_slice %436 {offsets = [32, 0], sizes = [64, 32], strides = [1, 1]} : vector<96x32xf32> to vector<64x32xf32>
    %cst_190 = arith.constant dense<0.000000e+00> : vector<8x64xf32>
    %449 = tpu.matmul %3, %448, %cst_190 {dimension_numbers = #tpu.dot_dimension_numbers<[1], [1], [0], [0], [0, 0, 1, 0], [], []>} : vector<8x32xf32>, vector<64x32xf32>, vector<8x64xf32> -> vector<8x64xf32>
    %450 = vector.extract_strided_slice %438 {offsets = [0, 32], sizes = [1, 64], strides = [1, 1]} : vector<1x96xf32> to vector<1x64xf32>
    %451 = vector.broadcast %450 : vector<1x64xf32> to vector<8x64xf32>
    %452 = arith.addf %449, %451 : vector<8x64xf32>
    %453 = vector.extract_strided_slice %452 {offsets = [0, 0], sizes = [8, 32], strides = [1, 1]} : vector<8x64xf32> to vector<8x32xf32>
    %454 = vector.extract_strided_slice %452 {offsets = [0, 32], sizes = [8, 32], strides = [1, 1]} : vector<8x64xf32> to vector<8x32xf32>
    %455 = vector.extract_strided_slice %447 {offsets = [0, 0], sizes = [8, 8], strides = [1, 1]} : vector<8x32xf32> to vector<8x8xf32>
    %456 = vector.extract_strided_slice %453 {offsets = [0, 0], sizes = [8, 8], strides = [1, 1]} : vector<8x32xf32> to vector<8x8xf32>
    %457 = vector.extract_strided_slice %454 {offsets = [0, 0], sizes = [8, 8], strides = [1, 1]} : vector<8x32xf32> to vector<8x8xf32>
    %cst_191 = arith.constant dense<0.000000e+00> : vector<8x8xf32>
    %458 = tpu.matmul %455, %456, %cst_191 {dimension_numbers = #tpu.dot_dimension_numbers<[1], [1], [0], [0], [0, 0, 1, 0], [], []>} : vector<8x8xf32>, vector<8x8xf32>, vector<8x8xf32> -> vector<8x8xf32>
    %cst_192 = arith.constant 0.353553385 : f32
    %459 = vector.broadcast %cst_192 : f32 to vector<8x8xf32>
    %460 = arith.mulf %458, %459 : vector<8x8xf32>
    %461 = vector.broadcast %12 : vector<1x8xf32> to vector<8x8xf32>
    %462 = arith.addf %460, %461 : vector<8x8xf32>
    %cst_193 = arith.constant dense<0xFF800000> : vector<8xf32>
    %463 = vector.multi_reduction <maximumf>, %462, %cst_193 [1] : vector<8x8xf32> to vector<8xf32>
    %464 = vector.shape_cast %463 : vector<8xf32> to vector<8x1xf32>
    %465 = vector.broadcast %464 : vector<8x1xf32> to vector<8x8xf32>
    %466 = arith.subf %462, %465 : vector<8x8xf32>
    %467 = math.exp %466 : vector<8x8xf32>
    %cst_194 = arith.constant dense<0.000000e+00> : vector<8xf32>
    %468 = vector.multi_reduction <add>, %467, %cst_194 [1] : vector<8x8xf32> to vector<8xf32>
    %469 = vector.shape_cast %468 : vector<8xf32> to vector<8x1xf32>
    %470 = tpu.reciprocal %469 {approx = true} : vector<8x1xf32> -> vector<8x1xf32>
    %471 = vector.broadcast %470 : vector<8x1xf32> to vector<8x8xf32>
    %472 = arith.mulf %467, %471 : vector<8x8xf32>
    %cst_195 = arith.constant dense<0.000000e+00> : vector<8x8xf32>
    %473 = tpu.matmul %472, %457, %cst_195 {dimension_numbers = #tpu.dot_dimension_numbers<[1], [0], [0], [1], [0, 0, 1, 1], [], []>} : vector<8x8xf32>, vector<8x8xf32>, vector<8x8xf32> -> vector<8x8xf32>
    %474 = vector.extract_strided_slice %447 {offsets = [0, 8], sizes = [8, 8], strides = [1, 1]} : vector<8x32xf32> to vector<8x8xf32>
    %475 = vector.extract_strided_slice %453 {offsets = [0, 8], sizes = [8, 8], strides = [1, 1]} : vector<8x32xf32> to vector<8x8xf32>
    %476 = vector.extract_strided_slice %454 {offsets = [0, 8], sizes = [8, 8], strides = [1, 1]} : vector<8x32xf32> to vector<8x8xf32>
    %cst_196 = arith.constant dense<0.000000e+00> : vector<8x8xf32>
    %477 = tpu.matmul %474, %475, %cst_196 {dimension_numbers = #tpu.dot_dimension_numbers<[1], [1], [0], [0], [0, 0, 1, 0], [], []>} : vector<8x8xf32>, vector<8x8xf32>, vector<8x8xf32> -> vector<8x8xf32>
    %cst_197 = arith.constant 0.353553385 : f32
    %478 = vector.broadcast %cst_197 : f32 to vector<8x8xf32>
    %479 = arith.mulf %477, %478 : vector<8x8xf32>
    %480 = vector.broadcast %12 : vector<1x8xf32> to vector<8x8xf32>
    %481 = arith.addf %479, %480 : vector<8x8xf32>
    %cst_198 = arith.constant dense<0xFF800000> : vector<8xf32>
    %482 = vector.multi_reduction <maximumf>, %481, %cst_198 [1] : vector<8x8xf32> to vector<8xf32>
    %483 = vector.shape_cast %482 : vector<8xf32> to vector<8x1xf32>
    %484 = vector.broadcast %483 : vector<8x1xf32> to vector<8x8xf32>
    %485 = arith.subf %481, %484 : vector<8x8xf32>
    %486 = math.exp %485 : vector<8x8xf32>
    %cst_199 = arith.constant dense<0.000000e+00> : vector<8xf32>
    %487 = vector.multi_reduction <add>, %486, %cst_199 [1] : vector<8x8xf32> to vector<8xf32>
    %488 = vector.shape_cast %487 : vector<8xf32> to vector<8x1xf32>
    %489 = tpu.reciprocal %488 {approx = true} : vector<8x1xf32> -> vector<8x1xf32>
    %490 = vector.broadcast %489 : vector<8x1xf32> to vector<8x8xf32>
    %491 = arith.mulf %486, %490 : vector<8x8xf32>
    %cst_200 = arith.constant dense<0.000000e+00> : vector<8x8xf32>
    %492 = tpu.matmul %491, %476, %cst_200 {dimension_numbers = #tpu.dot_dimension_numbers<[1], [0], [0], [1], [0, 0, 1, 1], [], []>} : vector<8x8xf32>, vector<8x8xf32>, vector<8x8xf32> -> vector<8x8xf32>
    %493 = vector.extract_strided_slice %447 {offsets = [0, 16], sizes = [8, 8], strides = [1, 1]} : vector<8x32xf32> to vector<8x8xf32>
    %494 = vector.extract_strided_slice %453 {offsets = [0, 16], sizes = [8, 8], strides = [1, 1]} : vector<8x32xf32> to vector<8x8xf32>
    %495 = vector.extract_strided_slice %454 {offsets = [0, 16], sizes = [8, 8], strides = [1, 1]} : vector<8x32xf32> to vector<8x8xf32>
    %cst_201 = arith.constant dense<0.000000e+00> : vector<8x8xf32>
    %496 = tpu.matmul %493, %494, %cst_201 {dimension_numbers = #tpu.dot_dimension_numbers<[1], [1], [0], [0], [0, 0, 1, 0], [], []>} : vector<8x8xf32>, vector<8x8xf32>, vector<8x8xf32> -> vector<8x8xf32>
    %cst_202 = arith.constant 0.353553385 : f32
    %497 = vector.broadcast %cst_202 : f32 to vector<8x8xf32>
    %498 = arith.mulf %496, %497 : vector<8x8xf32>
    %499 = vector.broadcast %12 : vector<1x8xf32> to vector<8x8xf32>
    %500 = arith.addf %498, %499 : vector<8x8xf32>
    %cst_203 = arith.constant dense<0xFF800000> : vector<8xf32>
    %501 = vector.multi_reduction <maximumf>, %500, %cst_203 [1] : vector<8x8xf32> to vector<8xf32>
    %502 = vector.shape_cast %501 : vector<8xf32> to vector<8x1xf32>
    %503 = vector.broadcast %502 : vector<8x1xf32> to vector<8x8xf32>
    %504 = arith.subf %500, %503 : vector<8x8xf32>
    %505 = math.exp %504 : vector<8x8xf32>
    %cst_204 = arith.constant dense<0.000000e+00> : vector<8xf32>
    %506 = vector.multi_reduction <add>, %505, %cst_204 [1] : vector<8x8xf32> to vector<8xf32>
    %507 = vector.shape_cast %506 : vector<8xf32> to vector<8x1xf32>
    %508 = tpu.reciprocal %507 {approx = true} : vector<8x1xf32> -> vector<8x1xf32>
    %509 = vector.broadcast %508 : vector<8x1xf32> to vector<8x8xf32>
    %510 = arith.mulf %505, %509 : vector<8x8xf32>
    %cst_205 = arith.constant dense<0.000000e+00> : vector<8x8xf32>
    %511 = tpu.matmul %510, %495, %cst_205 {dimension_numbers = #tpu.dot_dimension_numbers<[1], [0], [0], [1], [0, 0, 1, 1], [], []>} : vector<8x8xf32>, vector<8x8xf32>, vector<8x8xf32> -> vector<8x8xf32>
    %512 = vector.extract_strided_slice %447 {offsets = [0, 24], sizes = [8, 8], strides = [1, 1]} : vector<8x32xf32> to vector<8x8xf32>
    %513 = vector.extract_strided_slice %453 {offsets = [0, 24], sizes = [8, 8], strides = [1, 1]} : vector<8x32xf32> to vector<8x8xf32>
    %514 = vector.extract_strided_slice %454 {offsets = [0, 24], sizes = [8, 8], strides = [1, 1]} : vector<8x32xf32> to vector<8x8xf32>
    %cst_206 = arith.constant dense<0.000000e+00> : vector<8x8xf32>
    %515 = tpu.matmul %512, %513, %cst_206 {dimension_numbers = #tpu.dot_dimension_numbers<[1], [1], [0], [0], [0, 0, 1, 0], [], []>} : vector<8x8xf32>, vector<8x8xf32>, vector<8x8xf32> -> vector<8x8xf32>
    %cst_207 = arith.constant 0.353553385 : f32
    %516 = vector.broadcast %cst_207 : f32 to vector<8x8xf32>
    %517 = arith.mulf %515, %516 : vector<8x8xf32>
    %518 = vector.broadcast %12 : vector<1x8xf32> to vector<8x8xf32>
    %519 = arith.addf %517, %518 : vector<8x8xf32>
    %cst_208 = arith.constant dense<0xFF800000> : vector<8xf32>
    %520 = vector.multi_reduction <maximumf>, %519, %cst_208 [1] : vector<8x8xf32> to vector<8xf32>
    %521 = vector.shape_cast %520 : vector<8xf32> to vector<8x1xf32>
    %522 = vector.broadcast %521 : vector<8x1xf32> to vector<8x8xf32>
    %523 = arith.subf %519, %522 : vector<8x8xf32>
    %524 = math.exp %523 : vector<8x8xf32>
    %cst_209 = arith.constant dense<0.000000e+00> : vector<8xf32>
    %525 = vector.multi_reduction <add>, %524, %cst_209 [1] : vector<8x8xf32> to vector<8xf32>
    %526 = vector.shape_cast %525 : vector<8xf32> to vector<8x1xf32>
    %527 = tpu.reciprocal %526 {approx = true} : vector<8x1xf32> -> vector<8x1xf32>
    %528 = vector.broadcast %527 : vector<8x1xf32> to vector<8x8xf32>
    %529 = arith.mulf %524, %528 : vector<8x8xf32>
    %cst_210 = arith.constant dense<0.000000e+00> : vector<8x8xf32>
    %530 = tpu.matmul %529, %514, %cst_210 {dimension_numbers = #tpu.dot_dimension_numbers<[1], [0], [0], [1], [0, 0, 1, 1], [], []>} : vector<8x8xf32>, vector<8x8xf32>, vector<8x8xf32> -> vector<8x8xf32>
    %531 = tpu.concatenate %473, %492, %511, %530 in 1 : vector<8x8xf32>, vector<8x8xf32>, vector<8x8xf32>, vector<8x8xf32> -> vector<8x32xf32>
    %cst_211 = arith.constant dense<0.000000e+00> : vector<8x32xf32>
    %532 = tpu.matmul %531, %440, %cst_211 {dimension_numbers = #tpu.dot_dimension_numbers<[1], [1], [0], [0], [0, 0, 1, 0], [], []>} : vector<8x32xf32>, vector<32x32xf32>, vector<8x32xf32> -> vector<8x32xf32>
    %533 = vector.broadcast %442 : vector<1x32xf32> to vector<8x32xf32>
    %534 = arith.addf %532, %533 : vector<8x32xf32>
    %c1_212 = arith.constant 1 : index
    %c0_213 = arith.constant 0 : index
    %c0_214 = arith.constant 0 : index
    %535 = vector.load %arg15[%c1_212, %c0_213, %c0_214] : memref<2x1x32xf32, #tpu.memory_space<vmem>>, vector<1x1x32xf32>
    %536 = vector.shape_cast %535 : vector<1x1x32xf32> to vector<1x32xf32>
    %c1_215 = arith.constant 1 : index
    %c0_216 = arith.constant 0 : index
    %c0_217 = arith.constant 0 : index
    %537 = vector.load %arg16[%c1_215, %c0_216, %c0_217] : memref<2x1x32xf32, #tpu.memory_space<vmem>>, vector<1x1x32xf32>
    %538 = vector.shape_cast %537 : vector<1x1x32xf32> to vector<1x32xf32>
    %539 = arith.addf %434, %534 : vector<8x32xf32>
    %cst_218 = arith.constant dense<0.000000e+00> : vector<8xf32>
    %540 = vector.multi_reduction <add>, %539, %cst_218 [1] : vector<8x32xf32> to vector<8xf32>
    %541 = vector.shape_cast %540 : vector<8xf32> to vector<8x1xf32>
    %cst_219 = arith.constant 3.200000e+01 : f32
    %542 = vector.broadcast %cst_219 : f32 to vector<8x1xf32>
    %543 = arith.divf %541, %542 : vector<8x1xf32>
    %544 = vector.broadcast %543 : vector<8x1xf32> to vector<8x32xf32>
    %545 = arith.subf %539, %544 : vector<8x32xf32>
    %546 = vector.broadcast %543 : vector<8x1xf32> to vector<8x32xf32>
    %547 = arith.subf %539, %546 : vector<8x32xf32>
    %548 = arith.mulf %545, %547 : vector<8x32xf32>
    %cst_220 = arith.constant dense<0.000000e+00> : vector<8xf32>
    %549 = vector.multi_reduction <add>, %548, %cst_220 [1] : vector<8x32xf32> to vector<8xf32>
    %550 = vector.shape_cast %549 : vector<8xf32> to vector<8x1xf32>
    %cst_221 = arith.constant 3.200000e+01 : f32
    %551 = vector.broadcast %cst_221 : f32 to vector<8x1xf32>
    %552 = arith.divf %550, %551 : vector<8x1xf32>
    %553 = vector.broadcast %543 : vector<8x1xf32> to vector<8x32xf32>
    %554 = arith.subf %539, %553 : vector<8x32xf32>
    %cst_222 = arith.constant 9.99999974E-6 : f32
    %555 = vector.broadcast %cst_222 : f32 to vector<8x1xf32>
    %556 = arith.addf %552, %555 : vector<8x1xf32>
    %557 = math.rsqrt %556 : vector<8x1xf32>
    %558 = vector.broadcast %557 : vector<8x1xf32> to vector<8x32xf32>
    %559 = arith.mulf %554, %558 : vector<8x32xf32>
    %560 = vector.broadcast %536 : vector<1x32xf32> to vector<8x32xf32>
    %561 = arith.mulf %559, %560 : vector<8x32xf32>
    %562 = vector.broadcast %538 : vector<1x32xf32> to vector<8x32xf32>
    %563 = arith.addf %561, %562 : vector<8x32xf32>
    %c1_223 = arith.constant 1 : index
    %c0_224 = arith.constant 0 : index
    %c0_225 = arith.constant 0 : index
    %564 = vector.load %arg19[%c1_223, %c0_224, %c0_225] : memref<2x64x32xf32, #tpu.memory_space<vmem>>, vector<1x64x32xf32>
    %565 = vector.shape_cast %564 : vector<1x64x32xf32> to vector<64x32xf32>
    %c1_226 = arith.constant 1 : index
    %c0_227 = arith.constant 0 : index
    %c0_228 = arith.constant 0 : index
    %566 = vector.load %arg20[%c1_226, %c0_227, %c0_228] : memref<2x1x64xf32, #tpu.memory_space<vmem>>, vector<1x1x64xf32>
    %567 = vector.shape_cast %566 : vector<1x1x64xf32> to vector<1x64xf32>
    %c1_229 = arith.constant 1 : index
    %c0_230 = arith.constant 0 : index
    %c0_231 = arith.constant 0 : index
    %568 = vector.load %arg21[%c1_229, %c0_230, %c0_231] : memref<2x32x64xf32, #tpu.memory_space<vmem>>, vector<1x32x64xf32>
    %569 = vector.shape_cast %568 : vector<1x32x64xf32> to vector<32x64xf32>
    %c1_232 = arith.constant 1 : index
    %c0_233 = arith.constant 0 : index
    %c0_234 = arith.constant 0 : index
    %570 = vector.load %arg22[%c1_232, %c0_233, %c0_234] : memref<2x1x32xf32, #tpu.memory_space<vmem>>, vector<1x1x32xf32>
    %571 = vector.shape_cast %570 : vector<1x1x32xf32> to vector<1x32xf32>
    %cst_235 = arith.constant dense<0.000000e+00> : vector<8x64xf32>
    %572 = tpu.matmul %563, %565, %cst_235 {dimension_numbers = #tpu.dot_dimension_numbers<[1], [1], [0], [0], [0, 0, 1, 0], [], []>} : vector<8x32xf32>, vector<64x32xf32>, vector<8x64xf32> -> vector<8x64xf32>
    %573 = vector.broadcast %567 : vector<1x64xf32> to vector<8x64xf32>
    %574 = arith.addf %572, %573 : vector<8x64xf32>
    %cst_236 = arith.constant 0.000000e+00 : f32
    %575 = vector.broadcast %cst_236 : f32 to vector<8x64xf32>
    %576 = arith.maximumf %574, %575 : vector<8x64xf32>
    %cst_237 = arith.constant dense<0.000000e+00> : vector<8x32xf32>
    %577 = tpu.matmul %576, %569, %cst_237 {dimension_numbers = #tpu.dot_dimension_numbers<[1], [1], [0], [0], [0, 0, 1, 0], [], []>} : vector<8x64xf32>, vector<32x64xf32>, vector<8x32xf32> -> vector<8x32xf32>
    %578 = vector.broadcast %571 : vector<1x32xf32> to vector<8x32xf32>
    %579 = arith.addf %577, %578 : vector<8x32xf32>
    %c1_238 = arith.constant 1 : index
    %c0_239 = arith.constant 0 : index
    %c0_240 = arith.constant 0 : index
    %580 = vector.load %arg17[%c1_238, %c0_239, %c0_240] : memref<2x1x32xf32, #tpu.memory_space<vmem>>, vector<1x1x32xf32>
    %581 = vector.shape_cast %580 : vector<1x1x32xf32> to vector<1x32xf32>
    %c1_241 = arith.constant 1 : index
    %c0_242 = arith.constant 0 : index
    %c0_243 = arith.constant 0 : index
    %582 = vector.load %arg18[%c1_241, %c0_242, %c0_243] : memref<2x1x32xf32, #tpu.memory_space<vmem>>, vector<1x1x32xf32>
    %583 = vector.shape_cast %582 : vector<1x1x32xf32> to vector<1x32xf32>
    %584 = arith.addf %563, %579 : vector<8x32xf32>
    %cst_244 = arith.constant dense<0.000000e+00> : vector<8xf32>
    %585 = vector.multi_reduction <add>, %584, %cst_244 [1] : vector<8x32xf32> to vector<8xf32>
    %586 = vector.shape_cast %585 : vector<8xf32> to vector<8x1xf32>
    %cst_245 = arith.constant 3.200000e+01 : f32
    %587 = vector.broadcast %cst_245 : f32 to vector<8x1xf32>
    %588 = arith.divf %586, %587 : vector<8x1xf32>
    %589 = vector.broadcast %588 : vector<8x1xf32> to vector<8x32xf32>
    %590 = arith.subf %584, %589 : vector<8x32xf32>
    %591 = vector.broadcast %588 : vector<8x1xf32> to vector<8x32xf32>
    %592 = arith.subf %584, %591 : vector<8x32xf32>
    %593 = arith.mulf %590, %592 : vector<8x32xf32>
    %cst_246 = arith.constant dense<0.000000e+00> : vector<8xf32>
    %594 = vector.multi_reduction <add>, %593, %cst_246 [1] : vector<8x32xf32> to vector<8xf32>
    %595 = vector.shape_cast %594 : vector<8xf32> to vector<8x1xf32>
    %cst_247 = arith.constant 3.200000e+01 : f32
    %596 = vector.broadcast %cst_247 : f32 to vector<8x1xf32>
    %597 = arith.divf %595, %596 : vector<8x1xf32>
    %598 = vector.broadcast %588 : vector<8x1xf32> to vector<8x32xf32>
    %599 = arith.subf %584, %598 : vector<8x32xf32>
    %cst_248 = arith.constant 9.99999974E-6 : f32
    %600 = vector.broadcast %cst_248 : f32 to vector<8x1xf32>
    %601 = arith.addf %597, %600 : vector<8x1xf32>
    %602 = math.rsqrt %601 : vector<8x1xf32>
    %603 = vector.broadcast %602 : vector<8x1xf32> to vector<8x32xf32>
    %604 = arith.mulf %599, %603 : vector<8x32xf32>
    %605 = vector.broadcast %581 : vector<1x32xf32> to vector<8x32xf32>
    %606 = arith.mulf %604, %605 : vector<8x32xf32>
    %607 = vector.broadcast %583 : vector<1x32xf32> to vector<8x32xf32>
    %608 = arith.addf %606, %607 : vector<8x32xf32>
    %c0_249 = arith.constant 0 : index
    %c0_250 = arith.constant 0 : index
    %609 = vector.load %arg23[%c0_249, %c0_250] : memref<16x32xf32, #tpu.memory_space<vmem>>, vector<16x32xf32>
    %cst_251 = arith.constant dense<0.000000e+00> : vector<8x16xf32>
    %610 = tpu.matmul %608, %609, %cst_251 {dimension_numbers = #tpu.dot_dimension_numbers<[1], [1], [0], [0], [0, 0, 1, 0], [], []>} : vector<8x32xf32>, vector<16x32xf32>, vector<8x16xf32> -> vector<8x16xf32>
    %c0_252 = arith.constant 0 : index
    %c0_253 = arith.constant 0 : index
    %611 = vector.load %arg24[%c0_252, %c0_253] : memref<1x16xf32, #tpu.memory_space<vmem>>, vector<1x16xf32>
    %612 = vector.broadcast %611 : vector<1x16xf32> to vector<8x16xf32>
    %613 = arith.addf %610, %612 : vector<8x16xf32>
    %c0_254 = arith.constant 0 : index
    %c0_255 = arith.constant 0 : index
    %c0_256 = arith.constant 0 : index
    %614 = vector.load %arg25[%c0_254, %c0_255, %c0_256] : memref<1x8x16xf32, #tpu.memory_space<vmem>>, vector<1x8x16xf32>
    %615 = vector.shape_cast %614 : vector<1x8x16xf32> to vector<8x16xf32>
    %616 = vector.shape_cast %613 : vector<8x16xf32> to vector<1x8x16xf32>
    tpu.vector_store %arg25[%c0_254, %c0_255, %c0_256], %616 {strides = array<i32>} : memref<1x8x16xf32, #tpu.memory_space<vmem>>, vector<1x8x16xf32>,
    %c0_257 = arith.constant 0 : index
    %c0_258 = arith.constant 0 : index
    %c0_259 = arith.constant 0 : index
    %c0_260 = arith.constant 0 : index
    %617 = vector.load %arg26[%c0_257, %c0_258, %c0_259, %c0_260] : memref<1x4x8x8xf32, #tpu.memory_space<vmem>>, vector<1x1x8x8xf32>
    %618 = vector.shape_cast %617 : vector<1x1x8x8xf32> to vector<8x8xf32>
    %619 = vector.shape_cast %472 : vector<8x8xf32> to vector<1x1x8x8xf32>
    tpu.vector_store %arg26[%c0_257, %c0_258, %c0_259, %c0_260], %619 {strides = array<i32>} : memref<1x4x8x8xf32, #tpu.memory_space<vmem>>, vector<1x1x8x8xf32>,
    %c0_261 = arith.constant 0 : index
    %c1_262 = arith.constant 1 : index
    %c0_263 = arith.constant 0 : index
    %c0_264 = arith.constant 0 : index
    %620 = vector.load %arg26[%c0_261, %c1_262, %c0_263, %c0_264] : memref<1x4x8x8xf32, #tpu.memory_space<vmem>>, vector<1x1x8x8xf32>
    %621 = vector.shape_cast %620 : vector<1x1x8x8xf32> to vector<8x8xf32>
    %622 = vector.shape_cast %491 : vector<8x8xf32> to vector<1x1x8x8xf32>
    tpu.vector_store %arg26[%c0_261, %c1_262, %c0_263, %c0_264], %622 {strides = array<i32>} : memref<1x4x8x8xf32, #tpu.memory_space<vmem>>, vector<1x1x8x8xf32>,
    %c0_265 = arith.constant 0 : index
    %c2 = arith.constant 2 : index
    %c0_266 = arith.constant 0 : index
    %c0_267 = arith.constant 0 : index
    %623 = vector.load %arg26[%c0_265, %c2, %c0_266, %c0_267] : memref<1x4x8x8xf32, #tpu.memory_space<vmem>>, vector<1x1x8x8xf32>
    %624 = vector.shape_cast %623 : vector<1x1x8x8xf32> to vector<8x8xf32>
    %625 = vector.shape_cast %510 : vector<8x8xf32> to vector<1x1x8x8xf32>
    tpu.vector_store %arg26[%c0_265, %c2, %c0_266, %c0_267], %625 {strides = array<i32>} : memref<1x4x8x8xf32, #tpu.memory_space<vmem>>, vector<1x1x8x8xf32>,
    %c0_268 = arith.constant 0 : index
    %c3 = arith.constant 3 : index
    %c0_269 = arith.constant 0 : index
    %c0_270 = arith.constant 0 : index
    %626 = vector.load %arg26[%c0_268, %c3, %c0_269, %c0_270] : memref<1x4x8x8xf32, #tpu.memory_space<vmem>>, vector<1x1x8x8xf32>
    %627 = vector.shape_cast %626 : vector<1x1x8x8xf32> to vector<8x8xf32>
    %628 = vector.shape_cast %529 : vector<8x8xf32> to vector<1x1x8x8xf32>
    tpu.vector_store %arg26[%c0_268, %c3, %c0_269, %c0_270], %628 {strides = array<i32>} : memref<1x4x8x8xf32, #tpu.memory_space<vmem>>, vector<1x1x8x8xf32>,
    return
  }
  func.func @transform_0(%arg0: i32) -> (i32, i32, i32) {
    %c0_i32 = arith.constant 0 : i32
    %c0_i32_0 = arith.constant 0 : i32
    %c0_i32_1 = arith.constant 0 : i32
    return %arg0, %c0_i32, %c0_i32_0 : i32, i32, i32
  }
  func.func @transform_1(%arg0: i32) -> (i32, i32, i32) {
    %c0_i32 = arith.constant 0 : i32
    %c0_i32_0 = arith.constant 0 : i32
    %c0_i32_1 = arith.constant 0 : i32
    return %arg0, %c0_i32, %c0_i32_0 : i32, i32, i32
  }
  func.func @transform_2(%arg0: i32) -> (i32, i32, i32) {
    %c0_i32 = arith.constant 0 : i32
    %c0_i32_0 = arith.constant 0 : i32
    %c0_i32_1 = arith.constant 0 : i32
    return %arg0, %c0_i32, %c0_i32_0 : i32, i32, i32
  }
  func.func @transform_3(%arg0: i32) -> (i32, i32, i32) {
    %c0_i32 = arith.constant 0 : i32
    %c0_i32_0 = arith.constant 0 : i32
    %c0_i32_1 = arith.constant 0 : i32
    return %arg0, %c0_i32, %c0_i32_0 : i32, i32, i32
  }
  func.func @transform_4(%arg0: i32) -> (i32, i32, i32) {
    %c0_i32 = arith.constant 0 : i32
    %c0_i32_0 = arith.constant 0 : i32
    %c0_i32_1 = arith.constant 0 : i32
    %c0_i32_2 = arith.constant 0 : i32
    return %c0_i32, %c0_i32_0, %c0_i32_1 : i32, i32, i32
  }
  func.func @transform_5(%arg0: i32) -> (i32, i32, i32) {
    %c0_i32 = arith.constant 0 : i32
    %c0_i32_0 = arith.constant 0 : i32
    %c0_i32_1 = arith.constant 0 : i32
    %c0_i32_2 = arith.constant 0 : i32
    return %c0_i32, %c0_i32_0, %c0_i32_1 : i32, i32, i32
  }
  func.func @transform_6(%arg0: i32) -> (i32, i32, i32) {
    %c0_i32 = arith.constant 0 : i32
    %c0_i32_0 = arith.constant 0 : i32
    %c0_i32_1 = arith.constant 0 : i32
    %c0_i32_2 = arith.constant 0 : i32
    return %c0_i32, %c0_i32_0, %c0_i32_1 : i32, i32, i32
  }
  func.func @transform_7(%arg0: i32) -> (i32, i32, i32) {
    %c0_i32 = arith.constant 0 : i32
    %c0_i32_0 = arith.constant 0 : i32
    %c0_i32_1 = arith.constant 0 : i32
    %c0_i32_2 = arith.constant 0 : i32
    return %c0_i32, %c0_i32_0, %c0_i32_1 : i32, i32, i32
  }
  func.func @transform_8(%arg0: i32) -> (i32, i32, i32) {
    %c0_i32 = arith.constant 0 : i32
    %c0_i32_0 = arith.constant 0 : i32
    %c0_i32_1 = arith.constant 0 : i32
    %c0_i32_2 = arith.constant 0 : i32
    return %c0_i32, %c0_i32_0, %c0_i32_1 : i32, i32, i32
  }
  func.func @transform_9(%arg0: i32) -> (i32, i32, i32) {
    %c0_i32 = arith.constant 0 : i32
    %c0_i32_0 = arith.constant 0 : i32
    %c0_i32_1 = arith.constant 0 : i32
    %c0_i32_2 = arith.constant 0 : i32
    return %c0_i32, %c0_i32_0, %c0_i32_1 : i32, i32, i32
  }
  func.func @transform_10(%arg0: i32) -> (i32, i32, i32) {
    %c0_i32 = arith.constant 0 : i32
    %c0_i32_0 = arith.constant 0 : i32
    %c0_i32_1 = arith.constant 0 : i32
    %c0_i32_2 = arith.constant 0 : i32
    return %c0_i32, %c0_i32_0, %c0_i32_1 : i32, i32, i32
  }
  func.func @transform_11(%arg0: i32) -> (i32, i32, i32) {
    %c0_i32 = arith.constant 0 : i32
    %c0_i32_0 = arith.constant 0 : i32
    %c0_i32_1 = arith.constant 0 : i32
    %c0_i32_2 = arith.constant 0 : i32
    return %c0_i32, %c0_i32_0, %c0_i32_1 : i32, i32, i32
  }
  func.func @transform_12(%arg0: i32) -> (i32, i32, i32) {
    %c0_i32 = arith.constant 0 : i32
    %c0_i32_0 = arith.constant 0 : i32
    %c0_i32_1 = arith.constant 0 : i32
    %c0_i32_2 = arith.constant 0 : i32
    return %c0_i32, %c0_i32_0, %c0_i32_1 : i32, i32, i32
  }
  func.func @transform_13(%arg0: i32) -> (i32, i32, i32) {
    %c0_i32 = arith.constant 0 : i32
    %c0_i32_0 = arith.constant 0 : i32
    %c0_i32_1 = arith.constant 0 : i32
    %c0_i32_2 = arith.constant 0 : i32
    return %c0_i32, %c0_i32_0, %c0_i32_1 : i32, i32, i32
  }
  func.func @transform_14(%arg0: i32) -> (i32, i32, i32) {
    %c0_i32 = arith.constant 0 : i32
    %c0_i32_0 = arith.constant 0 : i32
    %c0_i32_1 = arith.constant 0 : i32
    %c0_i32_2 = arith.constant 0 : i32
    return %c0_i32, %c0_i32_0, %c0_i32_1 : i32, i32, i32
  }
  func.func @transform_15(%arg0: i32) -> (i32, i32, i32) {
    %c0_i32 = arith.constant 0 : i32
    %c0_i32_0 = arith.constant 0 : i32
    %c0_i32_1 = arith.constant 0 : i32
    %c0_i32_2 = arith.constant 0 : i32
    return %c0_i32, %c0_i32_0, %c0_i32_1 : i32, i32, i32
  }
  func.func @transform_16(%arg0: i32) -> (i32, i32, i32) {
    %c0_i32 = arith.constant 0 : i32
    %c0_i32_0 = arith.constant 0 : i32
    %c0_i32_1 = arith.constant 0 : i32
    %c0_i32_2 = arith.constant 0 : i32
    return %c0_i32, %c0_i32_0, %c0_i32_1 : i32, i32, i32
  }
  func.func @transform_17(%arg0: i32) -> (i32, i32, i32) {
    %c0_i32 = arith.constant 0 : i32
    %c0_i32_0 = arith.constant 0 : i32
    %c0_i32_1 = arith.constant 0 : i32
    %c0_i32_2 = arith.constant 0 : i32
    return %c0_i32, %c0_i32_0, %c0_i32_1 : i32, i32, i32
  }
  func.func @transform_18(%arg0: i32) -> (i32, i32, i32) {
    %c0_i32 = arith.constant 0 : i32
    %c0_i32_0 = arith.constant 0 : i32
    %c0_i32_1 = arith.constant 0 : i32
    %c0_i32_2 = arith.constant 0 : i32
    return %c0_i32, %c0_i32_0, %c0_i32_1 : i32, i32, i32
  }
  func.func @transform_19(%arg0: i32) -> (i32, i32, i32) {
    %c0_i32 = arith.constant 0 : i32
    %c0_i32_0 = arith.constant 0 : i32
    %c0_i32_1 = arith.constant 0 : i32
    %c0_i32_2 = arith.constant 0 : i32
    return %c0_i32, %c0_i32_0, %c0_i32_1 : i32, i32, i32
  }
  func.func @transform_20(%arg0: i32) -> (i32, i32, i32) {
    %c0_i32 = arith.constant 0 : i32
    %c0_i32_0 = arith.constant 0 : i32
    %c0_i32_1 = arith.constant 0 : i32
    %c0_i32_2 = arith.constant 0 : i32
    return %c0_i32, %c0_i32_0, %c0_i32_1 : i32, i32, i32
  }
  func.func @transform_21(%arg0: i32) -> (i32, i32, i32) {
    %c0_i32 = arith.constant 0 : i32
    %c0_i32_0 = arith.constant 0 : i32
    %c0_i32_1 = arith.constant 0 : i32
    %c0_i32_2 = arith.constant 0 : i32
    return %c0_i32, %c0_i32_0, %c0_i32_1 : i32, i32, i32
  }
  func.func @transform_22(%arg0: i32) -> (i32, i32) {
    %c0_i32 = arith.constant 0 : i32
    %c0_i32_0 = arith.constant 0 : i32
    %c0_i32_1 = arith.constant 0 : i32
    return %c0_i32, %c0_i32_0 : i32, i32
  }
  func.func @transform_23(%arg0: i32) -> (i32, i32) {
    %c0_i32 = arith.constant 0 : i32
    %c0_i32_0 = arith.constant 0 : i32
    %c0_i32_1 = arith.constant 0 : i32
    return %c0_i32, %c0_i32_0 : i32, i32
  }
  func.func @transform_24(%arg0: i32) -> (i32, i32, i32) {
    %c0_i32 = arith.constant 0 : i32
    %c0_i32_0 = arith.constant 0 : i32
    %c0_i32_1 = arith.constant 0 : i32
    return %arg0, %c0_i32, %c0_i32_0 : i32, i32, i32
  }
  func.func @transform_25(%arg0: i32) -> (i32, i32, i32, i32) {
    %c0_i32 = arith.constant 0 : i32
    %c0_i32_0 = arith.constant 0 : i32
    %c0_i32_1 = arith.constant 0 : i32
    %c0_i32_2 = arith.constant 0 : i32
    return %arg0, %c0_i32, %c0_i32_0, %c0_i32_1 : i32, i32, i32, i32
  }
}

</mosaic_0001>

<bundles_post_ra>
// kernel: transformer_forward.2
= control target key start
LH: loop header
LB: loop body
LE: loop exit
PB: predicated region body
PF: predicated region fallthrough
CT: control target
= control target key end

     0   :  { %s3658_s29 = smov 0   ;;  %s4209_s0 = inlined_call_operand.vmem [shape: f32[2,8,32], index: 0, kind: input, shape index: {}]   ;;  %s4210_s1 = inlined_call_operand.vmem [shape: f32[2,1,8], index: 1, kind: input, shape index: {}]   ;;  %s4211_s2 = inlined_call_operand.vmem [shape: f32[2,96,32], index: 2, kind: input, shape index: {}]   ;;  %s4212_s3 = inlined_call_operand.vmem [shape: f32[2,1,96], index: 3, kind: input, shape index: {}]   ;;  %s4213_s4 = inlined_call_operand.vmem [shape: f32[2,32,32], index: 4, kind: input, shape index: {}]   ;;  %s4214_s5 = inlined_call_operand.vmem [shape: f32[2,1,32], index: 5, kind: input, shape index: {}]   ;;  %s4215_s6 = inlined_call_operand.vmem [shape: f32[2,1,32], index: 6, kind: input, shape index: {}]   ;;  %s4216_s7 = inlined_call_operand.vmem [shape: f32[2,1,32], index: 7, kind: input, shape index: {}]   ;;  %s4217_s8 = inlined_call_operand.vmem [shape: f32[2,1,32], index: 8, kind: input, shape index: {}]   ;;  %s4218_s9 = inlined_call_operand.vmem [shape: f32[2,1,32], index: 9, kind: input, shape index: {}]   ;;  %s4219_s10 = inlined_call_operand.vmem [shape: f32[2,64,32], index: 10, kind: input, shape index: {}]   ;;  %s4220_s11 = inlined_call_operand.vmem [shape: f32[2,1,64], index: 11, kind: input, shape index: {}]   ;;  %s4221_s12 = inlined_call_operand.vmem [shape: f32[2,32,64], index: 12, kind: input, shape index: {}]   ;;  %s4222_s13 = inlined_call_operand.vmem [shape: f32[2,1,32], index: 13, kind: input, shape index: {}]   ;;  %s4223_s14 = inlined_call_operand.vmem [shape: f32[2,8,32], index: 14, kind: output, shape index: {}]  }
   0x1 LB: > { %s2918_s30 = sadd.s32 4294967295, %s3563_s29   ;;  %p2922_p0 = scmp.ge.s32.totalorder %s3563_s29, 1  ;;  %s3563_s29 = sphi %s3658_s29, %s24_s29  }
   0x2   : > { %p419_p1 = scmp.lt.s32.totalorder %s3563_s29, 3 }
   0x4   : > { %p420_p2 = pnand %p2922_p0, %p419_p1 }
   0x5   : > { %v481_v0 = vld [vmem:[%s4211_s2] sm:$0xff] (!%p420_p2)  ;;  %v482_v1 = vld [vmem:[%s4211_s2 + $0x8] sm:$0xff] (!%p420_p2)  ;;  %vm505_vm0 = vcmask (!%p420_p2), 261120   ;;  %v3565_v2 = vmov (!%p420_p2), 0.0|0.0   ;;  %vm3566_vm2 = vmmov (!%p420_p2), 0   ;;  %v3567_v5 = vmov (!%p420_p2), 0.0  }
   0x6   : > { %423 = sbr.rel (%p420_p2) target bundleno = 8188 (0x1ffc), region = 76  ;;  %3379 = vmatprep.subr.bf16.mxu0 (!%p420_p2), %v3565_v2  ;;  %v3380_v3 = vpack.c.bf16 (!%p420_p2), %v482_v1, %v481_v0  ;;  %vm3675_vm1 = vmpackc.low (!%p420_p2), %vm505_vm0, %vm505_vm0  ;;  %3187 = vmatprep.mubr.msk.f32.mxu0 (!%p420_p2), %vm3566_vm2, %v3567_v5  ;;  %v483_v6 = vld [vmem:[%s4211_s2 + $0x10] sm:$0xff] (!%p420_p2)  ;;  %v484_v7 = vld [vmem:[%s4211_s2 + $0x18] sm:$0xff] (!%p420_p2)  ;;  %p466_p3 = scmp.lt.s32.totalorder (!%p420_p2), %s2918_s30, 1  ;;  %vm618_vm3 = vcmask (!%p420_p2), 64512   ;;  %v695_v28 = vlaneseq (!%p420_p2)  ;;  %vm1302_vm5 = vcmask (!%p420_p2), 130048  }
   0x7   : > { %3190 = vmatprep.subr.mxu1 (!%p420_p2), %v3567_v5  ;;  %3192 = vmatprep.mubr.msk.f32.mxu1 (!%p420_p2), %vm3566_vm2, %v3567_v5  ;;  %v3384_v8 = vpack.c.bf16 (!%p420_p2), %v484_v7, %v483_v6  ;;  %v485_v9 = vld [vmem:[%s4211_s2 + $0x20] sm:$0xff] (!%p420_p2)  ;;  %v486_v10 = vld [vmem:[%s4211_s2 + $0x28] sm:$0xff] (!%p420_p2)  ;;  %v487_v12 = vld [vmem:[%s4211_s2 + $0x30] sm:$0xff] (!%p420_p2)  ;;  %s3568_s17 = smov (!%p420_p2), 64   ;;  %s3569_s18 = smov (!%p420_p2), 96   ;;  %vm1304_vm6 = vcmask (!%p420_p2), 195584  }
   0x8   : > { %3382 = vmatpush3.bf16.xpose.msk.msra.mxu0 (!%p420_p2), %vm3675_vm1, %v3380_v3  ;;  %v3388_v11 = vpack.c.bf16 (!%p420_p2), %v486_v10, %v485_v9  ;;  %v488_v13 = vld [vmem:[%s4211_s2 + $0x38] sm:$0xff] (!%p420_p2)  ;;  %v489_v15 = vld [vmem:[%s4211_s2 + $0x40] sm:$0xff] (!%p420_p2)  ;;  %v490_v16 = vld [vmem:[%s4211_s2 + $0x48] sm:$0xff] (!%p420_p2)  ;;  %s3570_s19 = smov (!%p420_p2), 88   ;;  %v696_v30 = vshrl.u32 (!%p420_p2), %v695_v28, 7  ;;  %s3572_s23 = smov (!%p420_p2), 56  }
   0x9   : > { %3383 = vmatprep.subr.bf16.mxu0 (!%p420_p2), %v3565_v2  ;;  %v3392_v14 = vpack.c.bf16 (!%p420_p2), %v488_v13, %v487_v12  ;;  %v3396_v17 = vpack.c.bf16 (!%p420_p2), %v490_v16, %v489_v15  ;;  %v491_v18 = vld [vmem:[%s4211_s2 + $0x50] sm:$0xff] (!%p420_p2)  ;;  %v492_v19 = vld [vmem:[%s4211_s2 + $0x58] sm:$0xff] (!%p420_p2)  ;;  %v2925_v22 = vld [vmem:[%s4212_s3] ss:$0 sm:$0xff] (!%p420_p2)  ;;  %v3571_v32 = vmov (!%p420_p2), -1e+09  }
   0xa   : > { %v3400_v20 = vpack.c.bf16 (!%p420_p2), %v492_v19, %v491_v18  ;;  %v697_v31 = vsub.s32 (!%p420_p2), 0, %v696_v30  ;;  %s4231_s24 = smov (!%p420_p2), 80   ;;  %s3574_s26 = smov (!%p420_p2), 120   ;;  %vm1552_vm7 = vcmask (!%p420_p2), 523264   ;;  %v3043_v4 = vld [vmem:[%s4221_s12 + $0x38] sm:$0xff] (!%p420_p2) }
   0xb   : > { %s3575_s27 = smov (!%p420_p2), 112   ;;  %s4227_s15 = smov (!%p420_p2), 72   ;;  %vm3912_vm8 = vmpackc.low (!%p420_p2), %vm1552_vm7, %vm1552_vm7 }
   0xc   : > { %s4229_s16 = smov (!%p420_p2), 104   ;;  %s4225_s20 = smov (!%p420_p2), 40  }
   0xd   : > { %s4247_s30 = smov (!%p466_p3, %s2918_s30), 1  ;;  %s4226_s21 = smov 8  }
   0xe   : > { %s4224_s25 = sshll.u32 %s4247_s30, 3  ;;  %s472_s22 = scalar_lea.vmem %s4210_s1, %s4247_s30 }
   0xf   : > { %s469_s28 = scalar_lea.vmem %s4209_s0, %s4224_s25  ;;  %v478_v29 = vld [vmem:[%s472_s22] sm:$0x1]  ;;  %s4228_s22 = smov 16  }
  0x10   : > { %3386 = vmatpush3.bf16.xpose.msk.msra.mxu0 %vm3675_vm1, %v3384_v8  ;;  %v3744_v21 = vld [vmem:[%s469_s28] sm:$0xff]  ;;  %vm479_vm4 = vcmp.gt.f32.partialorder %v478_v29, 0.5  ;;  %s4230_s28 = smov 48   ;;  %s4232_s25 = smov 24  }
  0x11   : > { %3387 = vmatprep.subr.bf16.mxu0 %v3565_v2  ;;  %v480_v33 = vsel %vm479_vm4, 0.0, %v3571_v32 }
  0x12   : > { %v3772_v34 = vrot.slane %v480_v33, %v697_v31 }
  0x18   : > { %3390 = vmatpush3.bf16.xpose.msk.msra.mxu0 %vm3675_vm1, %v3388_v11 }
  0x19   : > { %3391 = vmatprep.subr.bf16.mxu0 %v3565_v2 }
  0x20   : > { %3394 = vmatpush3.bf16.xpose.msk.msra.mxu0 %vm3675_vm1, %v3392_v14 }
  0x21   : > { %3395 = vmatprep.subr.bf16.mxu0 %v3565_v2 }
  0x28   : > { %3398 = vmatpush3.bf16.xpose.msk.msra.mxu0 %vm3675_vm1, %v3396_v17 }
  0x29   : > { %3399 = vmatprep.subr.bf16.mxu0 %v3565_v2 }
  0x30   : > { %3402 = vmatpush3.bf16.xpose.msk.msra.mxu0 %vm3675_vm1, %v3400_v20 }
  0x31   : > { %3411 = vmatprep.subr.bf16.mxu0 %v3565_v2 }
  0x37   : > { %3188 = vmatmul.mubr.msk.f32.vlgmr.msra.gmra.mrb[0].mxu0 %vm505_vm0, %v3744_v21 }
  0x38   : > { %3257 = vmatprep.mubr.msk.f32.mxu0 %vm3566_vm2, %v3567_v5 }
 0x10a   : > { %v611_v23 = vpop.f32.mrb[0].mxu0 }
 0x10b   : > { %v3753_v24 = vadd.f32 %v2925_v22, %v611_v23  ;;  %v3189_v25 = vpop.f32.mrb[1].mxu0 }
 0x10d   : > { %712 = vrot.lane.b32.xlu1 %v3753_v24, %s3568_s17  ;;  %616 = vrot.lane.b32.xlu0 %v3753_v24, %s3569_s18 }
 0x111   : > { %790 = vrot.lane.b32.xlu1 %v3753_v24, %s3570_s19 }
 0x17f   : > { %v617_v26 = vpop.permute.xlu0 %616  ;;  %v713_v27 = vpop.permute.xlu1 %712 }
 0x180   : > { %3191 = vmatpush3.xpose.msk.msra.mxu1 %vm618_vm3, %v617_v26 }
 0x181   : > { %3195 = vmatprep.subr.mxu1 %v3567_v5 }
 0x183   : > { %3193 = vmatmul.mubr.msk.f32.vlgmr.msra.gmra.mrb[0].mxu1 %vm618_vm3, %v3753_v24  ;;  %v791_v45 = vpop.permute.xlu1 %790 }
 0x184   : > { %3196 = vmatpush3.msra.mxu1 %v713_v27  ;;  %3197 = vmatprep.mubr.msk.f32.mxu1 %vm3566_vm2, %v3567_v5 }
 0x185   : > { %3200 = vmatprep.subr.mxu1 %v3567_v5 }
 0x256   : > { %v689_v35 = vpop.f32.mrb[0].mxu1 }
 0x257   : > { %v693_v36 = vmul.f32 0.35355338, %v689_v35  ;;  %v3194_v37 = vpop.f32.mrb[1].mxu1 }
 0x259   : > { %v700_v38 = vadd.f32 %v3772_v34, %v693_v36 }
 0x25b   : > { %v701_v39 = vsel %vm618_vm3, %v700_v38, -inf }
 0x25c   : > { %702 = vmax.xlane.f32.xlu0 %v701_v39 }
 0x272   : > { %879 = vrot.lane.b32.xlu0 %v3753_v24, %s3572_s23 }
 0x276   : > { %957 = vrot.lane.b32.xlu0 %v3753_v24, %s4231_s24  ;;  %s4243_s24 = smov 40  }
 0x2e9   : > { %v703_v40 = vpop.xlane.xlu0 %702 }
 0x2ea   : > { %v704_v41 = vsub.f32 %v700_v38, %v703_v40 }
 0x2ec   : > { %v705_v42 = vmul.f32 1.442695, %v704_v41 }
 0x2ed   : > { %v880_v50 = vpop.permute.xlu0 %879 }
 0x2ee   : > { %3517 = vpow2.f32 %v705_v42 }
 0x2f1   : > { %v958_v63 = vpop.permute.xlu0 %957 }
 0x2f8   : > { %v3518_v43 = vpop.eup %3517 }
 0x2f9   : > { %v707_v44 = vsel %vm618_vm3, %v3518_v43, 0.0 }
 0x2fa   : > { %708 = vadd.xlane.f32.xlu1 %v707_v44  ;;  %v495_v44 = vld [vmem:[%s4213_s4 + $0x8] sm:$0xff] }
 0x30b   : > { %788 = vrot.lane.b32.xlu1 %v3753_v24, %s3574_s26 }
 0x387   : > { %v709_v46 = vpop.xlane.xlu1 %708 }
 0x388   : > { %3519 = vrcp.f32 %v709_v46  ;;  %v496_v46 = vld [vmem:[%s4213_s4 + $0x10] sm:$0xff] }
 0x38b   : > { %v789_v49 = vpop.permute.xlu1 %788 }
 0x392   : > { %v3520_v47 = vpop.eup %3519 }
 0x393   : > { %v711_v48 = vmul.f32 %v3520_v47, %v3518_v43  ;;  %v497_v47 = vld [vmem:[%s4213_s4 + $0x18] sm:$0xff] }
 0x395   : > { %3198 = vmatmul.mubr.msk.f32.vlgmr.msra.gmra.mrb[2].mxu1 %vm618_vm3, %v711_v48  ;;  %v3408_v48 = vpack.c.bf16 %v497_v47, %v496_v46  ;;  %v2977_v47 = vld [vmem:[%s4211_s2 + $0x60] sm:$0xff] }
 0x396   : > { %3201 = vmatpush3.xpose.msk.msra.mxu1 %vm618_vm3, %v791_v45  ;;  %3202 = vmatprep.mubr.msk.f32.mxu1 %vm3566_vm2, %v3567_v5 }
 0x397   : > { %3205 = vmatprep.subr.mxu1 %v3567_v5 }
 0x399   : > { %3203 = vmatmul.mubr.msk.f32.vlgmr.msra.gmra.mrb[4].mxu1 %vm618_vm3, %v789_v49 }
 0x39a   : > { %3206 = vmatpush3.msra.mxu1 %v880_v50  ;;  %3207 = vmatprep.mubr.msk.f32.mxu1 %vm3566_vm2, %v3567_v5 }
 0x39b   : > { %3210 = vmatprep.subr.mxu1 %v3567_v5 }
 0x468   : > { %v3792_v51 = vpop.f32.mrb[2].mxu1 }
 0x469   : > { %v3199_v52 = vpop.f32.mrb[3].mxu1 }
 0x46c   : > { %v862_v53 = vpop.f32.mrb[4].mxu1 }
 0x46d   : > { %v866_v54 = vmul.f32 0.35355338, %v862_v53  ;;  %v3204_v55 = vpop.f32.mrb[5].mxu1 }
 0x46f   : > { %v867_v56 = vadd.f32 %v866_v54, %v3772_v34 }
 0x471   : > { %v868_v57 = vsel %vm618_vm3, %v867_v56, -inf }
 0x472   : > { %869 = vmax.xlane.f32.xlu1 %v868_v57 }
 0x4ff   : > { %v870_v58 = vpop.xlane.xlu1 %869 }
 0x500   : > { %v871_v59 = vsub.f32 %v867_v56, %v870_v58  ;;  %v2951_v58 = vld [vmem:[%s4214_s5] ss:$0 sm:$0xff] }
 0x502   : > { %v872_v60 = vmul.f32 1.442695, %v871_v59 }
 0x504   : > { %3521 = vpow2.f32 %v872_v60 }
 0x50e   : > { %v3522_v61 = vpop.eup %3521 }
 0x50f   : > { %v874_v62 = vsel %vm618_vm3, %v3522_v61, 0.0 }
 0x510   : > { %875 = vadd.xlane.f32.xlu0 %v874_v62 }
 0x526   : > { %955 = vrot.lane.b32.xlu0 %v3753_v24, %s3575_s27 }
 0x59d   : > { %v876_v0 = vpop.xlane.xlu0 %875 }
 0x59e   : > { %3523 = vrcp.f32 %v876_v0  ;;  %v1429_v0 = vld [vmem:[%s4219_s10 + $0x8] sm:$0xff] }
 0x5a1   : > { %v956_v6 = vpop.permute.xlu0 %955 }
 0x5a8   : > { %v3524_v1 = vpop.eup %3523 }
 0x5a9   : > { %v878_v3 = vmul.f32 %v3524_v1, %v3522_v61 }
 0x5ab   : > { %3208 = vmatmul.mubr.msk.f32.vlgmr.msra.gmra.mrb[6].mxu1 %vm618_vm3, %v878_v3  ;;  %v1431_v3 = vld [vmem:[%s4219_s10 + $0x18] sm:$0xff] }
 0x5ac   : > { %3211 = vmatpush3.xpose.msk.msra.mxu1 %vm618_vm3, %v958_v63  ;;  %3212 = vmatprep.mubr.msk.f32.mxu1 %vm3566_vm2, %v3567_v5  ;;  %v1428_v63 = vld [vmem:[%s4219_s10] sm:$0xff] }
 0x5ad   : > { %3215 = vmatprep.subr.mxu1 %v3567_v5  ;;  %v3412_v1 = vpack.c.bf16 %v1429_v0, %v1428_v63  ;;  %v2985_v0 = vld [vmem:[%s4211_s2 + $0xa0] sm:$0xff] }
 0x5af   : > { %3213 = vmatmul.mubr.msk.f32.vlgmr.msra.gmra.mrb[8].mxu1 %vm618_vm3, %v956_v6  ;;  %3414 = vmatpush3.bf16.xpose.msk.msra.mxu0 %vm3675_vm1, %v3412_v1  ;;  %v2986_v1 = vld [vmem:[%s4211_s2 + $0xa8] sm:$0xff] }
 0x5b0   : > { %3217 = vmatprep.mubr.msk.f32.mxu1 %vm3566_vm2, %v3567_v5  ;;  %3415 = vmatprep.subr.bf16.mxu0 %v3565_v2 }
 0x67e   : > { %v951_v7 = vpop.f32.mrb[6].mxu1 }
 0x67f   : > { %v3209_v8 = vpop.f32.mrb[7].mxu1 }
 0x682   : > { %v1029_v9 = vpop.f32.mrb[8].mxu1 }
 0x683   : > { %v1033_v10 = vmul.f32 0.35355338, %v1029_v9  ;;  %v3214_v11 = vpop.f32.mrb[9].mxu1 }
 0x685   : > { %v1034_v12 = vadd.f32 %v1033_v10, %v3772_v34 }
 0x687   : > { %v1035_v13 = vsel %vm618_vm3, %v1034_v12, -inf }
 0x688   : > { %1036 = vmax.xlane.f32.xlu1 %v1035_v13  ;;  %v1433_v13 = vld [vmem:[%s4219_s10 + $0x28] sm:$0xff] }
 0x699   : > { %1046 = vrot.lane.b32.xlu1 %v3753_v24, %s4230_s28 }
 0x69d   : > { %1124 = vrot.lane.b32.xlu1 %v3753_v24, %s4227_s15 }
 0x6a1   : > { %1122 = vrot.lane.b32.xlu1 %v3753_v24, %s4229_s16 }
 0x715   : > { %v1037_v14 = vpop.xlane.xlu1 %1036 }
 0x716   : > { %v1038_v15 = vsub.f32 %v1034_v12, %v1037_v14  ;;  %v1432_v12 = vld [vmem:[%s4219_s10 + $0x20] sm:$0xff] }
 0x717   : > { %v3420_v14 = vpack.c.bf16 %v1433_v13, %v1432_v12  ;;  %v2975_v12 = vld [vmem:[%s4217_s8] ss:$0 sm:$0xff] }
 0x718   : > { %v1039_v16 = vmul.f32 1.442695, %v1038_v15  ;;  %v1434_v15 = vld [vmem:[%s4219_s10 + $0x30] sm:$0xff] }
 0x719   : > { %v1047_v17 = vpop.permute.xlu1 %1046 }
 0x71a   : > { %3525 = vpow2.f32 %v1039_v16  ;;  %3216 = vmatpush3.msra.mxu1 %v1047_v17  ;;  %v1435_v16 = vld [vmem:[%s4219_s10 + $0x38] sm:$0xff] }
 0x71b   : > { %3220 = vmatprep.subr.mxu1 %v3567_v5  ;;  %v3424_v17 = vpack.c.bf16 %v1435_v16, %v1434_v15 }
 0x71d   : > { %v1125_v23 = vpop.permute.xlu1 %1124 }
 0x721   : > { %v1123_v26 = vpop.permute.xlu1 %1122 }
 0x724   : > { %v3526_v18 = vpop.eup %3525 }
 0x725   : > { %v1041_v19 = vsel %vm618_vm3, %v3526_v18, 0.0 }
 0x726   : > { %1042 = vadd.xlane.f32.xlu0 %v1041_v19  ;;  %v1438_v19 = vld [vmem:[%s4221_s12 + $0x8] sm:$0xff] }
 0x7b3   : > { %v1043_v20 = vpop.xlane.xlu0 %1042 }
 0x7b4   : > { %3527 = vrcp.f32 %v1043_v20 }
 0x7be   : > { %v3528_v22 = vpop.eup %3527 }
 0x7bf   : > { %v1045_v25 = vmul.f32 %v3528_v22, %v3526_v18  ;;  %v1437_v18 = vld [vmem:[%s4221_s12] sm:$0xff] }
 0x7c0   : > { %v3428_v20 = vpack.c.bf16 %v1438_v19, %v1437_v18  ;;  %v3045_v22 = vld [vmem:[%s4220_s11 + $0x1] ss:$0 sm:$0xff] }
 0x7c1   : > { %3218 = vmatmul.mubr.msk.f32.vlgmr.msra.gmra.mrb[10].mxu1 %vm618_vm3, %v1045_v25  ;;  %v1440_v25 = vld [vmem:[%s4221_s12 + $0x18] sm:$0xff] }
 0x7c2   : > { %3221 = vmatpush3.xpose.msk.msra.mxu1 %vm618_vm3, %v1125_v23  ;;  %3222 = vmatprep.mubr.msk.f32.mxu1 %vm3566_vm2, %v3567_v5  ;;  %v1439_v23 = vld [vmem:[%s4221_s12 + $0x10] sm:$0xff] }
 0x7c3   : > { %3225 = vmatprep.subr.mxu1 %v3567_v5 }
 0x7c5   : > { %3223 = vmatmul.mubr.msk.f32.vlgmr.msra.gmra.mrb[12].mxu1 %vm618_vm3, %v1123_v26  ;;  %v3432_v26 = vpack.c.bf16 %v1440_v25, %v1439_v23 }
 0x7c6   : > { %3227 = vmatprep.mubr.msk.f32.mxu1 %vm3566_vm2, %v3567_v5 }
 0x894   : > { %v1118_v27 = vpop.f32.mrb[10].mxu1 }
 0x895   : > { %v3219_v28 = vpop.f32.mrb[11].mxu1 }
 0x898   : > { %v1196_v29 = vpop.f32.mrb[12].mxu1 }
 0x899   : > { %v1200_v30 = vmul.f32 0.35355338, %v1196_v29  ;;  %v3224_v31 = vpop.f32.mrb[13].mxu1 }
 0x89a   : > { %v2957_v31 = vld [vmem:[%s4215_s6] ss:$0 sm:$0xff] }
 0x89b   : > { %v1201_v32 = vadd.f32 %v1200_v30, %v3772_v34 }
 0x89d   : > { %v1202_v33 = vsel %vm618_vm3, %v1201_v32, -inf }
 0x89e   : > { %1203 = vmax.xlane.f32.xlu1 %v1202_v33  ;;  %v2958_v33 = vld [vmem:[%s4216_s7] ss:$0 sm:$0xff] }
 0x92b   : > { %v1204_v35 = vpop.xlane.xlu1 %1203 }
 0x92c   : > { %v1205_v36 = vsub.f32 %v1201_v32, %v1204_v35 }
 0x92e   : > { %v1206_v37 = vmul.f32 1.442695, %v1205_v36 }
 0x930   : > { %3529 = vpow2.f32 %v1206_v37  ;;  %v2959_v37 = vld [vmem:[%s4220_s11] ss:$0 sm:$0xff] }
 0x93a   : > { %v3530_v38 = vpop.eup %3529 }
 0x93b   : > { %v1208_v39 = vsel %vm618_vm3, %v3530_v38, 0.0 }
 0x93c   : > { %1209 = vadd.xlane.f32.xlu0 %v1208_v39 }
 0x952   : > { %1213 = vrot.lane.b32.xlu0 %v3753_v24, %s4225_s20  ;;  %v494_v24 = vld [vmem:[%s4213_s4] sm:$0xff] }
 0x953   : > { %v3404_v45 = vpack.c.bf16 %v495_v44, %v494_v24 }
 0x956   : > { %1290 = vrot.lane.b32.xlu0 %v951_v7, %s4226_s21  ;;  %s4245_s21 = sshll.u32 %s4247_s30, 3 }
 0x95a   : > { %1294 = vrot.lane.b32.xlu0 %v1118_v27, %s4228_s22 }
 0x9c9   : > { %v1210_v40 = vpop.xlane.xlu0 %1209 }
 0x9ca   : > { %3531 = vrcp.f32 %v1210_v40 }
 0x9cd   : > { %v1214_v41 = vpop.permute.xlu0 %1213 }
 0x9ce   : > { %3226 = vmatpush3.msra.mxu1 %v1214_v41 }
 0x9cf   : > { %3403 = vmatprep.subr.bf16.mxu1 %v3565_v2 }
 0x9d1   : > { %v1291_v52 = vpop.permute.xlu0 %1290 }
 0x9d2   : > { %v1301_v54 = vsel %vm618_vm3, %v3792_v51, %v1291_v52  ;;  %v2980_v52 = vld [vmem:[%s4211_s2 + $0x78] sm:$0xff] }
 0x9d4   : > { %v3532_v42 = vpop.eup %3531 }
 0x9d5   : > { %v1212_v43 = vmul.f32 %v3532_v42, %v3530_v38  ;;  %v1295_v53 = vpop.permute.xlu0 %1294  ;;  %v2969_v42 = vld [vmem:[%s4222_s13] ss:$0 sm:$0xff] }
 0x9d6   : > { %v1303_v55 = vsel %vm1302_vm5, %v1301_v54, %v1295_v53  ;;  %v2981_v54 = vld [vmem:[%s4211_s2 + $0x80] sm:$0xff] }
 0x9d7   : > { %3228 = vmatmul.mubr.msk.f32.vlgmr.msra.gmra.mrb[14].mxu1 %vm618_vm3, %v1212_v43 }
 0x9d8   : > { %3238 = vmatprep.mubr.msk.f32.mxu1 %vm3566_vm2, %v3567_v5  ;;  %3406 = vmatpush3.bf16.xpose.msk.msra.mxu1 %vm3675_vm1, %v3404_v45 }
 0x9d9   : > { %3407 = vmatprep.subr.bf16.mxu1 %v3565_v2 }
 0x9e0   : > { %3410 = vmatpush3.bf16.xpose.msk.msra.mxu1 %vm3675_vm1, %v3408_v48  ;;  %v2978_v48 = vld [vmem:[%s4211_s2 + $0x68] sm:$0xff] }
 0x9e1   : > { %3427 = vmatprep.subr.bf16.mxu1 %v3565_v2 }
 0xaaa   : > { %v1285_v49 = vpop.f32.mrb[14].mxu1 }
 0xaab   : > { %1298 = vrot.lane.b32.xlu1 %v1285_v49, %s4232_s25  ;;  %v3229_v50 = vpop.f32.mrb[15].mxu1  ;;  %v3436_v49 = vpack.c.bf16 %v2978_v48, %v2977_v47 }
 0xaac   : > { %v2979_v50 = vld [vmem:[%s4211_s2 + $0x70] sm:$0xff] }
 0xaad   : > { %v3440_v53 = vpack.c.bf16 %v2980_v52, %v2979_v50 }
 0xb1d   : > { %v1299_v56 = vpop.permute.xlu1 %1298 }
 0xb1e   : > { %v1305_v57 = vsel %vm1304_vm6, %v1303_v55, %v1299_v56  ;;  %v2982_v55 = vld [vmem:[%s4211_s2 + $0x88] sm:$0xff] }
 0xb1f   : > { %3239 = vmatmul.mubr.msk.f32.vlgmr.msra.gmra.mrb[16].mxu1 %vm505_vm0, %v1305_v57  ;;  %v3444_v56 = vpack.c.bf16 %v2982_v55, %v2981_v54  ;;  %v2983_v57 = vld [vmem:[%s4211_s2 + $0x90] sm:$0xff] }
 0xb20   : > { %3268 = vmatprep.mubr.msk.f32.mxu1 %vm3566_vm2, %v3567_v5  ;;  %3430 = vmatpush3.bf16.xpose.msk.msra.mxu1 %vm3912_vm8, %v3428_v20 }
 0xb21   : > { %3431 = vmatprep.subr.bf16.mxu1 %v3565_v2 }
 0xb28   : > { %3434 = vmatpush3.bf16.xpose.msk.msra.mxu1 %vm3912_vm8, %v3432_v26 }
 0xb29   : > { %3435 = vmatprep.subr.bf16.mxu1 %v3565_v2 }
 0xbf2   : > { %v1393_v59 = vpop.f32.mrb[16].mxu1 }
 0xbf3   : > { %v1394_v60 = vadd.f32 %v2951_v58, %v1393_v59  ;;  %v3240_v61 = vpop.f32.mrb[17].mxu1  ;;  %v2984_v58 = vld [vmem:[%s4211_s2 + $0x98] sm:$0xff] }
 0xbf4   : > { %v3448_v59 = vpack.c.bf16 %v2984_v58, %v2983_v57 }
 0xbf5   : > { %v1399_v62 = vadd.f32 %v1394_v60, %v3744_v21  ;;  %v1430_v21 = vld [vmem:[%s4219_s10 + $0x10] sm:$0xff] }
 0xbf6   : > { %v3416_v6 = vpack.c.bf16 %v1431_v3, %v1430_v21  ;;  %v3452_v21 = vpack.c.bf16 %v2986_v1, %v2985_v0  ;;  %v2987_v3 = vld [vmem:[%s4211_s2 + $0xb0] sm:$0xff] }
 0xbf7   : > { %v1400_v51 = vsel %vm505_vm0, %v1399_v62, 0.0 }
 0xbf8   : > { %1401 = vadd.xlane.f32.xlu0 %v1400_v51  ;;  %3418 = vmatpush3.bf16.xpose.msk.msra.mxu0 %vm3675_vm1, %v3416_v6  ;;  %v2988_v6 = vld [vmem:[%s4211_s2 + $0xb8] sm:$0xff] }
 0xbf9   : > { %3419 = vmatprep.subr.bf16.mxu0 %v3565_v2 }
 0xc00   : > { %3422 = vmatpush3.bf16.xpose.msk.msra.mxu0 %vm3675_vm1, %v3420_v14  ;;  %v2976_v14 = vld [vmem:[%s4218_s9] ss:$0 sm:$0xff] }
 0xc01   : > { %3423 = vmatprep.subr.bf16.mxu0 %v3565_v2 }
 0xc08   : > { %3426 = vmatpush3.bf16.xpose.msk.msra.mxu0 %vm3675_vm1, %v3424_v17  ;;  %v2995_v17 = vld [vmem:[%s4212_s3 + $0x1] ss:$0 sm:$0xff] }
 0xc09   : > { %3298 = vmatprep.subr.mxu0 %v3567_v5 }
 0xc85   : > { %v1402_v7 = vpop.xlane.xlu0 %1401 }
 0xc86   : > { %v1404_v8 = vmul.f32 0.03125, %v1402_v7  ;;  %v3456_v7 = vpack.c.bf16 %v2988_v6, %v2987_v3 }
 0xc88   : > { %v1405_v9 = vsub.f32 %v1399_v62, %v1404_v8 }
 0xc8a   : > { %v1406_v10 = vmul.f32 %v1405_v9, %v1405_v9 }
 0xc8c   : > { %v1407_v11 = vsel %vm505_vm0, %v1406_v10, 0.0 }
 0xc8d   : > { %1408 = vadd.xlane.f32.xlu1 %v1407_v11 }
 0xd1a   : > { %v1409_v27 = vpop.xlane.xlu1 %1408 }
 0xd1b   : > { %v1410_v28 = vmul.f32 0.03125, %v1409_v27 }
 0xd1d   : > { %v1411_v29 = vadd.f32 1e-05, %v1410_v28 }
 0xd1f   : > { %3533 = vrsqrt.f32 %v1411_v29 }
 0xd29   : > { %v3534_v30 = vpop.eup %3533 }
 0xd2a   : > { %v1413_v32 = vmul.f32 %v3534_v30, %v1405_v9 }
 0xd2c   : > { %v1420_v35 = vmul.f32 %v2957_v31, %v1413_v32 }
 0xd2e   : > { %v1427_v36 = vadd.f32 %v2958_v33, %v1420_v35 }
 0xd30   : > { %3258 = vmatmul.mubr.msk.f32.vlgmr.msra.gmra.mrb[2].mxu0 %vm505_vm0, %v1427_v36 }
 0xd31   : > { %3300 = vmatprep.mubr.msk.f32.mxu0 %vm3566_vm2, %v3567_v5 }
 0xe03   : > { %v1541_v38 = vpop.f32.mrb[2].mxu0 }
 0xe04   : > { %v1542_v39 = vadd.f32 %v2959_v37, %v1541_v38  ;;  %v3259_v40 = vpop.f32.mrb[3].mxu0 }
 0xe06   : > { %v1545_v41 = vmax.f32 %v1542_v39, 0.0 }
 0xe08   : > { %3269 = vmatmul.mubr.msk.f32.vlgmr.msra.gmra.mrb[18].mxu1 %vm1552_vm7, %v1545_v41 }
 0xe09   : > { %3295 = vmatprep.mubr.msk.f32.mxu1 %vm3566_vm2, %v3567_v5  ;;  %3438 = vmatpush3.bf16.xpose.msk.msra.mxu1 %vm3675_vm1, %v3436_v49 }
 0xe0a   : > { %3439 = vmatprep.subr.bf16.mxu1 %v3565_v2 }
 0xe11   : > { %3442 = vmatpush3.bf16.xpose.msk.msra.mxu1 %vm3675_vm1, %v3440_v53 }
 0xe12   : > { %3443 = vmatprep.subr.bf16.mxu1 %v3565_v2 }
 0xe19   : > { %3446 = vmatpush3.bf16.xpose.msk.msra.mxu1 %vm3675_vm1, %v3444_v56 }
 0xe1a   : > { %3447 = vmatprep.subr.bf16.mxu1 %v3565_v2 }
 0xe21   : > { %3450 = vmatpush3.bf16.xpose.msk.msra.mxu1 %vm3675_vm1, %v3448_v59 }
 0xe22   : > { %3451 = vmatprep.subr.bf16.mxu1 %v3565_v2 }
 0xe29   : > { %3454 = vmatpush3.bf16.xpose.msk.msra.mxu1 %vm3675_vm1, %v3452_v21 }
 0xe2a   : > { %3455 = vmatprep.subr.bf16.mxu1 %v3565_v2 }
 0xe31   : > { %3458 = vmatpush3.bf16.xpose.msk.msra.mxu1 %vm3675_vm1, %v3456_v7 }
 0xe32   : > { %3467 = vmatprep.subr.bf16.mxu1 %v3565_v2 }
 0xedb   : > { %v1634_v43 = vpop.f32.mrb[18].mxu1 }
 0xedc   : > { %v1635_v24 = vadd.f32 %v2969_v42, %v1634_v43  ;;  %v3270_v44 = vpop.f32.mrb[19].mxu1 }
 0xede   : > { %v1640_v45 = vadd.f32 %v1635_v24, %v1427_v36 }
 0xee0   : > { %v1641_v46 = vsel %vm505_vm0, %v1640_v45, 0.0 }
 0xee1   : > { %1642 = vadd.xlane.f32.xlu0 %v1641_v46 }
 0xf6e   : > { %v1643_v60 = vpop.xlane.xlu0 %1642 }
 0xf6f   : > { %v1644_v61 = vmul.f32 0.03125, %v1643_v60 }
 0xf71   : > { %v1645_v62 = vsub.f32 %v1640_v45, %v1644_v61 }
 0xf73   : > { %v1646_v51 = vmul.f32 %v1645_v62, %v1645_v62 }
 0xf75   : > { %v1647_v63 = vsel %vm505_vm0, %v1646_v51, 0.0 }
 0xf76   : > { %1648 = vadd.xlane.f32.xlu0 %v1647_v63 }
0x1003   : > { %v1649_v8 = vpop.xlane.xlu0 %1648 }
0x1004   : > { %v1650_v9 = vmul.f32 0.03125, %v1649_v8 }
0x1006   : > { %v1651_v10 = vadd.f32 1e-05, %v1650_v9 }
0x1008   : > { %3535 = vrsqrt.f32 %v1651_v10 }
0x1012   : > { %v3536_v11 = vpop.eup %3535 }
0x1013   : > { %v1653_v13 = vmul.f32 %v3536_v11, %v1645_v62 }
0x1015   : > { %v1660_v15 = vmul.f32 %v2975_v12, %v1653_v13 }
0x1017   : > { %v4008_v16 = vadd.f32 %v2976_v14, %v1660_v15 }
0x1019   : > { %3296 = vmatmul.mubr.msk.f32.vlgmr.msra.gmra.mrb[20].mxu1 %vm505_vm0, %v4008_v16 }
0x101a   : > { %3365 = vmatprep.mubr.msk.f32.mxu1 %vm3566_vm2, %v3567_v5 }
0x10ec   : > { %v1801_v18 = vpop.f32.mrb[20].mxu1 }
0x10ed   : > { %v4017_v19 = vadd.f32 %v2995_v17, %v1801_v18  ;;  %v3297_v20 = vpop.f32.mrb[21].mxu1 }
0x10ef   : > { %1806 = vrot.lane.b32.xlu0 %v4017_v19, %s3569_s18  ;;  %s4238_s18 = smov 48  }
0x10f3   : > { %1973 = vrot.lane.b32.xlu0 %v4017_v19, %s3570_s19  ;;  %s4239_s19 = smov 104  }
0x10f7   : > { %1971 = vrot.lane.b32.xlu0 %v4017_v19, %s3574_s26  ;;  %s4241_s26 = smov 8  }
0x1161   : > { %v1807_v23 = vpop.permute.xlu0 %1806 }
0x1162   : > { %3299 = vmatpush3.xpose.msk.msra.mxu0 %vm618_vm3, %v1807_v23 }
0x1163   : > { %3303 = vmatprep.subr.mxu0 %v3567_v5 }
0x1165   : > { %3301 = vmatmul.mubr.msk.f32.vlgmr.msra.gmra.mrb[4].mxu0 %vm618_vm3, %v4017_v19  ;;  %v1974_v39 = vpop.permute.xlu0 %1973 }
0x1166   : > { %3305 = vmatprep.mubr.msk.f32.mxu0 %vm3566_vm2, %v3567_v5 }
0x1169   : > { %v1972_v41 = vpop.permute.xlu0 %1971 }
0x1238   : > { %v1878_v25 = vpop.f32.mrb[4].mxu0 }
0x1239   : > { %v1882_v26 = vmul.f32 0.35355338, %v1878_v25  ;;  %v3302_v27 = vpop.f32.mrb[5].mxu0 }
0x123b   : > { %v1883_v28 = vadd.f32 %v1882_v26, %v3772_v34 }
0x123d   : > { %v1884_v29 = vsel %vm618_vm3, %v1883_v28, -inf }
0x123e   : > { %1885 = vmax.xlane.f32.xlu1 %v1884_v29 }
0x12cb   : > { %v1886_v30 = vpop.xlane.xlu1 %1885 }
0x12cc   : > { %v1887_v31 = vsub.f32 %v1883_v28, %v1886_v30 }
0x12ce   : > { %v1888_v32 = vmul.f32 1.442695, %v1887_v31 }
0x12d0   : > { %3537 = vpow2.f32 %v1888_v32 }
0x12da   : > { %v3538_v33 = vpop.eup %3537 }
0x12db   : > { %v1890_v35 = vsel %vm618_vm3, %v3538_v33, 0.0 }
0x12dc   : > { %1891 = vadd.xlane.f32.xlu1 %v1890_v35 }
0x12ed   : > { %1895 = vrot.lane.b32.xlu1 %v4017_v19, %s3568_s17  ;;  %s4237_s17 = smov 80  }
0x1369   : > { %v1892_v36 = vpop.xlane.xlu1 %1891 }
0x136a   : > { %3539 = vrcp.f32 %v1892_v36  ;;  %v2990_v36 = vld [vmem:[%s4213_s4 + $0x20] sm:$0xff] }
0x136d   : > { %v1896_v37 = vpop.permute.xlu1 %1895 }
0x136e   : > { %3304 = vmatpush3.msra.mxu0 %v1896_v37 }
0x136f   : > { %3308 = vmatprep.subr.mxu0 %v3567_v5 }
0x1374   : > { %v3540_v38 = vpop.eup %3539 }
0x1375   : > { %v1894_v40 = vmul.f32 %v3540_v38, %v3538_v33  ;;  %v2992_v38 = vld [vmem:[%s4213_s4 + $0x30] sm:$0xff] }
0x1377   : > { %3306 = vmatmul.mubr.msk.f32.vlgmr.msra.gmra.mrb[6].mxu0 %vm618_vm3, %v1894_v40 }
0x1378   : > { %3309 = vmatpush3.xpose.msk.msra.mxu0 %vm618_vm3, %v1974_v39  ;;  %3310 = vmatprep.mubr.msk.f32.mxu0 %vm3566_vm2, %v3567_v5  ;;  %v2993_v39 = vld [vmem:[%s4213_s4 + $0x38] sm:$0xff] }
0x1379   : > { %3313 = vmatprep.subr.mxu0 %v3567_v5  ;;  %v3464_v40 = vpack.c.bf16 %v2993_v39, %v2992_v38 }
0x137b   : > { %3311 = vmatmul.mubr.msk.f32.vlgmr.msra.gmra.mrb[8].mxu0 %vm618_vm3, %v1972_v41 }
0x137c   : > { %3315 = vmatprep.mubr.msk.f32.mxu0 %vm3566_vm2, %v3567_v5 }
0x144a   : > { %v4045_v42 = vpop.f32.mrb[6].mxu0 }
0x144b   : > { %v3307_v43 = vpop.f32.mrb[7].mxu0 }
0x144e   : > { %v2045_v24 = vpop.f32.mrb[8].mxu0 }
0x144f   : > { %v2049_v44 = vmul.f32 0.35355338, %v2045_v24  ;;  %v3312_v45 = vpop.f32.mrb[9].mxu0 }
0x1451   : > { %v2050_v46 = vadd.f32 %v2049_v44, %v3772_v34 }
0x1453   : > { %v2051_v47 = vsel %vm618_vm3, %v2050_v46, -inf }
0x1454   : > { %2052 = vmax.xlane.f32.xlu0 %v2051_v47 }
0x146a   : > { %2062 = vrot.lane.b32.xlu0 %v4017_v19, %s3572_s23  ;;  %s4240_s23 = smov 72  }
0x146e   : > { %2138 = vrot.lane.b32.xlu0 %v4017_v19, %s3575_s27  ;;  %s4242_s27 = smov 16  }
0x14e1   : > { %v2053_v48 = vpop.xlane.xlu0 %2052 }
0x14e2   : > { %v2054_v49 = vsub.f32 %v2050_v46, %v2053_v48 }
0x14e4   : > { %v2055_v50 = vmul.f32 1.442695, %v2054_v49  ;;  %v3021_v49 = vld [vmem:[%s4214_s5 + $0x1] ss:$0 sm:$0xff] }
0x14e5   : > { %v2063_v52 = vpop.permute.xlu0 %2062 }
0x14e6   : > { %3541 = vpow2.f32 %v2055_v50  ;;  %3314 = vmatpush3.msra.mxu0 %v2063_v52 }
0x14e7   : > { %3318 = vmatprep.subr.mxu0 %v3567_v5 }
0x14e9   : > { %v2139_v59 = vpop.permute.xlu0 %2138 }
0x14f0   : > { %v3542_v53 = vpop.eup %3541 }
0x14f1   : > { %v2057_v54 = vsel %vm618_vm3, %v3542_v53, 0.0 }
0x14f2   : > { %2058 = vadd.xlane.f32.xlu1 %v2057_v54 }
0x1503   : > { %2140 = vrot.lane.b32.xlu1 %v4017_v19, %s4237_s17 }
0x157f   : > { %v2059_v55 = vpop.xlane.xlu1 %2058 }
0x1580   : > { %3543 = vrcp.f32 %v2059_v55  ;;  %v3031_v55 = vld [vmem:[%s4219_s10 + $0x40] sm:$0xff] }
0x1583   : > { %v2141_v58 = vpop.permute.xlu1 %2140 }
0x158a   : > { %v3544_v56 = vpop.eup %3543 }
0x158b   : > { %v2061_v57 = vmul.f32 %v3544_v56, %v3542_v53 }
0x158d   : > { %3316 = vmatmul.mubr.msk.f32.vlgmr.msra.gmra.mrb[10].mxu0 %vm618_vm3, %v2061_v57  ;;  %v3034_v57 = vld [vmem:[%s4219_s10 + $0x58] sm:$0xff] }
0x158e   : > { %3319 = vmatpush3.xpose.msk.msra.mxu0 %vm618_vm3, %v2141_v58  ;;  %3320 = vmatprep.mubr.msk.f32.mxu0 %vm3566_vm2, %v3567_v5 }
0x158f   : > { %3323 = vmatprep.subr.mxu0 %v3567_v5 }
0x1591   : > { %3321 = vmatmul.mubr.msk.f32.vlgmr.msra.gmra.mrb[12].mxu0 %vm618_vm3, %v2139_v59 }
0x1592   : > { %3325 = vmatprep.mubr.msk.f32.mxu0 %vm3566_vm2, %v3567_v5 }
0x1660   : > { %v2134_v60 = vpop.f32.mrb[10].mxu0 }
0x1661   : > { %v3317_v61 = vpop.f32.mrb[11].mxu0 }
0x1664   : > { %v2212_v62 = vpop.f32.mrb[12].mxu0 }
0x1665   : > { %v2216_v51 = vmul.f32 0.35355338, %v2212_v62  ;;  %v3322_v63 = vpop.f32.mrb[13].mxu0 }
0x1666   : > { %v3035_v63 = vld [vmem:[%s4219_s10 + $0x60] sm:$0xff] }
0x1667   : > { %v2217_v0 = vadd.f32 %v2216_v51, %v3772_v34 }
0x1669   : > { %v2218_v1 = vsel %vm618_vm3, %v2217_v0, -inf }
0x166a   : > { %2219 = vmax.xlane.f32.xlu0 %v2218_v1 }
0x1680   : > { %2229 = vrot.lane.b32.xlu0 %v4017_v19, %s4238_s18  ;;  %s4244_s18 = smov 24  }
0x1684   : > { %2305 = vrot.lane.b32.xlu0 %v4017_v19, %s4239_s19 }
0x16f7   : > { %v2220_v21 = vpop.xlane.xlu0 %2219 }
0x16f8   : > { %v2221_v3 = vsub.f32 %v2217_v0, %v2220_v21  ;;  %v3036_v0 = vld [vmem:[%s4219_s10 + $0x68] sm:$0xff]  ;;  %v3037_v21 = vld [vmem:[%s4219_s10 + $0x70] sm:$0xff] }
0x16f9   : > { %v3476_v1 = vpack.c.bf16 %v3036_v0, %v3035_v63 }
0x16fa   : > { %v2222_v6 = vmul.f32 1.442695, %v2221_v3  ;;  %v3038_v3 = vld [vmem:[%s4219_s10 + $0x78] sm:$0xff] }
0x16fb   : > { %v2230_v7 = vpop.permute.xlu0 %2229 }
0x16fc   : > { %3545 = vpow2.f32 %v2222_v6  ;;  %3324 = vmatpush3.msra.mxu0 %v2230_v7  ;;  %v3480_v6 = vpack.c.bf16 %v3038_v3, %v3037_v21  ;;  %v3040_v7 = vld [vmem:[%s4221_s12 + $0x20] sm:$0xff] }
0x16fd   : > { %3328 = vmatprep.subr.mxu0 %v3567_v5 }
0x16ff   : > { %v2306_v14 = vpop.permute.xlu0 %2305 }
0x1706   : > { %v3546_v8 = vpop.eup %3545 }
0x1707   : > { %v2224_v9 = vsel %vm618_vm3, %v3546_v8, 0.0 }
0x1708   : > { %2225 = vadd.xlane.f32.xlu1 %v2224_v9 }
0x1719   : > { %2307 = vrot.lane.b32.xlu1 %v4017_v19, %s4240_s23 }
0x1795   : > { %v2226_v10 = vpop.xlane.xlu1 %2225 }
0x1796   : > { %3547 = vrcp.f32 %v2226_v10  ;;  %v3042_v10 = vld [vmem:[%s4221_s12 + $0x30] sm:$0xff] }
0x1799   : > { %v2308_v13 = vpop.permute.xlu1 %2307 }
0x17a0   : > { %v3548_v11 = vpop.eup %3547 }
0x17a1   : > { %v2228_v12 = vmul.f32 %v3548_v11, %v3546_v8  ;;  %v3041_v8 = vld [vmem:[%s4221_s12 + $0x28] sm:$0xff]  ;;  %v3488_v11 = vpack.c.bf16 %v3043_v4, %v3042_v10 }
0x17a2   : > { %v3484_v9 = vpack.c.bf16 %v3041_v8, %v3040_v7 }
0x17a3   : > { %3326 = vmatmul.mubr.msk.f32.vlgmr.msra.gmra.mrb[14].mxu0 %vm618_vm3, %v2228_v12 }
0x17a4   : > { %3329 = vmatpush3.xpose.msk.msra.mxu0 %vm618_vm3, %v2308_v13  ;;  %3330 = vmatprep.mubr.msk.f32.mxu0 %vm3566_vm2, %v3567_v5 }
0x17a5   : > { %3333 = vmatprep.subr.mxu0 %v3567_v5 }
0x17a7   : > { %3331 = vmatmul.mubr.msk.f32.vlgmr.msra.gmra.mrb[16].mxu0 %vm618_vm3, %v2306_v14 }
0x17a8   : > { %3335 = vmatprep.mubr.msk.f32.mxu0 %vm3566_vm2, %v3567_v5 }
0x1876   : > { %v2301_v15 = vpop.f32.mrb[14].mxu0 }
0x1877   : > { %v3327_v17 = vpop.f32.mrb[15].mxu0 }
0x187a   : > { %v2379_v18 = vpop.f32.mrb[16].mxu0 }
0x187b   : > { %v2383_v20 = vmul.f32 0.35355338, %v2379_v18  ;;  %v3332_v23 = vpop.f32.mrb[17].mxu0  ;;  %v3030_v18 = vld [vmem:[%s4216_s7 + $0x1] ss:$0 sm:$0xff] }
0x187d   : > { %v2384_v25 = vadd.f32 %v2383_v20, %v3772_v34 }
0x187f   : > { %v2385_v26 = vsel %vm618_vm3, %v2384_v25, -inf }
0x1880   : > { %2386 = vmax.xlane.f32.xlu1 %v2385_v26 }
0x1891   : > { %2473 = vrot.lane.b32.xlu1 %v2134_v60, %s4241_s26 }
0x1895   : > { %2477 = vrot.lane.b32.xlu1 %v2301_v15, %s4242_s27 }
0x190d   : > { %v2387_v27 = vpop.xlane.xlu1 %2386 }
0x190e   : > { %v2388_v28 = vsub.f32 %v2384_v25, %v2387_v27 }
0x1910   : > { %v2389_v29 = vmul.f32 1.442695, %v2388_v28 }
0x1911   : > { %v2474_v24 = vpop.permute.xlu1 %2473 }
0x1912   : > { %3549 = vpow2.f32 %v2389_v29  ;;  %v2484_v45 = vsel %vm618_vm3, %v4045_v42, %v2474_v24  ;;  %v3055_v29 = vld [vmem:[%s4222_s13 + $0x1] ss:$0 sm:$0xff] }
0x1913   : > { %v3063_v24 = vld [vmem:[%s4217_s8 + $0x1] ss:$0 sm:$0xff] }
0x1915   : > { %v2478_v44 = vpop.permute.xlu1 %2477 }
0x1916   : > { %v2485_v46 = vsel %vm1302_vm5, %v2484_v45, %v2478_v44  ;;  %v3064_v45 = vld [vmem:[%s4218_s9 + $0x1] ss:$0 sm:$0xff] }
0x191c   : > { %v3550_v30 = vpop.eup %3549 }
0x191d   : > { %v2391_v31 = vsel %vm618_vm3, %v3550_v30, 0.0 }
0x191e   : > { %2392 = vadd.xlane.f32.xlu0 %v2391_v31 }
0x1934   : > { %2396 = vrot.lane.b32.xlu0 %v4017_v19, %s4243_s24  ;;  %v2991_v19 = vld [vmem:[%s4213_s4 + $0x28] sm:$0xff] }
0x1935   : > { %v3460_v37 = vpack.c.bf16 %v2991_v19, %v2990_v36 }
0x19ab   : > { %v2393_v32 = vpop.xlane.xlu0 %2392 }
0x19ac   : > { %3551 = vrcp.f32 %v2393_v32 }
0x19af   : > { %v2397_v34 = vpop.permute.xlu0 %2396 }
0x19b0   : > { %3334 = vmatpush3.msra.mxu0 %v2397_v34 }
0x19b1   : > { %3459 = vmatprep.subr.bf16.mxu0 %v3565_v2 }
0x19b6   : > { %v3552_v33 = vpop.eup %3551 }
0x19b7   : > { %v2395_v35 = vmul.f32 %v3552_v33, %v3550_v30 }
0x19b9   : > { %3336 = vmatmul.mubr.msk.f32.vlgmr.msra.gmra.mrb[18].mxu0 %vm618_vm3, %v2395_v35 }
0x19ba   : > { %3346 = vmatprep.mubr.msk.f32.mxu0 %vm3566_vm2, %v3567_v5  ;;  %3462 = vmatpush3.bf16.xpose.msk.msra.mxu0 %vm3675_vm1, %v3460_v37 }
0x19bb   : > { %3463 = vmatprep.subr.bf16.mxu0 %v3565_v2 }
0x19c2   : > { %3466 = vmatpush3.bf16.xpose.msk.msra.mxu0 %vm3675_vm1, %v3464_v40 }
0x19c3   : > { %3483 = vmatprep.subr.bf16.mxu0 %v3565_v2 }
0x1a8c   : > { %v2468_v41 = vpop.f32.mrb[18].mxu0 }
0x1a8d   : > { %2481 = vrot.lane.b32.xlu0 %v2468_v41, %s4244_s18  ;;  %v3337_v43 = vpop.f32.mrb[19].mxu0  ;;  %s476_s18 = scalar_lea.vmem %s4223_s14, %s4245_s21 }
0x1aff   : > { %v2482_v47 = vpop.permute.xlu0 %2481 }
0x1b00   : > { %v2486_v48 = vsel %vm1304_vm6, %v2485_v46, %v2482_v47 }
0x1b01   : > { %3347 = vmatmul.mubr.msk.f32.vlgmr.msra.gmra.mrb[20].mxu0 %vm505_vm0, %v2486_v48 }
0x1b02   : > { %3376 = vmatprep.mubr.msk.f32.mxu0 %vm3566_vm2, %v3567_v5  ;;  %v3032_v5 = vld [vmem:[%s4219_s10 + $0x48] sm:$0xff]  ;;  %3486 = vmatpush3.bf16.xpose.msk.msra.mxu0 %vm3912_vm8, %v3484_v9 }
0x1b03   : > { %v3468_v56 = vpack.c.bf16 %v3032_v5, %v3031_v55  ;;  %3487 = vmatprep.subr.bf16.mxu0 %v3565_v2 }
0x1b05   : > { %3470 = vmatpush3.bf16.xpose.msk.msra.mxu1 %vm3675_vm1, %v3468_v56 }
0x1b06   : > { %3471 = vmatprep.subr.bf16.mxu1 %v3565_v2 }
0x1b0a   : > { %3490 = vmatpush3.bf16.xpose.msk.msra.mxu0 %vm3912_vm8, %v3488_v11 }
0x1bd4   : > { %v2574_v50 = vpop.f32.mrb[20].mxu0 }
0x1bd5   : > { %v2575_v52 = vadd.f32 %v3021_v49, %v2574_v50  ;;  %v3348_v53 = vpop.f32.mrb[21].mxu0 }
0x1bd7   : > { %v2582_v54 = vadd.f32 %v2575_v52, %v4008_v16  ;;  %v3033_v16 = vld [vmem:[%s4219_s10 + $0x50] sm:$0xff] }
0x1bd8   : > { %v3472_v58 = vpack.c.bf16 %v3034_v57, %v3033_v16 }
0x1bd9   : > { %v2583_v42 = vsel %vm505_vm0, %v2582_v54, 0.0 }
0x1bda   : > { %2584 = vadd.xlane.f32.xlu1 %v2583_v42  ;;  %3474 = vmatpush3.bf16.xpose.msk.msra.mxu1 %vm3675_vm1, %v3472_v58 }
0x1bdb   : > { %3475 = vmatprep.subr.bf16.mxu1 %v3565_v2 }
0x1be2   : > { %3478 = vmatpush3.bf16.xpose.msk.msra.mxu1 %vm3675_vm1, %v3476_v1 }
0x1be3   : > { %3479 = vmatprep.subr.bf16.mxu1 %v3565_v2  ;;  %v3029_v2 = vld [vmem:[%s4215_s6 + $0x1] ss:$0 sm:$0xff] }
0x1bea   : > { %3482 = vmatpush3.bf16.xpose.msk.msra.mxu1 %vm3675_vm1, %v3480_v6 }
0x1c67   : > { %v2585_v59 = vpop.xlane.xlu1 %2584 }
0x1c68   : > { %v2586_v60 = vmul.f32 0.03125, %v2585_v59 }
0x1c6a   : > { %v2587_v61 = vsub.f32 %v2582_v54, %v2586_v60 }
0x1c6c   : > { %v2588_v62 = vmul.f32 %v2587_v61, %v2587_v61 }
0x1c6e   : > { %v2589_v51 = vsel %vm505_vm0, %v2588_v62, 0.0 }
0x1c6f   : > { %2590 = vadd.xlane.f32.xlu0 %v2589_v51 }
0x1cfc   : > { %v2591_v12 = vpop.xlane.xlu0 %2590 }
0x1cfd   : > { %v2592_v13 = vmul.f32 0.03125, %v2591_v12 }
0x1cff   : > { %v2593_v14 = vadd.f32 1e-05, %v2592_v13 }
0x1d01   : > { %3553 = vrsqrt.f32 %v2593_v14 }
0x1d0b   : > { %v3554_v15 = vpop.eup %3553 }
0x1d0c   : > { %v2595_v17 = vmul.f32 %v3554_v15, %v2587_v61 }
0x1d0e   : > { %v2602_v20 = vmul.f32 %v3029_v2, %v2595_v17 }
0x1d10   : > { %v2609_v23 = vadd.f32 %v3030_v18, %v2602_v20 }
0x1d12   : > { %3366 = vmatmul.mubr.msk.f32.vlgmr.msra.gmra.mrb[22].mxu1 %vm505_vm0, %v2609_v23 }
0x1de5   : > { %v2727_v25 = vpop.f32.mrb[22].mxu1 }
0x1de6   : > { %v2728_v26 = vadd.f32 %v3045_v22, %v2727_v25  ;;  %v3367_v27 = vpop.f32.mrb[23].mxu1 }
0x1de8   : > { %v2731_v28 = vmax.f32 %v2728_v26, 0.0 }
0x1dea   : > { %3377 = vmatmul.mubr.msk.f32.vlgmr.msra.gmra.mrb[22].mxu0 %vm1552_vm7, %v2731_v28 }
0x1ebd   : > { %v2819_v30 = vpop.f32.mrb[22].mxu0 }
0x1ebe   : > { %v2820_v31 = vadd.f32 %v3055_v29, %v2819_v30  ;;  %v3378_v32 = vpop.f32.mrb[23].mxu0 }
0x1ec0   : > { %v2827_v34 = vadd.f32 %v2820_v31, %v2609_v23 }
0x1ec2   : > { %v2828_v33 = vsel %vm505_vm0, %v2827_v34, 0.0 }
0x1ec3   : > { %2829 = vadd.xlane.f32.xlu0 %v2828_v33 }
0x1f50   : > { %v2830_v35 = vpop.xlane.xlu0 %2829 }
0x1f51   : > { %v2831_v36 = vmul.f32 0.03125, %v2830_v35 }
0x1f53   : > { %v2832_v19 = vsub.f32 %v2827_v34, %v2831_v36 }
0x1f55   : > { %v2833_v37 = vmul.f32 %v2832_v19, %v2832_v19 }
0x1f57   : > { %v2834_v38 = vsel %vm505_vm0, %v2833_v37, 0.0 }
0x1f58   : > { %2835 = vadd.xlane.f32.xlu1 %v2834_v38 }
0x1fe5   : > { %v2836_v39 = vpop.xlane.xlu1 %2835 }
0x1fe6   : > { %v2837_v40 = vmul.f32 0.03125, %v2836_v39 }
0x1fe8   : > { %v2838_v41 = vadd.f32 1e-05, %v2837_v40 }
0x1fea   : > { %3555 = vrsqrt.f32 %v2838_v41 }
0x1ff4   : > { %v3556_v43 = vpop.eup %3555 }
0x1ff5   : > { %v2840_v44 = vmul.f32 %v3556_v43, %v2832_v19 }
0x1ff7   : > { %v2847_v46 = vmul.f32 %v3063_v24, %v2840_v44 }
0x1ff9   : > { %v2854_v47 = vadd.f32 %v3064_v45, %v2847_v46 }
0x1ffb   : > { %2855 = vst.msk [vmem:[%s476_s18] sm:$0xff] %vm505_vm0, %v2854_v47 }
0x1ffc PF: > { %s24_s29 = sadd.s32 1, %s3563_s29  }
0x1ffd   : > { %p21_p4 = scmp.ge.s32.totalorder %s24_s29, 4  }
0x1fff   :  { %23 = sbr.rel (!%p21_p4) target bundleno = 1 (0x1), region = 121 }

// kernel: transformer_forward.3
= control target key start
LH: loop header
LB: loop body
LE: loop exit
PB: predicated region body
PF: predicated region fallthrough
CT: control target
= control target key end

     0   :  { %s7929_s0 = inlined_call_operand.vmem [shape: f32[2,8,32], index: 0, kind: input, shape index: {}]   ;;  %s7930_s1 = inlined_call_operand.vmem [shape: f32[2,8,32], index: 1, kind: input, shape index: {}]   ;;  %s7931_s2 = inlined_call_operand.vmem [shape: f32[2,1,8], index: 2, kind: input, shape index: {}]   ;;  %s7932_s3 = inlined_call_operand.vmem [shape: f32[2,1,8], index: 3, kind: input, shape index: {}]   ;;  %s7933_s4 = inlined_call_operand.vmem [shape: f32[2,96,32], index: 4, kind: input, shape index: {}]   ;;  %s7934_s5 = inlined_call_operand.vmem [shape: f32[2,1,96], index: 5, kind: input, shape index: {}]   ;;  %s7935_s6 = inlined_call_operand.vmem [shape: f32[2,32,32], index: 6, kind: input, shape index: {}]   ;;  %s7936_s7 = inlined_call_operand.vmem [shape: f32[2,1,32], index: 7, kind: input, shape index: {}]   ;;  %s7937_s8 = inlined_call_operand.vmem [shape: f32[2,96,32], index: 8, kind: input, shape index: {}]   ;;  %s7938_s9 = inlined_call_operand.vmem [shape: f32[2,1,96], index: 9, kind: input, shape index: {}]   ;;  %s7939_s10 = inlined_call_operand.vmem [shape: f32[2,32,32], index: 10, kind: input, shape index: {}]   ;;  %s7940_s11 = inlined_call_operand.vmem [shape: f32[2,1,32], index: 11, kind: input, shape index: {}]   ;;  %s7941_s12 = inlined_call_operand.vmem [shape: f32[2,1,32], index: 12, kind: input, shape index: {}]   ;;  %s7942_s13 = inlined_call_operand.vmem [shape: f32[2,1,32], index: 13, kind: input, shape index: {}]   ;;  %s7943_s14 = inlined_call_operand.vmem [shape: f32[2,1,32], index: 14, kind: input, shape index: {}]   ;;  %s7944_s15 = inlined_call_operand.vmem [shape: f32[2,1,32], index: 15, kind: input, shape index: {}]   ;;  %s7945_s16 = inlined_call_operand.vmem [shape: f32[2,1,32], index: 16, kind: input, shape index: {}]   ;;  %s7946_s17 = inlined_call_operand.vmem [shape: f32[2,1,32], index: 17, kind: input, shape index: {}]   ;;  %s7947_s18 = inlined_call_operand.vmem [shape: f32[2,64,32], index: 18, kind: input, shape index: {}]   ;;  %s7948_s19 = inlined_call_operand.vmem [shape: f32[2,1,64], index: 19, kind: input, shape index: {}]   ;;  %s7949_s20 = inlined_call_operand.vmem [shape: f32[2,32,64], index: 20, kind: input, shape index: {}]   ;;  %s7950_s21 = inlined_call_operand.vmem [shape: f32[2,1,32], index: 21, kind: input, shape index: {}]   ;;  %s7951_s22 = inlined_call_operand.vmem [shape: f32[16,32], index: 22, kind: input, shape index: {}]   ;;  %s7952_s23 = inlined_call_operand.vmem [shape: f32[1,16], index: 23, kind: input, shape index: {}]   ;;  %s7953_s24 = inlined_call_operand.hbm [shape: f32[2,8,16], index: 24, kind: output, shape index: {0}]   ;;  %s7954_s25 = inlined_call_operand.hbm [shape: f32[2,4,8,8], index: 25, kind: output, shape index: {1}]  }
   0x1   :  { %8004 = sst [smem:[#allocation17_spill]] %s7929_s0 }
   0x2   :  { %8005 = sst [smem:[#allocation18_spill]] %s7930_s1 }
   0x3   :  { %8006 = sst [smem:[#allocation19_spill]] %s7931_s2 }
   0x4   :  { %8007 = sst [smem:[#allocation20_spill]] %s7932_s3 }
   0x5   :  { %8008 = sst [smem:[#allocation21_spill]] %s7933_s4 }
   0x6   :  { %8009 = sst [smem:[#allocation22_spill]] %s7934_s5 }
   0x7   :  { %8010 = sst [smem:[#allocation23_spill]] %s7935_s6 }
   0x8   :  { %8011 = sst [smem:[#allocation24_spill]] %s7936_s7 }
   0x9   :  { %8012 = sst [smem:[#allocation25_spill]] %s7937_s8 }
   0xa   :  { %8013 = sst [smem:[#allocation26_spill]] %s7938_s9 }
   0xb   :  { %8014 = sst [smem:[#allocation27_spill]] %s7939_s10 }
   0xc   :  { %8015 = sst [smem:[#allocation28_spill]] %s7940_s11 }
   0xd   :  { %8016 = sst [smem:[#allocation29_spill]] %s7941_s12 }
   0xe   :  { %8017 = sst [smem:[#allocation30_spill]] %s7942_s13 }
   0xf   :  { %8018 = sst [smem:[#allocation31_spill]] %s7951_s22 }
  0x10   :  { %8019 = sst [smem:[#allocation32_spill]] %s7952_s23 }
  0x11   :  { %8020 = sst [smem:[#allocation33_spill]] %s7953_s24 }
  0x12   :  { %8021 = sst [smem:[#allocation34_spill]] %s7954_s25 }
  0x13   :  { %31 = vsyncpa [#allocation3], 0 }
  0x14   :  { %33 = vsyncpa [#allocation3 + $0x1], 0 }
  0x15   :  { %34 = vsyncpa [#allocation5], 0 }
  0x16   :  { %36 = vsyncpa [#allocation5 + $0x1], 0  ;;  %s6862_s29 = smov 0   ;;  %s6864_s2 = smov 0  }
  0x17   :  { %s6866_s6 = smov 0   ;;  %s6868_s30 = smov 0  }
  0x18 LB: > { %8022 = sst [smem:[#allocation8_spill]] %s6696_s29  ;;  %s6883_s7 = sadd.s32 4294967295, %s6708_s30   ;;  %s6708_s30 = sphi %s6868_s30, %s8082_s30   ;;  %s6704_s6 = sphi %s6866_s6, %s8085_s6   ;;  %s6700_s2 = sphi %s6864_s2, %s8084_s2   ;;  %s6696_s29 = sphi %s6862_s29, %s8083_s29  }
  0x19   : > { %8023 = sst [smem:[#allocation9_spill]] %s6700_s2  ;;  %s5487_s3 = sadd.s32 4294967294, %s6708_s30  }
  0x1a   : > { %8024 = sst [smem:[#allocation10_spill]] %s6704_s6  ;;  %s6887_s26 = sadd.s32 1, %s6708_s30  }
  0x1b   : > { %8025 = sst [smem:[#allocation11_spill]] %s6708_s30  ;;  %s573_s1 = sadd.s32 1, %s6704_s6 }
  0x1c   : > { %8026 = sst [smem:[#allocation12_spill]] %s6883_s7  ;;  %s570_s8 = ssub.s32 %s6708_s30, %s6887_s26 }
  0x1d   : > { %8027 = sst [smem:[#allocation13_spill]] %s6887_s26  ;;  %p583_p0 = scmp.ne.s32.totalorder %s6704_s6, %s6700_s2 }
  0x1e   : > { %p571_p1 = scmp.eq.s32.totalorder %s570_s8, 0  ;;  %p584_p2 = scmp.eq.s32.totalorder %s6883_s7, 1 }
  0x1f   : > { %p589_p3 = scmp.ne.s32.totalorder %s6700_s2, %s6696_s29  ;;  %p590_p4 = scmp.eq.s32.totalorder %s5487_s3, 1 }
  0x20   : > { %s6898_s27 = scalar_select %p571_p1, %s6704_s6, %s573_s1  }
  0x21   : > { %p6900_p5 = por %p584_p2, %p583_p0  ;;  %p6904_p6 = por %p590_p4, %p589_p3 }
  0x22   : > { %8028 = sst [smem:[#allocation14_spill]] %s6898_s27  ;;  %p5490_p7 = scmp.ge.s32.totalorder %s6708_s30, 1 }
  0x23   : > { %s8029_s4 = scalar_select %p6900_p5, 1, 0 }
  0x24   : > { %s8031_s28 = scalar_select %p6904_p6, 1, 0 }
  0x25   : > { %8030 = sst [smem:[#allocation15_spill]] %s8029_s4  ;;  %p720_p8 = scmp.lt.s32.totalorder %s6708_s30, 3 }
  0x26   : > { %8032 = sst [smem:[#allocation16_spill]] %s8031_s28 }
  0x27   : > { %p721_p9 = pnand %p5490_p7, %p720_p8 }
  0x28   : > { %s8033_s0 = sld [smem:[#allocation21_spill]] (!%p721_p9)  ;;  %vm860_vm0 = vcmask (!%p721_p9), 261120   ;;  %v822_v2 = vlaneseq (!%p721_p9)  ;;  %v6710_v3 = vmov (!%p721_p9), 0.0|0.0   ;;  %p802_p10 = scmp.lt.s32.totalorder (!%p721_p9), %s6883_s7, 1  ;;  %vm6711_vm2 = vmmov (!%p721_p9), 0  }
  0x29   : > { %724 = sbr.rel (%p721_p9) target bundleno = 13802 (0x35ea), region = 116  ;;  %6294 = vmatprep.subr.bf16.mxu0 (!%p721_p9), %v6710_v3  ;;  %vm6919_vm1 = vmpackc.low (!%p721_p9), %vm860_vm0, %vm860_vm0  ;;  %v6712_v6 = vmov (!%p721_p9), 0.0   ;;  %s8036_s26 = sld [smem:[#allocation19_spill]] (!%p721_p9)  ;;  %v6713_v13 = vmov (!%p721_p9), -1e+09   ;;  %vm973_vm4 = vcmask (!%p721_p9), 64512  }
  0x2a   : > { %5933 = vmatprep.mubr.msk.f32.mxu0 (!%p721_p9), %vm6711_vm2, %v6712_v6  ;;  %5936 = vmatprep.subr.mxu1 (!%p721_p9), %v6712_v6  ;;  %v6933_v7 = vshrl.u32 (!%p721_p9), %v822_v2, 7  ;;  %s8038_s3 = sld [smem:[#allocation22_spill]] (!%p721_p9)  ;;  %s7967_s1 = smov (!%p721_p9), 64   ;;  %v6717_v36 = vmov (!%p721_p9), 0   ;;  %v825_v38 = vand.u32 (!%p721_p9), 127, %v822_v2  ;;  %vm1651_vm9 = vcmask (!%p721_p9), 130048  }
  0x2b   : > { %5938 = vmatprep.mubr.msk.f32.mxu1 (!%p721_p9), %vm6711_vm2, %v6712_v6  ;;  %s7978_s5 = smov (!%p721_p9), 88   ;;  %s8039_s27 = sld [smem:[#allocation20_spill]] (!%p721_p9)  ;;  %vm1653_vm10 = vcmask (!%p721_p9), 195584   ;;  %vm2918_vm11 = vcmask (!%p721_p9), 523264  }
  0x2c   : > { %v831_v12 = vsub.s32 (!%p721_p9), 0, %v6933_v7  ;;  %vm826_vm6 = vcmp.ge.s32.totalorder (!%p721_p9), %v6933_v7, %v825_v38  ;;  %s7966_s6 = smov (!%p721_p9), 56   ;;  %s8047_s23 = smov (!%p721_p9), 96   ;;  %vm7351_vm12 = vmpackc.low (!%p721_p9), %vm2918_vm11, %vm2918_vm11 }
  0x2d   : > { %s8048_s12 = sld [smem:[#allocation29_spill]] (!%p721_p9)  ;;  %s8049_s13 = sld [smem:[#allocation30_spill]] (!%p721_p9) }
  0x2e   : > { %v836_v0 = vld [vmem:[%s8033_s0] sm:$0xff] (!%p721_p9)  ;;  %v837_v1 = vld [vmem:[%s8033_s0 + $0x8] sm:$0xff] (!%p721_p9)  ;;  %v838_v8 = vld [vmem:[%s8033_s0 + $0x10] sm:$0xff] (!%p721_p9)  ;;  %s8052_s24 = smov (!%p721_p9), 112   ;;  %s8055_s4 = smov (!%p721_p9), 80  }
  0x2f   : > { %v6295_v4 = vpack.c.bf16 (!%p721_p9), %v837_v1, %v836_v0  ;;  %v839_v9 = vld [vmem:[%s8033_s0 + $0x18] sm:$0xff] (!%p721_p9)  ;;  %v840_v16 = vld [vmem:[%s8033_s0 + $0x20] sm:$0xff] (!%p721_p9)  ;;  %v841_v17 = vld [vmem:[%s8033_s0 + $0x28] sm:$0xff] (!%p721_p9)  ;;  %s8057_s10 = sld [smem:[#allocation27_spill]] (!%p721_p9)  ;;  %s8058_s22 = smov (!%p721_p9), 16  }
  0x30   : > { %s6930_s8 = scalar_select %p802_p10, %s6883_s7, 1  ;;  %v6299_v11 = vpack.c.bf16 %v839_v9, %v838_v8  ;;  %v6303_v18 = vpack.c.bf16 %v841_v17, %v840_v16  ;;  %v842_v19 = vld [vmem:[%s8033_s0 + $0x30] sm:$0xff]  ;;  %v843_v20 = vld [vmem:[%s8033_s0 + $0x38] sm:$0xff]  ;;  %v844_v22 = vld [vmem:[%s8033_s0 + $0x40] sm:$0xff] }
  0x31   : > { %6297 = vmatpush3.bf16.xpose.msk.msra.mxu0 %vm6919_vm1, %v6295_v4  ;;  %v6307_v21 = vpack.c.bf16 %v843_v20, %v842_v19  ;;  %v845_v23 = vld [vmem:[%s8033_s0 + $0x48] sm:$0xff]  ;;  %v846_v25 = vld [vmem:[%s8033_s0 + $0x50] sm:$0xff]  ;;  %v847_v26 = vld [vmem:[%s8033_s0 + $0x58] sm:$0xff]  ;;  %s8054_s7 = smov 72   ;;  %s8060_s11 = sld [smem:[#allocation28_spill]] }
  0x32   : > { %6298 = vmatprep.subr.bf16.mxu0 %v6710_v3  ;;  %s812_s28 = scalar_lea.vmem %s8036_s26, %s6930_s8  ;;  %v6311_v24 = vpack.c.bf16 %v845_v23, %v844_v22  ;;  %v6315_v27 = vpack.c.bf16 %v847_v26, %v846_v25  ;;  %s7988_s9 = sshll.u32 %s6930_s8, 3  ;;  %v5495_v29 = vld [vmem:[%s8038_s3] ss:$0 sm:$0xff] }
  0x33   : > { %v818_v10 = vld [vmem:[%s812_s28] sm:$0x1]  ;;  %s8037_s26 = sld [smem:[#allocation17_spill]]  ;;  %s815_s28 = scalar_lea.vmem %s8039_s27, %s6930_s8 }
  0x34   : > { %vm820_vm3 = vcmp.gt.f32.partialorder %v818_v10, 0.5  ;;  %v819_v35 = vld [vmem:[%s815_s28] sm:$0x1]  ;;  %s7982_s27 = smov 120   ;;  %s7976_s28 = smov 112  }
  0x35   : > { %v821_v14 = vsel %vm820_vm3, 0.0, %v6713_v13  ;;  %vm827_vm5 = vcmp.gt.f32.partialorder %v819_v35, 0.5  ;;  %s8065_s2 = smov 48  }
  0x36   : > { %v6949_v15 = vrot.slane %v821_v14, %v831_v12  ;;  %v828_v37 = vsel %vm827_vm5, 1, %v6717_v36 }
  0x37   : > { %v832_v39 = vrot.slane %v828_v37, %v831_v12 }
  0x39   : > { %6301 = vmatpush3.bf16.xpose.msk.msra.mxu0 %vm6919_vm1, %v6299_v11  ;;  %s805_s29 = scalar_lea.vmem %s8037_s26, %s7988_s9  ;;  %vm833_vm7 = vcmp.eq.s32.totalorder %v832_v39, 1  ;;  %s7968_s26 = smov 80  }
  0x3a   : > { %6302 = vmatprep.subr.bf16.mxu0 %v6710_v3  ;;  %v6996_v28 = vld [vmem:[%s805_s29] sm:$0xff]  ;;  %s7986_s29 = smov 96   ;;  %vm834_vm8 = vmand %vm826_vm6, %vm833_vm7  ;;  %s8050_s9 = smov 120  }
  0x3b   : > { %v7026_v40 = vsel %vm834_vm8, 0.0, %v6713_v13 }
  0x41   : > { %6305 = vmatpush3.bf16.xpose.msk.msra.mxu0 %vm6919_vm1, %v6303_v18 }
  0x42   : > { %6306 = vmatprep.subr.bf16.mxu0 %v6710_v3 }
  0x49   : > { %6309 = vmatpush3.bf16.xpose.msk.msra.mxu0 %vm6919_vm1, %v6307_v21 }
  0x4a   : > { %6310 = vmatprep.subr.bf16.mxu0 %v6710_v3 }
  0x51   : > { %6313 = vmatpush3.bf16.xpose.msk.msra.mxu0 %vm6919_vm1, %v6311_v24 }
  0x52   : > { %6314 = vmatprep.subr.bf16.mxu0 %v6710_v3 }
  0x59   : > { %6317 = vmatpush3.bf16.xpose.msk.msra.mxu0 %vm6919_vm1, %v6315_v27 }
  0x5a   : > { %6326 = vmatprep.subr.bf16.mxu0 %v6710_v3 }
  0x60   : > { %5934 = vmatmul.mubr.msk.f32.vlgmr.msra.gmra.mrb[0].mxu0 %vm860_vm0, %v6996_v28 }
  0x61   : > { %5995 = vmatprep.mubr.msk.f32.mxu0 %vm6711_vm2, %v6712_v6 }
 0x133   : > { %v966_v30 = vpop.f32.mrb[0].mxu0 }
 0x134   : > { %v7005_v31 = vadd.f32 %v5495_v29, %v966_v30  ;;  %v5935_v32 = vpop.f32.mrb[1].mxu0 }
 0x136   : > { %1061 = vrot.lane.b32.xlu1 %v7005_v31, %s7967_s1  ;;  %971 = vrot.lane.b32.xlu0 %v7005_v31, %s7986_s29  ;;  %s7971_s1 = smov 72   ;;  %s8041_s29 = sld [smem:[#allocation24_spill]] }
 0x13a   : > { %1139 = vrot.lane.b32.xlu1 %v7005_v31, %s7978_s5  ;;  %s8040_s5 = sld [smem:[#allocation23_spill]] }
 0x1a8   : > { %v972_v33 = vpop.permute.xlu0 %971  ;;  %v1062_v34 = vpop.permute.xlu1 %1061 }
 0x1a9   : > { %5937 = vmatpush3.xpose.msk.msra.mxu1 %vm973_vm4, %v972_v33 }
 0x1aa   : > { %5941 = vmatprep.subr.mxu1 %v6712_v6 }
 0x1ac   : > { %5939 = vmatmul.mubr.msk.f32.vlgmr.msra.gmra.mrb[0].mxu1 %vm973_vm4, %v7005_v31  ;;  %v1140_v51 = vpop.permute.xlu1 %1139 }
 0x1ad   : > { %5942 = vmatpush3.msra.mxu1 %v1062_v34  ;;  %5943 = vmatprep.mubr.msk.f32.mxu1 %vm6711_vm2, %v6712_v6 }
 0x1ae   : > { %5946 = vmatprep.subr.mxu1 %v6712_v6 }
 0x27f   : > { %v1044_v41 = vpop.f32.mrb[0].mxu1 }
 0x280   : > { %v1048_v42 = vmul.f32 0.35355338, %v1044_v41  ;;  %v5940_v43 = vpop.f32.mrb[1].mxu1 }
 0x282   : > { %v1049_v44 = vadd.f32 %v1048_v42, %v7026_v40 }
 0x284   : > { %v1050_v45 = vsel %vm973_vm4, %v1049_v44, -inf }
 0x285   : > { %1051 = vmax.xlane.f32.xlu0 %v1050_v45 }
 0x29b   : > { %1228 = vrot.lane.b32.xlu0 %v7005_v31, %s7966_s6  ;;  %s7970_s6 = smov 48  }
 0x29f   : > { %1306 = vrot.lane.b32.xlu0 %v7005_v31, %s7968_s26  ;;  %s7973_s26 = smov 104  }
 0x312   : > { %v1052_v46 = vpop.xlane.xlu0 %1051 }
 0x313   : > { %v1053_v47 = vsub.f32 %v1049_v44, %v1052_v46 }
 0x315   : > { %v1054_v48 = vmul.f32 1.442695, %v1053_v47 }
 0x316   : > { %v1229_v56 = vpop.permute.xlu0 %1228 }
 0x317   : > { %6538 = vpow2.f32 %v1054_v48 }
 0x31a   : > { %v1307_v8 = vpop.permute.xlu0 %1306 }
 0x321   : > { %v6539_v49 = vpop.eup %6538 }
 0x322   : > { %v1056_v50 = vsel %vm973_vm4, %v6539_v49, 0.0 }
 0x323   : > { %1057 = vadd.xlane.f32.xlu1 %v1056_v50 }
 0x334   : > { %1137 = vrot.lane.b32.xlu1 %v7005_v31, %s7982_s27  ;;  %s8044_s27 = sshll.u32 %s6930_s8, 3  ;;  %s8046_s8 = sld [smem:[#allocation26_spill]] }
 0x3b0   : > { %v1058_v52 = vpop.xlane.xlu1 %1057 }
 0x3b1   : > { %6540 = vrcp.f32 %v1058_v52 }
 0x3b4   : > { %v1138_v55 = vpop.permute.xlu1 %1137 }
 0x3bb   : > { %v6541_v53 = vpop.eup %6540 }
 0x3bc   : > { %v1060_v54 = vmul.f32 %v6541_v53, %v6539_v49  ;;  %v851_v53 = vld [vmem:[%s8040_s5 + $0x10] sm:$0xff] }
 0x3be   : > { %5944 = vmatmul.mubr.msk.f32.vlgmr.msra.gmra.mrb[2].mxu1 %vm973_vm4, %v1060_v54  ;;  %v852_v54 = vld [vmem:[%s8040_s5 + $0x18] sm:$0xff] }
 0x3bf   : > { %5947 = vmatpush3.xpose.msk.msra.mxu1 %vm973_vm4, %v1140_v51  ;;  %5948 = vmatprep.mubr.msk.f32.mxu1 %vm6711_vm2, %v6712_v6  ;;  %v850_v51 = vld [vmem:[%s8040_s5 + $0x8] sm:$0xff] }
 0x3c0   : > { %5951 = vmatprep.subr.mxu1 %v6712_v6 }
 0x3c2   : > { %5949 = vmatmul.mubr.msk.f32.vlgmr.msra.gmra.mrb[4].mxu1 %vm973_vm4, %v1138_v55  ;;  %v6323_v55 = vpack.c.bf16 %v852_v54, %v851_v53 }
 0x3c3   : > { %5952 = vmatpush3.msra.mxu1 %v1229_v56  ;;  %5953 = vmatprep.mubr.msk.f32.mxu1 %vm6711_vm2, %v6712_v6 }
 0x3c4   : > { %5956 = vmatprep.subr.mxu1 %v6712_v6 }
 0x491   : > { %v7046_v57 = vpop.f32.mrb[2].mxu1 }
 0x492   : > { %v5945_v58 = vpop.f32.mrb[3].mxu1 }
 0x495   : > { %v1211_v59 = vpop.f32.mrb[4].mxu1 }
 0x496   : > { %v1215_v60 = vmul.f32 0.35355338, %v1211_v59  ;;  %v5950_v61 = vpop.f32.mrb[5].mxu1 }
 0x498   : > { %v1216_v62 = vadd.f32 %v1215_v60, %v7026_v40 }
 0x49a   : > { %v1217_v63 = vsel %vm973_vm4, %v1216_v62, -inf }
 0x49b   : > { %1218 = vmax.xlane.f32.xlu1 %v1217_v63 }
 0x528   : > { %v1219_v0 = vpop.xlane.xlu1 %1218 }
 0x529   : > { %v1220_v1 = vsub.f32 %v1216_v62, %v1219_v0 }
 0x52b   : > { %v1221_v2 = vmul.f32 1.442695, %v1220_v1  ;;  %v5521_v1 = vld [vmem:[%s8041_s29] ss:$0 sm:$0xff] }
 0x52d   : > { %6542 = vpow2.f32 %v1221_v2 }
 0x537   : > { %v6543_v4 = vpop.eup %6542 }
 0x538   : > { %v1223_v7 = vsel %vm973_vm4, %v6543_v4, 0.0 }
 0x539   : > { %1224 = vadd.xlane.f32.xlu0 %v1223_v7 }
 0x54f   : > { %1304 = vrot.lane.b32.xlu0 %v7005_v31, %s7976_s28  ;;  %s8043_s28 = sld [smem:[#allocation25_spill]] }
 0x5c6   : > { %v1225_v9 = vpop.xlane.xlu0 %1224 }
 0x5c7   : > { %6544 = vrcp.f32 %v1225_v9  ;;  %v1781_v9 = vld [vmem:[%s8043_s28 + $0x20] sm:$0xff] }
 0x5ca   : > { %v1305_v12 = vpop.permute.xlu0 %1304 }
 0x5d1   : > { %v6545_v10 = vpop.eup %6544 }
 0x5d2   : > { %v1227_v11 = vmul.f32 %v6545_v10, %v6543_v4  ;;  %v1782_v10 = vld [vmem:[%s8043_s28 + $0x28] sm:$0xff] }
 0x5d4   : > { %5954 = vmatmul.mubr.msk.f32.vlgmr.msra.gmra.mrb[6].mxu1 %vm973_vm4, %v1227_v11  ;;  %v6335_v11 = vpack.c.bf16 %v1782_v10, %v1781_v9 }
 0x5d5   : > { %5957 = vmatpush3.xpose.msk.msra.mxu1 %vm973_vm4, %v1307_v8  ;;  %5958 = vmatprep.mubr.msk.f32.mxu1 %vm6711_vm2, %v6712_v6 }
 0x5d6   : > { %5961 = vmatprep.subr.mxu1 %v6712_v6 }
 0x5d8   : > { %5959 = vmatmul.mubr.msk.f32.vlgmr.msra.gmra.mrb[8].mxu1 %vm973_vm4, %v1305_v12  ;;  %v1784_v12 = vld [vmem:[%s8043_s28 + $0x38] sm:$0xff] }
 0x5d9   : > { %5963 = vmatprep.mubr.msk.f32.mxu1 %vm6711_vm2, %v6712_v6 }
 0x6a7   : > { %v1300_v13 = vpop.f32.mrb[6].mxu1 }
 0x6a8   : > { %v5955_v14 = vpop.f32.mrb[7].mxu1 }
 0x6ab   : > { %v1378_v16 = vpop.f32.mrb[8].mxu1 }
 0x6ac   : > { %v1382_v17 = vmul.f32 0.35355338, %v1378_v16  ;;  %v5960_v18 = vpop.f32.mrb[9].mxu1 }
 0x6ae   : > { %v1383_v19 = vadd.f32 %v1382_v17, %v7026_v40 }
 0x6b0   : > { %v1384_v20 = vsel %vm973_vm4, %v1383_v19, -inf }
 0x6b1   : > { %1385 = vmax.xlane.f32.xlu1 %v1384_v20  ;;  %v1785_v20 = vld [vmem:[%s8043_s28 + $0x40] sm:$0xff] }
 0x6c2   : > { %1395 = vrot.lane.b32.xlu1 %v7005_v31, %s7970_s6  ;;  %s7975_s6 = smov 40  }
 0x6c6   : > { %1473 = vrot.lane.b32.xlu1 %v7005_v31, %s7971_s1  ;;  %s7980_s1 = smov 8  }
 0x6ca   : > { %1471 = vrot.lane.b32.xlu1 %v7005_v31, %s7973_s26  ;;  %s7984_s26 = smov 16  }
 0x73e   : > { %v1386_v21 = vpop.xlane.xlu1 %1385 }
 0x73f   : > { %v1387_v22 = vsub.f32 %v1383_v19, %v1386_v21  ;;  %v1786_v21 = vld [vmem:[%s8043_s28 + $0x48] sm:$0xff] }
 0x741   : > { %v1388_v23 = vmul.f32 1.442695, %v1387_v22  ;;  %v6343_v22 = vpack.c.bf16 %v1786_v21, %v1785_v20 }
 0x742   : > { %v1396_v24 = vpop.permute.xlu1 %1395 }
 0x743   : > { %6546 = vpow2.f32 %v1388_v23  ;;  %5962 = vmatpush3.msra.mxu1 %v1396_v24  ;;  %v1777_v23 = vld [vmem:[%s8043_s28] sm:$0xff]  ;;  %v1778_v24 = vld [vmem:[%s8043_s28 + $0x8] sm:$0xff] }
 0x744   : > { %5966 = vmatprep.subr.mxu1 %v6712_v6 }
 0x746   : > { %v1474_v30 = vpop.permute.xlu1 %1473 }
 0x74a   : > { %v1472_v33 = vpop.permute.xlu1 %1471 }
 0x74d   : > { %v6547_v25 = vpop.eup %6546 }
 0x74e   : > { %v1390_v26 = vsel %vm973_vm4, %v6547_v25, 0.0 }
 0x74f   : > { %1391 = vadd.xlane.f32.xlu0 %v1390_v26  ;;  %v1787_v26 = vld [vmem:[%s8043_s28 + $0x50] sm:$0xff] }
 0x7dc   : > { %v1392_v27 = vpop.xlane.xlu0 %1391 }
 0x7dd   : > { %6548 = vrcp.f32 %v1392_v27  ;;  %v1788_v27 = vld [vmem:[%s8043_s28 + $0x58] sm:$0xff] }
 0x7e7   : > { %v6549_v29 = vpop.eup %6548 }
 0x7e8   : > { %v1394_v32 = vmul.f32 %v6549_v29, %v6547_v25  ;;  %v6327_v25 = vpack.c.bf16 %v1778_v24, %v1777_v23  ;;  %v6347_v29 = vpack.c.bf16 %v1788_v27, %v1787_v26 }
 0x7ea   : > { %5964 = vmatmul.mubr.msk.f32.vlgmr.msra.gmra.mrb[10].mxu1 %vm973_vm4, %v1394_v32  ;;  %6329 = vmatpush3.bf16.xpose.msk.msra.mxu0 %vm6919_vm1, %v6327_v25  ;;  %v1780_v32 = vld [vmem:[%s8043_s28 + $0x18] sm:$0xff] }
 0x7eb   : > { %5967 = vmatpush3.xpose.msk.msra.mxu1 %vm973_vm4, %v1474_v30  ;;  %5968 = vmatprep.mubr.msk.f32.mxu1 %vm6711_vm2, %v6712_v6  ;;  %v1779_v30 = vld [vmem:[%s8043_s28 + $0x10] sm:$0xff] }
 0x7ec   : > { %5971 = vmatprep.subr.mxu1 %v6712_v6  ;;  %6330 = vmatprep.subr.bf16.mxu0 %v6710_v3 }
 0x7ee   : > { %5969 = vmatmul.mubr.msk.f32.vlgmr.msra.gmra.mrb[12].mxu1 %vm973_vm4, %v1472_v33  ;;  %v6331_v33 = vpack.c.bf16 %v1780_v32, %v1779_v30 }
 0x7ef   : > { %5973 = vmatprep.mubr.msk.f32.mxu1 %vm6711_vm2, %v6712_v6 }
 0x7f2   : > { %6333 = vmatpush3.bf16.xpose.msk.msra.mxu0 %vm6919_vm1, %v6331_v33 }
 0x7f3   : > { %6022 = vmatprep.subr.mxu0 %v6712_v6 }
 0x8bd   : > { %v1467_v34 = vpop.f32.mrb[10].mxu1 }
 0x8be   : > { %v5965_v35 = vpop.f32.mrb[11].mxu1 }
 0x8bf   : > { %v5529_v35 = vld [vmem:[%s8046_s8] ss:$0 sm:$0xff]  ;;  %s8066_s8 = smov 40  }
 0x8c1   : > { %v1545_v36 = vpop.f32.mrb[12].mxu1 }
 0x8c2   : > { %v1549_v37 = vmul.f32 0.35355338, %v1545_v36  ;;  %v5970_v38 = vpop.f32.mrb[13].mxu1 }
 0x8c4   : > { %v1550_v39 = vadd.f32 %v1549_v37, %v7026_v40 }
 0x8c6   : > { %v1551_v41 = vsel %vm973_vm4, %v1550_v39, -inf }
 0x8c7   : > { %1552 = vmax.xlane.f32.xlu1 %v1551_v41  ;;  %v5527_v41 = vld [vmem:[%s8048_s12] ss:$0 sm:$0xff]  ;;  %s8063_s12 = smov 64  }
 0x954   : > { %v1553_v42 = vpop.xlane.xlu1 %1552 }
 0x955   : > { %v1554_v43 = vsub.f32 %v1550_v39, %v1553_v42 }
 0x957   : > { %v1555_v44 = vmul.f32 1.442695, %v1554_v43  ;;  %v5528_v43 = vld [vmem:[%s8049_s13] ss:$0 sm:$0xff]  ;;  %s8064_s13 = smov 56  }
 0x959   : > { %6550 = vpow2.f32 %v1555_v44 }
 0x963   : > { %v6551_v45 = vpop.eup %6550 }
 0x964   : > { %v1557_v46 = vsel %vm973_vm4, %v6551_v45, 0.0 }
 0x965   : > { %1558 = vadd.xlane.f32.xlu0 %v1557_v46 }
 0x97b   : > { %1562 = vrot.lane.b32.xlu0 %v7005_v31, %s7975_s6  ;;  %v849_v31 = vld [vmem:[%s8040_s5] sm:$0xff]  ;;  %s8059_s6 = smov 24  }
 0x97c   : > { %v6319_v52 = vpack.c.bf16 %v850_v51, %v849_v31 }
 0x97f   : > { %1639 = vrot.lane.b32.xlu0 %v1300_v13, %s7980_s1  ;;  %s7990_s1 = smov 24  }
 0x983   : > { %1643 = vrot.lane.b32.xlu0 %v1467_v34, %s7984_s26  ;;  %s8042_s26 = smov %s8041_s29  ;;  %s8045_s29 = sld [smem:[#allocation18_spill]] }
 0x989   : > { %s809_s25 = scalar_lea.vmem %s8045_s29, %s8044_s27  ;;  %s8051_s29 = smov 88  }
 0x98a   : > { %v7180_v34 = vld [vmem:[%s809_s25] sm:$0xff]  ;;  %s8056_s25 = smov 8   ;;  %s8072_s27 = sld [smem:[#allocation28_spill]] }
 0x9f2   : > { %v1559_v47 = vpop.xlane.xlu0 %1558 }
 0x9f3   : > { %6552 = vrcp.f32 %v1559_v47 }
 0x9f6   : > { %v1563_v48 = vpop.permute.xlu0 %1562 }
 0x9f7   : > { %5972 = vmatpush3.msra.mxu1 %v1563_v48 }
 0x9f8   : > { %6318 = vmatprep.subr.bf16.mxu1 %v6710_v3 }
 0x9fa   : > { %v1640_v59 = vpop.permute.xlu0 %1639 }
 0x9fb   : > { %v1650_v61 = vsel %vm973_vm4, %v7046_v57, %v1640_v59 }
 0x9fd   : > { %v6553_v49 = vpop.eup %6552 }
 0x9fe   : > { %v1561_v50 = vmul.f32 %v6553_v49, %v6551_v45  ;;  %v1644_v60 = vpop.permute.xlu0 %1643 }
 0x9ff   : > { %v1652_v62 = vsel %vm1651_vm9, %v1650_v61, %v1644_v60 }
 0xa00   : > { %5974 = vmatmul.mubr.msk.f32.vlgmr.msra.gmra.mrb[14].mxu1 %vm973_vm4, %v1561_v50 }
 0xa01   : > { %5984 = vmatprep.mubr.msk.f32.mxu1 %vm6711_vm2, %v6712_v6  ;;  %6321 = vmatpush3.bf16.xpose.msk.msra.mxu1 %vm6919_vm1, %v6319_v52 }
 0xa02   : > { %6322 = vmatprep.subr.bf16.mxu1 %v6710_v3 }
 0xa09   : > { %6325 = vmatpush3.bf16.xpose.msk.msra.mxu1 %vm6919_vm1, %v6323_v55 }
 0xa0a   : > { %6334 = vmatprep.subr.bf16.mxu1 %v6710_v3 }
 0xad3   : > { %v1634_v56 = vpop.f32.mrb[14].mxu1 }
 0xad4   : > { %1647 = vrot.lane.b32.xlu1 %v1634_v56, %s7990_s1  ;;  %v5975_v58 = vpop.f32.mrb[15].mxu1  ;;  %s8053_s1 = smov 104  }
 0xb46   : > { %v1648_v63 = vpop.permute.xlu1 %1647 }
 0xb47   : > { %v1654_v0 = vsel %vm1653_vm10, %v1652_v62, %v1648_v63 }
 0xb48   : > { %5985 = vmatmul.mubr.msk.f32.vlgmr.msra.gmra.mrb[16].mxu1 %vm860_vm0, %v1654_v0 }
 0xb49   : > { %6014 = vmatprep.mubr.msk.f32.mxu1 %vm6711_vm2, %v6712_v6  ;;  %6337 = vmatpush3.bf16.xpose.msk.msra.mxu1 %vm6919_vm1, %v6335_v11 }
 0xb4a   : > { %6338 = vmatprep.subr.bf16.mxu1 %v6710_v3 }
 0xc1b   : > { %v1742_v2 = vpop.f32.mrb[16].mxu1 }
 0xc1c   : > { %v1743_v4 = vadd.f32 %v5521_v1, %v1742_v2  ;;  %v5986_v7 = vpop.f32.mrb[17].mxu1 }
 0xc1e   : > { %v1748_v8 = vadd.f32 %v1743_v4, %v6996_v28  ;;  %v1783_v28 = vld [vmem:[%s8043_s28 + $0x30] sm:$0xff] }
 0xc1f   : > { %v6339_v13 = vpack.c.bf16 %v1784_v12, %v1783_v28 }
 0xc20   : > { %v1749_v57 = vsel %vm860_vm0, %v1748_v8, 0.0 }
 0xc21   : > { %1750 = vadd.xlane.f32.xlu0 %v1749_v57  ;;  %6341 = vmatpush3.bf16.xpose.msk.msra.mxu1 %vm6919_vm1, %v6339_v13 }
 0xc22   : > { %6342 = vmatprep.subr.bf16.mxu1 %v6710_v3 }
 0xc29   : > { %6345 = vmatpush3.bf16.xpose.msk.msra.mxu1 %vm6919_vm1, %v6343_v22 }
 0xc2a   : > { %6346 = vmatprep.subr.bf16.mxu1 %v6710_v3 }
 0xc31   : > { %6349 = vmatpush3.bf16.xpose.msk.msra.mxu1 %vm6919_vm1, %v6347_v29 }
 0xc32   : > { %6017 = vmatprep.subr.mxu1 %v6712_v6 }
 0xc37   : > { %1886 = vrot.lane.b32.xlu0 %v5529_v35, %s8047_s23 }
 0xc38   : > { %6015 = vmatmul.mubr.msk.f32.vlgmr.msra.gmra.mrb[18].mxu1 %vm860_vm0, %v7180_v34 }
 0xc39   : > { %6019 = vmatprep.mubr.msk.f32.mxu1 %vm6711_vm2, %v6712_v6 }
 0xcae   : > { %v1751_v14 = vpop.xlane.xlu0 %1750 }
 0xcaf   : > { %v1753_v16 = vmul.f32 0.03125, %v1751_v14 }
 0xcb1   : > { %v1754_v17 = vsub.f32 %v1748_v8, %v1753_v16 }
 0xcb2   : > { %v1887_v46 = vpop.permute.xlu0 %1886 }
 0xcb3   : > { %v1755_v18 = vmul.f32 %v1754_v17, %v1754_v17 }
 0xcb5   : > { %v1756_v19 = vsel %vm860_vm0, %v1755_v18, 0.0 }
 0xcb6   : > { %1757 = vadd.xlane.f32.xlu1 %v1756_v19 }
 0xd0b   : > { %v1982_v47 = vpop.f32.mrb[18].mxu1 }
 0xd0c   : > { %v7203_v48 = vadd.f32 %v1982_v47, %v1887_v46  ;;  %v6016_v49 = vpop.f32.mrb[19].mxu1 }
 0xd0e   : > { %6018 = vmatpush3.xpose.msk.msra.mxu1 %vm973_vm4, %v7203_v48 }
 0xd0f   : > { %6042 = vmatprep.subr.mxu1 %v6712_v6 }
 0xd43   : > { %v1758_v36 = vpop.xlane.xlu1 %1757 }
 0xd44   : > { %v1759_v37 = vmul.f32 0.03125, %v1758_v36 }
 0xd46   : > { %v1760_v38 = vadd.f32 1e-05, %v1759_v37 }
 0xd48   : > { %6554 = vrsqrt.f32 %v1760_v38 }
 0xd52   : > { %v6555_v39 = vpop.eup %6554 }
 0xd53   : > { %v1762_v42 = vmul.f32 %v6555_v39, %v1754_v17 }
 0xd55   : > { %v1769_v44 = vmul.f32 %v5527_v41, %v1762_v42 }
 0xd57   : > { %v7197_v45 = vadd.f32 %v5528_v43, %v1769_v44 }
 0xd59   : > { %5996 = vmatmul.mubr.msk.f32.vlgmr.msra.gmra.mrb[2].mxu0 %vm860_vm0, %v7197_v45 }
 0xd5a   : > { %6024 = vmatprep.mubr.msk.f32.mxu0 %vm6711_vm2, %v6712_v6 }
 0xe2c   : > { %v1882_v50 = vpop.f32.mrb[2].mxu0 }
 0xe2d   : > { %v1883_v31 = vadd.f32 %v5529_v35, %v1882_v50  ;;  %v5997_v51 = vpop.f32.mrb[3].mxu0 }
 0xe2f   : > { %6020 = vmatmul.mubr.msk.f32.vlgmr.msra.gmra.mrb[20].mxu1 %vm973_vm4, %v1883_v31 }
 0xe30   : > { %6044 = vmatprep.mubr.msk.f32.mxu1 %vm6711_vm2, %v6712_v6 }
 0xf02   : > { %v2058_v52 = vpop.f32.mrb[20].mxu1 }
 0xf03   : > { %v2062_v53 = vmul.f32 0.35355338, %v2058_v52  ;;  %v6021_v54 = vpop.f32.mrb[21].mxu1 }
 0xf05   : > { %v2069_v55 = vadd.f32 %v6949_v15, %v2062_v53 }
 0xf07   : > { %v2070_v56 = vsel %vm973_vm4, %v2069_v55, -inf }
 0xf08   : > { %2071 = vmax.xlane.f32.xlu1 %v2070_v56 }
 0xf19   : > { %2081 = vrot.lane.b32.xlu1 %v7203_v48, %s8047_s23 }
 0xf1d   : > { %2159 = vrot.lane.b32.xlu1 %v7203_v48, %s8050_s9 }
 0xf21   : > { %2157 = vrot.lane.b32.xlu1 %v1883_v31, %s8050_s9 }
 0xf95   : > { %v2072_v58 = vpop.xlane.xlu1 %2071 }
 0xf96   : > { %v2073_v59 = vsub.f32 %v2069_v55, %v2072_v58 }
 0xf98   : > { %v2074_v60 = vmul.f32 1.442695, %v2073_v59 }
 0xf99   : > { %v2082_v61 = vpop.permute.xlu1 %2081 }
 0xf9a   : > { %6556 = vpow2.f32 %v2074_v60  ;;  %6023 = vmatpush3.msra.mxu0 %v2082_v61 }
 0xf9b   : > { %6027 = vmatprep.subr.mxu0 %v6712_v6 }
 0xf9d   : > { %v2160_v2 = vpop.permute.xlu1 %2159 }
 0xfa1   : > { %v2158_v7 = vpop.permute.xlu1 %2157 }
 0xfa4   : > { %v6557_v62 = vpop.eup %6556 }
 0xfa5   : > { %v2076_v63 = vsel %vm973_vm4, %v6557_v62, 0.0 }
 0xfa6   : > { %2077 = vadd.xlane.f32.xlu0 %v2076_v63  ;;  %v1791_v63 = vld [vmem:[%s8057_s10 + $0x8] sm:$0xff] }
 0xfbc   : > { %2248 = vrot.lane.b32.xlu0 %v7203_v48, %s8051_s29 }
 0xfc0   : > { %2326 = vrot.lane.b32.xlu0 %v7203_v48, %s8052_s24 }
0x1033   : > { %v2078_v0 = vpop.xlane.xlu0 %2077 }
0x1034   : > { %6558 = vrcp.f32 %v2078_v0 }
0x1037   : > { %v2249_v8 = vpop.permute.xlu0 %2248 }
0x103b   : > { %v2327_v20 = vpop.permute.xlu0 %2326 }
0x103e   : > { %v6559_v1 = vpop.eup %6558 }
0x103f   : > { %v2080_v4 = vmul.f32 %v6559_v1, %v6557_v62  ;;  %v1790_v62 = vld [vmem:[%s8057_s10] sm:$0xff]  ;;  %v1792_v1 = vld [vmem:[%s8057_s10 + $0x10] sm:$0xff] }
0x1040   : > { %v6351_v0 = vpack.c.bf16 %v1791_v63, %v1790_v62 }
0x1041   : > { %6025 = vmatmul.mubr.msk.f32.vlgmr.msra.gmra.mrb[4].mxu0 %vm973_vm4, %v2080_v4 }
0x1042   : > { %6028 = vmatpush3.xpose.msk.msra.mxu0 %vm973_vm4, %v2160_v2  ;;  %6029 = vmatprep.mubr.msk.f32.mxu0 %vm6711_vm2, %v6712_v6  ;;  %v1793_v2 = vld [vmem:[%s8057_s10 + $0x18] sm:$0xff] }
0x1043   : > { %6032 = vmatprep.subr.mxu0 %v6712_v6  ;;  %v6355_v4 = vpack.c.bf16 %v1793_v2, %v1792_v1 }
0x1045   : > { %6030 = vmatmul.mubr.msk.f32.vlgmr.msra.gmra.mrb[6].mxu0 %vm973_vm4, %v2158_v7 }
0x1046   : > { %6033 = vmatpush3.msra.mxu0 %v2249_v8  ;;  %6034 = vmatprep.mubr.msk.f32.mxu0 %vm6711_vm2, %v6712_v6 }
0x1047   : > { %6037 = vmatprep.subr.mxu0 %v6712_v6 }
0x1114   : > { %v7233_v57 = vpop.f32.mrb[4].mxu0 }
0x1115   : > { %v6026_v9 = vpop.f32.mrb[5].mxu0 }
0x1118   : > { %v2231_v10 = vpop.f32.mrb[6].mxu0 }
0x1119   : > { %v2235_v11 = vmul.f32 0.35355338, %v2231_v10  ;;  %v6031_v28 = vpop.f32.mrb[7].mxu0 }
0x111b   : > { %v2236_v12 = vadd.f32 %v2235_v11, %v6949_v15 }
0x111d   : > { %v2237_v13 = vsel %vm973_vm4, %v2236_v12, -inf }
0x111e   : > { %2238 = vmax.xlane.f32.xlu1 %v2237_v13 }
0x112f   : > { %2493 = vrot.lane.b32.xlu1 %v7203_v48, %s8053_s1 }
0x11ab   : > { %v2239_v14 = vpop.xlane.xlu1 %2238 }
0x11ac   : > { %v2240_v16 = vsub.f32 %v2236_v12, %v2239_v14 }
0x11ae   : > { %v2241_v17 = vmul.f32 1.442695, %v2240_v16 }
0x11af   : > { %v2494_v25 = vpop.permute.xlu1 %2493 }
0x11b0   : > { %6560 = vpow2.f32 %v2241_v17  ;;  %v5556_v17 = vld [vmem:[%s8060_s11] ss:$0 sm:$0xff] }
0x11ba   : > { %v6561_v18 = vpop.eup %6560 }
0x11bb   : > { %v2243_v19 = vsel %vm973_vm4, %v6561_v18, 0.0 }
0x11bc   : > { %2244 = vadd.xlane.f32.xlu0 %v2243_v19 }
0x11d2   : > { %2324 = vrot.lane.b32.xlu0 %v1883_v31, %s8052_s24 }
0x11d6   : > { %2491 = vrot.lane.b32.xlu0 %v1883_v31, %s8053_s1 }
0x1249   : > { %v2245_v21 = vpop.xlane.xlu0 %2244 }
0x124a   : > { %6562 = vrcp.f32 %v2245_v21 }
0x124d   : > { %v2325_v24 = vpop.permute.xlu0 %2324 }
0x1251   : > { %v2492_v26 = vpop.permute.xlu0 %2491 }
0x1254   : > { %v6563_v22 = vpop.eup %6562 }
0x1255   : > { %v2247_v23 = vmul.f32 %v6563_v22, %v6561_v18  ;;  %v2794_v22 = vld [vmem:[%s7947_s18] sm:$0xff] }
0x1257   : > { %6035 = vmatmul.mubr.msk.f32.vlgmr.msra.gmra.mrb[8].mxu0 %vm973_vm4, %v2247_v23  ;;  %v2795_v23 = vld [vmem:[%s7947_s18 + $0x8] sm:$0xff] }
0x1258   : > { %6038 = vmatpush3.xpose.msk.msra.mxu0 %vm973_vm4, %v2327_v20  ;;  %6039 = vmatprep.mubr.msk.f32.mxu0 %vm6711_vm2, %v6712_v6 }
0x1259   : > { %6047 = vmatprep.subr.mxu0 %v6712_v6 }
0x125b   : > { %6040 = vmatmul.mubr.msk.f32.vlgmr.msra.gmra.mrb[10].mxu0 %vm973_vm4, %v2325_v24  ;;  %v6359_v24 = vpack.c.bf16 %v2795_v23, %v2794_v22 }
0x125c   : > { %6048 = vmatpush3.xpose.msk.msra.mxu0 %vm973_vm4, %v2494_v25  ;;  %6049 = vmatprep.mubr.msk.f32.mxu0 %vm6711_vm2, %v6712_v6  ;;  %v2797_v25 = vld [vmem:[%s7947_s18 + $0x18] sm:$0xff] }
0x125d   : > { %6350 = vmatprep.subr.bf16.mxu0 %v6710_v3 }
0x125f   : > { %6050 = vmatmul.mubr.msk.f32.vlgmr.msra.gmra.mrb[12].mxu0 %vm973_vm4, %v2492_v26 }
0x1260   : > { %6065 = vmatprep.mubr.msk.f32.mxu0 %vm6711_vm2, %v6712_v6  ;;  %6353 = vmatpush3.bf16.xpose.msk.msra.mxu0 %vm6919_vm1, %v6351_v0  ;;  %v5574_v0 = vld [vmem:[%s7950_s21] ss:$0 sm:$0xff] }
0x1261   : > { %6354 = vmatprep.subr.bf16.mxu0 %v6710_v3 }
0x1268   : > { %6357 = vmatpush3.bf16.xpose.msk.msra.mxu0 %vm6919_vm1, %v6355_v4 }
0x1269   : > { %6374 = vmatprep.subr.bf16.mxu0 %v6710_v3 }
0x132a   : > { %v2320_v27 = vpop.f32.mrb[8].mxu0 }
0x132b   : > { %v6036_v29 = vpop.f32.mrb[9].mxu0 }
0x132e   : > { %v2398_v30 = vpop.f32.mrb[10].mxu0 }
0x132f   : > { %v2402_v32 = vmul.f32 0.35355338, %v2398_v30  ;;  %v6041_v33 = vpop.f32.mrb[11].mxu0 }
0x1331   : > { %v2403_v35 = vadd.f32 %v2402_v32, %v6949_v15 }
0x1332   : > { %v2565_v36 = vpop.f32.mrb[12].mxu0 }
0x1333   : > { %v2569_v37 = vmul.f32 0.35355338, %v2565_v36  ;;  %v6051_v38 = vpop.f32.mrb[13].mxu0  ;;  %v2404_v39 = vsel %vm973_vm4, %v2403_v35, -inf  ;;  %v2799_v36 = vld [vmem:[%s7947_s18 + $0x28] sm:$0xff] }
0x1334   : > { %2405 = vmax.xlane.f32.xlu0 %v2404_v39  ;;  %v2800_v38 = vld [vmem:[%s7947_s18 + $0x30] sm:$0xff]  ;;  %v2801_v39 = vld [vmem:[%s7947_s18 + $0x38] sm:$0xff] }
0x1335   : > { %v2570_v41 = vadd.f32 %v2569_v37, %v6949_v15 }
0x1337   : > { %v2571_v42 = vsel %vm973_vm4, %v2570_v41, -inf }
0x1338   : > { %2572 = vmax.xlane.f32.xlu1 %v2571_v42  ;;  %v2803_v42 = vld [vmem:[%s7949_s20] sm:$0xff] }
0x1349   : > { %2582 = vrot.lane.b32.xlu1 %v7203_v48, %s8054_s7 }
0x13c1   : > { %v2406_v43 = vpop.xlane.xlu0 %2405 }
0x13c2   : > { %v2407_v44 = vsub.f32 %v2403_v35, %v2406_v43  ;;  %v2798_v35 = vld [vmem:[%s7947_s18 + $0x20] sm:$0xff]  ;;  %v2804_v43 = vld [vmem:[%s7949_s20 + $0x8] sm:$0xff] }
0x13c3   : > { %v6367_v37 = vpack.c.bf16 %v2799_v36, %v2798_v35 }
0x13c4   : > { %v2408_v46 = vmul.f32 1.442695, %v2407_v44  ;;  %v6375_v44 = vpack.c.bf16 %v2804_v43, %v2803_v42  ;;  %v5600_v43 = vld [vmem:[%s8038_s3 + $0x1] ss:$0 sm:$0xff] }
0x13c5   : > { %v2573_v47 = vpop.xlane.xlu1 %2572 }
0x13c6   : > { %6564 = vpow2.f32 %v2408_v46  ;;  %v2574_v49 = vsub.f32 %v2570_v41, %v2573_v47  ;;  %v6371_v41 = vpack.c.bf16 %v2801_v39, %v2800_v38  ;;  %v2805_v47 = vld [vmem:[%s7949_s20 + $0x10] sm:$0xff]  ;;  %v5581_v39 = vld [vmem:[%s7946_s17] ss:$0 sm:$0xff] }
0x13c8   : > { %v2575_v50 = vmul.f32 1.442695, %v2574_v49  ;;  %v2806_v49 = vld [vmem:[%s7949_s20 + $0x18] sm:$0xff] }
0x13c9   : > { %v2583_v60 = vpop.permute.xlu1 %2582 }
0x13ca   : > { %6566 = vpow2.f32 %v2575_v50  ;;  %v6379_v50 = vpack.c.bf16 %v2806_v49, %v2805_v47 }
0x13d0   : > { %v6565_v31 = vpop.eup %6564 }
0x13d1   : > { %v2410_v51 = vsel %vm973_vm4, %v6565_v31, 0.0 }
0x13d2   : > { %2411 = vadd.xlane.f32.xlu0 %v2410_v51 }
0x13d4   : > { %v6567_v52 = vpop.eup %6566 }
0x13d5   : > { %v2577_v53 = vsel %vm973_vm4, %v6567_v52, 0.0 }
0x13d6   : > { %2578 = vadd.xlane.f32.xlu0 %v2577_v53 }
0x13ec   : > { %2415 = vrot.lane.b32.xlu0 %v7203_v48, %s8055_s4 }
0x13f0   : > { %2659 = vrot.lane.b32.xlu0 %v2320_v27, %s8056_s25 }
0x145f   : > { %v2412_v54 = vpop.xlane.xlu0 %2411 }
0x1460   : > { %6568 = vrcp.f32 %v2412_v54  ;;  %v5562_v54 = vld [vmem:[%s7943_s14] ss:$0 sm:$0xff] }
0x1463   : > { %v2579_v55 = vpop.xlane.xlu0 %2578 }
0x1464   : > { %6570 = vrcp.f32 %v2579_v55 }
0x1467   : > { %v2416_v56 = vpop.permute.xlu0 %2415 }
0x1468   : > { %6043 = vmatpush3.msra.mxu1 %v2416_v56  ;;  %v5563_v56 = vld [vmem:[%s7944_s15] ss:$0 sm:$0xff] }
0x1469   : > { %6052 = vmatprep.subr.mxu1 %v6712_v6 }
0x146a   : > { %v6569_v58 = vpop.eup %6568 }
0x146b   : > { %v2414_v59 = vmul.f32 %v6569_v58, %v6565_v31  ;;  %v2660_v11 = vpop.permute.xlu0 %2659 }
0x146c   : > { %v2670_v12 = vsel %vm973_vm4, %v7233_v57, %v2660_v11 }
0x146d   : > { %6045 = vmatmul.mubr.msk.f32.vlgmr.msra.gmra.mrb[22].mxu1 %vm973_vm4, %v2414_v59 }
0x146e   : > { %v6571_v61 = vpop.eup %6570  ;;  %6053 = vmatpush3.msra.mxu1 %v2583_v60  ;;  %6054 = vmatprep.mubr.msk.f32.mxu1 %vm6711_vm2, %v6712_v6  ;;  %v5564_v60 = vld [vmem:[%s7948_s19] ss:$0 sm:$0xff] }
0x146f   : > { %v2581_v48 = vmul.f32 %v6571_v61, %v6567_v52  ;;  %6358 = vmatprep.subr.bf16.mxu1 %v6710_v3 }
0x1471   : > { %6055 = vmatmul.mubr.msk.f32.vlgmr.msra.gmra.mrb[24].mxu1 %vm973_vm4, %v2581_v48 }
0x1472   : > { %6084 = vmatprep.mubr.msk.f32.mxu1 %vm6711_vm2, %v6712_v6 }
0x1475   : > { %6361 = vmatpush3.bf16.xpose.msk.msra.mxu1 %vm6919_vm1, %v6359_v24 }
0x1476   : > { %6362 = vmatprep.subr.bf16.mxu1 %v6710_v3 }
0x1540   : > { %v2487_v7 = vpop.f32.mrb[22].mxu1 }
0x1541   : > { %2663 = vrot.lane.b32.xlu1 %v2487_v7, %s8058_s22  ;;  %v6046_v8 = vpop.f32.mrb[23].mxu1 }
0x1544   : > { %v2654_v9 = vpop.f32.mrb[24].mxu1 }
0x1545   : > { %2667 = vrot.lane.b32.xlu0 %v2654_v9, %s8059_s6  ;;  %v6056_v10 = vpop.f32.mrb[25].mxu1  ;;  %v5582_v9 = vld [vmem:[%s8033_s0 + $0x60] sm:$0xff] }
0x1546   : > { %v5583_v10 = vld [vmem:[%s8033_s0 + $0x68] sm:$0xff] }
0x1547   : > { %v6383_v11 = vpack.c.bf16 %v5583_v10, %v5582_v9 }
0x15b3   : > { %v2664_v28 = vpop.permute.xlu1 %2663 }
0x15b4   : > { %v2671_v13 = vsel %vm1651_vm9, %v2670_v12, %v2664_v28  ;;  %v5584_v28 = vld [vmem:[%s8033_s0 + $0x70] sm:$0xff]  ;;  %v5585_v12 = vld [vmem:[%s8033_s0 + $0x78] sm:$0xff] }
0x15b7   : > { %v2668_v14 = vpop.permute.xlu0 %2667 }
0x15b8   : > { %v2672_v16 = vsel %vm1653_vm10, %v2671_v13, %v2668_v14  ;;  %v6387_v13 = vpack.c.bf16 %v5585_v12, %v5584_v28  ;;  %v5586_v14 = vld [vmem:[%s8033_s0 + $0x80] sm:$0xff] }
0x15b9   : > { %6066 = vmatmul.mubr.msk.f32.vlgmr.msra.gmra.mrb[14].mxu0 %vm860_vm0, %v2672_v16  ;;  %v5587_v16 = vld [vmem:[%s8033_s0 + $0x88] sm:$0xff] }
0x15ba   : > { %6095 = vmatprep.mubr.msk.f32.mxu0 %vm6711_vm2, %v6712_v6  ;;  %6377 = vmatpush3.bf16.xpose.msk.msra.mxu0 %vm7351_vm12, %v6375_v44 }
0x15bb   : > { %6378 = vmatprep.subr.bf16.mxu0 %v6710_v3 }
0x15c2   : > { %6381 = vmatpush3.bf16.xpose.msk.msra.mxu0 %vm7351_vm12, %v6379_v50 }
0x15c3   : > { %6382 = vmatprep.subr.bf16.mxu0 %v6710_v3 }
0x168c   : > { %v2760_v18 = vpop.f32.mrb[14].mxu0 }
0x168d   : > { %v2761_v19 = vadd.f32 %v5556_v17, %v2760_v18  ;;  %v6067_v20 = vpop.f32.mrb[15].mxu0  ;;  %v6391_v17 = vpack.c.bf16 %v5587_v16, %v5586_v14  ;;  %v5588_v18 = vld [vmem:[%s8033_s0 + $0x90] sm:$0xff] }
0x168f   : > { %v2766_v21 = vadd.f32 %v2761_v19, %v7197_v45  ;;  %v2796_v45 = vld [vmem:[%s7947_s18 + $0x10] sm:$0xff]  ;;  %v5589_v19 = vld [vmem:[%s8033_s0 + $0x98] sm:$0xff] }
0x1690   : > { %v6363_v26 = vpack.c.bf16 %v2797_v25, %v2796_v45  ;;  %v6395_v20 = vpack.c.bf16 %v5589_v19, %v5588_v18  ;;  %v5590_v45 = vld [vmem:[%s8033_s0 + $0xa0] sm:$0xff]  ;;  %v5591_v25 = vld [vmem:[%s8033_s0 + $0xa8] sm:$0xff] }
0x1691   : > { %v2767_v57 = vsel %vm860_vm0, %v2766_v21, 0.0 }
0x1692   : > { %2768 = vadd.xlane.f32.xlu1 %v2767_v57  ;;  %6365 = vmatpush3.bf16.xpose.msk.msra.mxu1 %vm6919_vm1, %v6363_v26  ;;  %v6399_v26 = vpack.c.bf16 %v5591_v25, %v5590_v45 }
0x1693   : > { %6366 = vmatprep.subr.bf16.mxu1 %v6710_v3 }
0x169a   : > { %6369 = vmatpush3.bf16.xpose.msk.msra.mxu1 %vm6919_vm1, %v6367_v37  ;;  %v5580_v37 = vld [vmem:[%s7945_s16] ss:$0 sm:$0xff] }
0x169b   : > { %6370 = vmatprep.subr.bf16.mxu1 %v6710_v3 }
0x16a2   : > { %6373 = vmatpush3.bf16.xpose.msk.msra.mxu1 %vm6919_vm1, %v6371_v41 }
0x16a3   : > { %6125 = vmatprep.subr.mxu1 %v6712_v6 }
0x171f   : > { %v2769_v27 = vpop.xlane.xlu1 %2768 }
0x1720   : > { %v2770_v29 = vmul.f32 0.03125, %v2769_v27  ;;  %v5592_v27 = vld [vmem:[%s8033_s0 + $0xb0] sm:$0xff] }
0x1722   : > { %v2771_v30 = vsub.f32 %v2766_v21, %v2770_v29  ;;  %v5593_v29 = vld [vmem:[%s8033_s0 + $0xb8] sm:$0xff]  ;;  %s8069_s0 = sld [smem:[#allocation30_spill]] }
0x1724   : > { %v2772_v32 = vmul.f32 %v2771_v30, %v2771_v30 }
0x1726   : > { %v2773_v33 = vsel %vm860_vm0, %v2772_v32, 0.0 }
0x1727   : > { %2774 = vadd.xlane.f32.xlu0 %v2773_v33 }
0x17b4   : > { %v2775_v31 = vpop.xlane.xlu0 %2774 }
0x17b5   : > { %v2776_v51 = vmul.f32 0.03125, %v2775_v31 }
0x17b7   : > { %v2777_v52 = vadd.f32 1e-05, %v2776_v51 }
0x17b9   : > { %6572 = vrsqrt.f32 %v2777_v52 }
0x17c3   : > { %v6573_v53 = vpop.eup %6572 }
0x17c4   : > { %v2779_v55 = vmul.f32 %v6573_v53, %v2771_v30  ;;  %v6403_v30 = vpack.c.bf16 %v5593_v29, %v5592_v27 }
0x17c6   : > { %v2786_v58 = vmul.f32 %v5562_v54, %v2779_v55 }
0x17c8   : > { %v2793_v59 = vadd.f32 %v5563_v56, %v2786_v58 }
0x17ca   : > { %6085 = vmatmul.mubr.msk.f32.vlgmr.msra.gmra.mrb[26].mxu1 %vm860_vm0, %v2793_v59 }
0x17cb   : > { %6127 = vmatprep.mubr.msk.f32.mxu1 %vm6711_vm2, %v6712_v6 }
0x189d   : > { %v2907_v61 = vpop.f32.mrb[26].mxu1 }
0x189e   : > { %v2908_v48 = vadd.f32 %v5564_v60, %v2907_v61  ;;  %v6086_v62 = vpop.f32.mrb[27].mxu1 }
0x18a0   : > { %v2911_v63 = vmax.f32 %v2908_v48, 0.0 }
0x18a2   : > { %6096 = vmatmul.mubr.msk.f32.vlgmr.msra.gmra.mrb[16].mxu0 %vm2918_vm11, %v2911_v63 }
0x18a3   : > { %6122 = vmatprep.mubr.msk.f32.mxu0 %vm6711_vm2, %v6712_v6  ;;  %6385 = vmatpush3.bf16.xpose.msk.msra.mxu0 %vm6919_vm1, %v6383_v11 }
0x18a4   : > { %6386 = vmatprep.subr.bf16.mxu0 %v6710_v3 }
0x18ab   : > { %6389 = vmatpush3.bf16.xpose.msk.msra.mxu0 %vm6919_vm1, %v6387_v13 }
0x18ac   : > { %6390 = vmatprep.subr.bf16.mxu0 %v6710_v3 }
0x18b3   : > { %6393 = vmatpush3.bf16.xpose.msk.msra.mxu0 %vm6919_vm1, %v6391_v17 }
0x18b4   : > { %6394 = vmatprep.subr.bf16.mxu0 %v6710_v3 }
0x18bb   : > { %6397 = vmatpush3.bf16.xpose.msk.msra.mxu0 %vm6919_vm1, %v6395_v20 }
0x18bc   : > { %6398 = vmatprep.subr.bf16.mxu0 %v6710_v3 }
0x18c3   : > { %6401 = vmatpush3.bf16.xpose.msk.msra.mxu0 %vm6919_vm1, %v6399_v26 }
0x18c4   : > { %6402 = vmatprep.subr.bf16.mxu0 %v6710_v3 }
0x18cb   : > { %6405 = vmatpush3.bf16.xpose.msk.msra.mxu0 %vm6919_vm1, %v6403_v30 }
0x18cc   : > { %6414 = vmatprep.subr.bf16.mxu0 %v6710_v3 }
0x1975   : > { %v3000_v1 = vpop.f32.mrb[16].mxu0 }
0x1976   : > { %v3001_v2 = vadd.f32 %v5574_v0, %v3000_v1  ;;  %v6097_v4 = vpop.f32.mrb[17].mxu0 }
0x1978   : > { %v3006_v7 = vadd.f32 %v3001_v2, %v2793_v59 }
0x197a   : > { %v3007_v8 = vsel %vm860_vm0, %v3006_v7, 0.0 }
0x197b   : > { %3008 = vadd.xlane.f32.xlu0 %v3007_v8 }
0x1a08   : > { %v3009_v21 = vpop.xlane.xlu0 %3008 }
0x1a09   : > { %v3010_v57 = vmul.f32 0.03125, %v3009_v21 }
0x1a0b   : > { %v3011_v22 = vsub.f32 %v3006_v7, %v3010_v57 }
0x1a0d   : > { %v3012_v23 = vmul.f32 %v3011_v22, %v3011_v22 }
0x1a0f   : > { %v3013_v24 = vsel %vm860_vm0, %v3012_v23, 0.0 }
0x1a10   : > { %3014 = vadd.xlane.f32.xlu1 %v3013_v24 }
0x1a9d   : > { %v3015_v32 = vpop.xlane.xlu1 %3014 }
0x1a9e   : > { %v3016_v33 = vmul.f32 0.03125, %v3015_v32 }
0x1aa0   : > { %v3017_v35 = vadd.f32 1e-05, %v3016_v33 }
0x1aa2   : > { %6574 = vrsqrt.f32 %v3017_v35 }
0x1aac   : > { %v6575_v36 = vpop.eup %6574 }
0x1aad   : > { %v3019_v38 = vmul.f32 %v6575_v36, %v3011_v22 }
0x1aaf   : > { %v3026_v41 = vmul.f32 %v5580_v37, %v3019_v38 }
0x1ab1   : > { %v7447_v42 = vadd.f32 %v5581_v39, %v3026_v41 }
0x1ab3   : > { %6123 = vmatmul.mubr.msk.f32.vlgmr.msra.gmra.mrb[18].mxu0 %vm860_vm0, %v7447_v42 }
0x1ab4   : > { %6184 = vmatprep.mubr.msk.f32.mxu0 %vm6711_vm2, %v6712_v6 }
0x1b86   : > { %v3167_v44 = vpop.f32.mrb[18].mxu0 }
0x1b87   : > { %v7456_v47 = vadd.f32 %v5600_v43, %v3167_v44  ;;  %v6124_v49 = vpop.f32.mrb[19].mxu0 }
0x1b89   : > { %3172 = vrot.lane.b32.xlu0 %v7456_v47, %s8047_s23 }
0x1b8d   : > { %3339 = vrot.lane.b32.xlu0 %v7456_v47, %s8051_s29 }
0x1b91   : > { %3337 = vrot.lane.b32.xlu0 %v7456_v47, %s8050_s9 }
0x1bfb   : > { %v3173_v50 = vpop.permute.xlu0 %3172 }
0x1bfc   : > { %6126 = vmatpush3.xpose.msk.msra.mxu1 %vm973_vm4, %v3173_v50 }
0x1bfd   : > { %6130 = vmatprep.subr.mxu1 %v6712_v6 }
0x1bff   : > { %6128 = vmatmul.mubr.msk.f32.vlgmr.msra.gmra.mrb[28].mxu1 %vm973_vm4, %v7456_v47  ;;  %v3340_v63 = vpop.permute.xlu0 %3339 }
0x1c00   : > { %6132 = vmatprep.mubr.msk.f32.mxu1 %vm6711_vm2, %v6712_v6 }
0x1c03   : > { %v3338_v1 = vpop.permute.xlu0 %3337 }
0x1cd2   : > { %v3244_v31 = vpop.f32.mrb[28].mxu1 }
0x1cd3   : > { %v3248_v51 = vmul.f32 0.35355338, %v3244_v31  ;;  %v6129_v52 = vpop.f32.mrb[29].mxu1 }
0x1cd5   : > { %v3249_v53 = vadd.f32 %v3248_v51, %v7026_v40 }
0x1cd7   : > { %v3250_v54 = vsel %vm973_vm4, %v3249_v53, -inf }
0x1cd8   : > { %3251 = vmax.xlane.f32.xlu1 %v3250_v54 }
0x1d65   : > { %v3252_v55 = vpop.xlane.xlu1 %3251 }
0x1d66   : > { %v3253_v56 = vsub.f32 %v3249_v53, %v3252_v55 }
0x1d68   : > { %v3254_v58 = vmul.f32 1.442695, %v3253_v56 }
0x1d6a   : > { %6576 = vpow2.f32 %v3254_v58 }
0x1d74   : > { %v6577_v59 = vpop.eup %6576 }
0x1d75   : > { %v3256_v60 = vsel %vm973_vm4, %v6577_v59, 0.0 }
0x1d76   : > { %3257 = vadd.xlane.f32.xlu1 %v3256_v60 }
0x1d87   : > { %3261 = vrot.lane.b32.xlu1 %v7456_v47, %s8063_s12  ;;  %s8067_s12 = sld [smem:[#allocation26_spill]] }
0x1e03   : > { %v3258_v61 = vpop.xlane.xlu1 %3257 }
0x1e04   : > { %6578 = vrcp.f32 %v3258_v61 }
0x1e07   : > { %v3262_v48 = vpop.permute.xlu1 %3261 }
0x1e08   : > { %6131 = vmatpush3.msra.mxu1 %v3262_v48 }
0x1e09   : > { %6135 = vmatprep.subr.mxu1 %v6712_v6 }
0x1e0e   : > { %v6579_v62 = vpop.eup %6578 }
0x1e0f   : > { %v3260_v0 = vmul.f32 %v6579_v62, %v6577_v59  ;;  %v5595_v62 = vld [vmem:[%s8040_s5 + $0x20] sm:$0xff] }
0x1e11   : > { %6133 = vmatmul.mubr.msk.f32.vlgmr.msra.gmra.mrb[30].mxu1 %vm973_vm4, %v3260_v0  ;;  %v5597_v0 = vld [vmem:[%s8040_s5 + $0x30] sm:$0xff] }
0x1e12   : > { %6136 = vmatpush3.xpose.msk.msra.mxu1 %vm973_vm4, %v3340_v63  ;;  %6137 = vmatprep.mubr.msk.f32.mxu1 %vm6711_vm2, %v6712_v6 }
0x1e13   : > { %6140 = vmatprep.subr.mxu1 %v6712_v6 }
0x1e15   : > { %6138 = vmatmul.mubr.msk.f32.vlgmr.msra.gmra.mrb[32].mxu1 %vm973_vm4, %v3338_v1  ;;  %v5598_v1 = vld [vmem:[%s8040_s5 + $0x38] sm:$0xff] }
0x1e16   : > { %6142 = vmatprep.mubr.msk.f32.mxu1 %vm6711_vm2, %v6712_v6 }
0x1ee4   : > { %v7484_v2 = vpop.f32.mrb[30].mxu1 }
0x1ee5   : > { %v6134_v4 = vpop.f32.mrb[31].mxu1 }
0x1ee6   : > { %v6411_v4 = vpack.c.bf16 %v5598_v1, %v5597_v0 }
0x1ee8   : > { %v3411_v7 = vpop.f32.mrb[32].mxu1 }
0x1ee9   : > { %v3415_v8 = vmul.f32 0.35355338, %v3411_v7  ;;  %v6139_v9 = vpop.f32.mrb[33].mxu1 }
0x1eeb   : > { %v3416_v10 = vadd.f32 %v3415_v8, %v7026_v40 }
0x1eed   : > { %v3417_v11 = vsel %vm973_vm4, %v3416_v10, -inf }
0x1eee   : > { %3418 = vmax.xlane.f32.xlu1 %v3417_v11 }
0x1eff   : > { %3506 = vrot.lane.b32.xlu1 %v7456_v47, %s8055_s4 }
0x1f03   : > { %3504 = vrot.lane.b32.xlu1 %v7456_v47, %s8052_s24 }
0x1f7b   : > { %v3419_v28 = vpop.xlane.xlu1 %3418 }
0x1f7c   : > { %v3420_v12 = vsub.f32 %v3416_v10, %v3419_v28 }
0x1f7e   : > { %v3421_v13 = vmul.f32 1.442695, %v3420_v12 }
0x1f7f   : > { %v3507_v20 = vpop.permute.xlu1 %3506 }
0x1f80   : > { %6580 = vpow2.f32 %v3421_v13 }
0x1f83   : > { %v3505_v57 = vpop.permute.xlu1 %3504 }
0x1f8a   : > { %v6581_v14 = vpop.eup %6580 }
0x1f8b   : > { %v3423_v16 = vsel %vm973_vm4, %v6581_v14, 0.0 }
0x1f8c   : > { %3424 = vadd.xlane.f32.xlu0 %v3423_v16 }
0x1fa2   : > { %3428 = vrot.lane.b32.xlu0 %v7456_v47, %s8064_s13 }
0x2019   : > { %v3425_v17 = vpop.xlane.xlu0 %3424 }
0x201a   : > { %6582 = vrcp.f32 %v3425_v17 }
0x201d   : > { %v3429_v18 = vpop.permute.xlu0 %3428 }
0x201e   : > { %6141 = vmatpush3.msra.mxu1 %v3429_v18 }
0x201f   : > { %6145 = vmatprep.subr.mxu1 %v6712_v6 }
0x2024   : > { %v6583_v19 = vpop.eup %6582 }
0x2025   : > { %v3427_v21 = vmul.f32 %v6583_v19, %v6581_v14  ;;  %v5626_v14 = vld [vmem:[%s8042_s26 + $0x1] ss:$0 sm:$0xff] }
0x2027   : > { %6143 = vmatmul.mubr.msk.f32.vlgmr.msra.gmra.mrb[34].mxu1 %vm973_vm4, %v3427_v21  ;;  %v5641_v21 = vld [vmem:[%s8043_s28 + $0x88] sm:$0xff] }
0x2028   : > { %6146 = vmatpush3.xpose.msk.msra.mxu1 %vm973_vm4, %v3507_v20  ;;  %6147 = vmatprep.mubr.msk.f32.mxu1 %vm6711_vm2, %v6712_v6  ;;  %v5640_v20 = vld [vmem:[%s8043_s28 + $0x80] sm:$0xff] }
0x2029   : > { %6150 = vmatprep.subr.mxu1 %v6712_v6 }
0x202b   : > { %6148 = vmatmul.mubr.msk.f32.vlgmr.msra.gmra.mrb[36].mxu1 %vm973_vm4, %v3505_v57  ;;  %v6423_v57 = vpack.c.bf16 %v5641_v21, %v5640_v20 }
0x202c   : > { %6152 = vmatprep.mubr.msk.f32.mxu1 %vm6711_vm2, %v6712_v6 }
0x20fa   : > { %v3500_v22 = vpop.f32.mrb[34].mxu1 }
0x20fb   : > { %v6144_v23 = vpop.f32.mrb[35].mxu1 }
0x20fe   : > { %v3578_v24 = vpop.f32.mrb[36].mxu1 }
0x20ff   : > { %v3582_v45 = vmul.f32 0.35355338, %v3578_v24  ;;  %v6149_v25 = vpop.f32.mrb[37].mxu1 }
0x2101   : > { %v3583_v26 = vadd.f32 %v3582_v45, %v7026_v40 }
0x2103   : > { %v3584_v27 = vsel %vm973_vm4, %v3583_v26, -inf }
0x2104   : > { %3585 = vmax.xlane.f32.xlu0 %v3584_v27 }
0x211a   : > { %3595 = vrot.lane.b32.xlu0 %v7456_v47, %s8065_s2 }
0x211e   : > { %3671 = vrot.lane.b32.xlu0 %v7456_v47, %s8053_s1 }
0x2191   : > { %v3586_v29 = vpop.xlane.xlu0 %3585 }
0x2192   : > { %v3587_v30 = vsub.f32 %v3583_v26, %v3586_v29  ;;  %v5644_v29 = vld [vmem:[%s8043_s28 + $0xa0] sm:$0xff] }
0x2194   : > { %v3588_v32 = vmul.f32 1.442695, %v3587_v30  ;;  %v5645_v30 = vld [vmem:[%s8043_s28 + $0xa8] sm:$0xff] }
0x2195   : > { %v3596_v33 = vpop.permute.xlu0 %3595 }
0x2196   : > { %6584 = vpow2.f32 %v3588_v32  ;;  %6151 = vmatpush3.msra.mxu1 %v3596_v33  ;;  %v6431_v32 = vpack.c.bf16 %v5645_v30, %v5644_v29  ;;  %v5636_v33 = vld [vmem:[%s8043_s28 + $0x60] sm:$0xff] }
0x2197   : > { %6155 = vmatprep.subr.mxu1 %v6712_v6 }
0x2199   : > { %v3672_v43 = vpop.permute.xlu0 %3671 }
0x21a0   : > { %v6585_v35 = vpop.eup %6584 }
0x21a1   : > { %v3590_v36 = vsel %vm973_vm4, %v6585_v35, 0.0 }
0x21a2   : > { %3591 = vadd.xlane.f32.xlu1 %v3590_v36 }
0x21b3   : > { %3673 = vrot.lane.b32.xlu1 %v7456_v47, %s8054_s7 }
0x222f   : > { %v3592_v37 = vpop.xlane.xlu1 %3591 }
0x2230   : > { %6586 = vrcp.f32 %v3592_v37  ;;  %v5646_v37 = vld [vmem:[%s8043_s28 + $0xb0] sm:$0xff] }
0x2233   : > { %v3674_v41 = vpop.permute.xlu1 %3673 }
0x223a   : > { %v6587_v38 = vpop.eup %6586 }
0x223b   : > { %v3594_v39 = vmul.f32 %v6587_v38, %v6585_v35  ;;  %v5637_v35 = vld [vmem:[%s8043_s28 + $0x68] sm:$0xff]  ;;  %v5647_v38 = vld [vmem:[%s8043_s28 + $0xb8] sm:$0xff] }
0x223c   : > { %v6415_v36 = vpack.c.bf16 %v5637_v35, %v5636_v33 }
0x223d   : > { %6153 = vmatmul.mubr.msk.f32.vlgmr.msra.gmra.mrb[38].mxu1 %vm973_vm4, %v3594_v39  ;;  %v6435_v39 = vpack.c.bf16 %v5647_v38, %v5646_v37 }
0x223e   : > { %6156 = vmatpush3.xpose.msk.msra.mxu1 %vm973_vm4, %v3674_v41  ;;  %6157 = vmatprep.mubr.msk.f32.mxu1 %vm6711_vm2, %v6712_v6  ;;  %v5638_v41 = vld [vmem:[%s8043_s28 + $0x70] sm:$0xff] }
0x223f   : > { %6160 = vmatprep.subr.mxu1 %v6712_v6  ;;  %6417 = vmatpush3.bf16.xpose.msk.msra.mxu0 %vm6919_vm1, %v6415_v36 }
0x2240   : > { %6418 = vmatprep.subr.bf16.mxu0 %v6710_v3 }
0x2241   : > { %6158 = vmatmul.mubr.msk.f32.vlgmr.msra.gmra.mrb[40].mxu1 %vm973_vm4, %v3672_v43  ;;  %v5639_v43 = vld [vmem:[%s8043_s28 + $0x78] sm:$0xff] }
0x2242   : > { %6162 = vmatprep.mubr.msk.f32.mxu1 %vm6711_vm2, %v6712_v6 }
0x2310   : > { %v3667_v44 = vpop.f32.mrb[38].mxu1 }
0x2311   : > { %v6154_v49 = vpop.f32.mrb[39].mxu1 }
0x2312   : > { %v5654_v49 = vld [vmem:[%s8067_s12 + $0x1] ss:$0 sm:$0xff] }
0x2314   : > { %v3745_v50 = vpop.f32.mrb[40].mxu1 }
0x2315   : > { %v3749_v31 = vmul.f32 0.35355338, %v3745_v50  ;;  %v6159_v51 = vpop.f32.mrb[41].mxu1 }
0x2317   : > { %v3750_v52 = vadd.f32 %v3749_v31, %v7026_v40 }
0x2319   : > { %v3751_v53 = vsel %vm973_vm4, %v3750_v52, -inf }
0x231a   : > { %3752 = vmax.xlane.f32.xlu1 %v3751_v53 }
0x232b   : > { %3839 = vrot.lane.b32.xlu1 %v3500_v22, %s8056_s25  ;;  %v5643_v22 = vld [vmem:[%s8043_s28 + $0x98] sm:$0xff] }
0x232f   : > { %3843 = vrot.lane.b32.xlu1 %v3667_v44, %s8058_s22  ;;  %v6419_v44 = vpack.c.bf16 %v5639_v43, %v5638_v41 }
0x2331   : > { %6421 = vmatpush3.bf16.xpose.msk.msra.mxu0 %vm6919_vm1, %v6419_v44 }
0x2332   : > { %6206 = vmatprep.subr.mxu0 %v6712_v6 }
0x23a7   : > { %v3753_v54 = vpop.xlane.xlu1 %3752 }
0x23a8   : > { %v3754_v55 = vsub.f32 %v3750_v52, %v3753_v54 }
0x23aa   : > { %v3755_v56 = vmul.f32 1.442695, %v3754_v55 }
0x23ab   : > { %v3840_v9 = vpop.permute.xlu1 %3839 }
0x23ac   : > { %6588 = vpow2.f32 %v3755_v56  ;;  %v3850_v11 = vsel %vm973_vm4, %v7484_v2, %v3840_v9 }
0x23af   : > { %v3844_v10 = vpop.permute.xlu1 %3843 }
0x23b0   : > { %v3851_v28 = vsel %vm1651_vm9, %v3850_v11, %v3844_v10 }
0x23b6   : > { %v6589_v58 = vpop.eup %6588 }
0x23b7   : > { %v3757_v59 = vsel %vm973_vm4, %v6589_v58, 0.0 }
0x23b8   : > { %3758 = vadd.xlane.f32.xlu0 %v3757_v59 }
0x23ce   : > { %3762 = vrot.lane.b32.xlu0 %v7456_v47, %s8066_s8  ;;  %v5596_v47 = vld [vmem:[%s8040_s5 + $0x28] sm:$0xff]  ;;  %s8068_s8 = sld [smem:[#allocation29_spill]] }
0x23cf   : > { %v6407_v63 = vpack.c.bf16 %v5596_v47, %v5595_v62 }
0x23d4   : > { %v5634_v53 = vld [vmem:[%s8068_s8 + $0x1] ss:$0 sm:$0xff] }
0x2445   : > { %v3759_v60 = vpop.xlane.xlu0 %3758 }
0x2446   : > { %6590 = vrcp.f32 %v3759_v60 }
0x2449   : > { %v3763_v40 = vpop.permute.xlu0 %3762 }
0x244a   : > { %6161 = vmatpush3.msra.mxu1 %v3763_v40 }
0x244b   : > { %6406 = vmatprep.subr.bf16.mxu1 %v6710_v3 }
0x2450   : > { %v6591_v61 = vpop.eup %6590 }
0x2451   : > { %v3761_v48 = vmul.f32 %v6591_v61, %v6589_v58 }
0x2453   : > { %6163 = vmatmul.mubr.msk.f32.vlgmr.msra.gmra.mrb[42].mxu1 %vm973_vm4, %v3761_v48 }
0x2454   : > { %6173 = vmatprep.mubr.msk.f32.mxu1 %vm6711_vm2, %v6712_v6  ;;  %6409 = vmatpush3.bf16.xpose.msk.msra.mxu1 %vm6919_vm1, %v6407_v63 }
0x2455   : > { %6410 = vmatprep.subr.bf16.mxu1 %v6710_v3 }
0x245c   : > { %6413 = vmatpush3.bf16.xpose.msk.msra.mxu1 %vm6919_vm1, %v6411_v4 }
0x245d   : > { %6422 = vmatprep.subr.bf16.mxu1 %v6710_v3 }
0x2526   : > { %v3834_v7 = vpop.f32.mrb[42].mxu1 }
0x2527   : > { %3847 = vrot.lane.b32.xlu0 %v3834_v7, %s8059_s6  ;;  %v6164_v8 = vpop.f32.mrb[43].mxu1 }
0x2599   : > { %v3848_v12 = vpop.permute.xlu0 %3847 }
0x259a   : > { %v3852_v13 = vsel %vm1653_vm10, %v3851_v28, %v3848_v12 }
0x259b   : > { %6174 = vmatmul.mubr.msk.f32.vlgmr.msra.gmra.mrb[44].mxu1 %vm860_vm0, %v3852_v13 }
0x259c   : > { %6203 = vmatprep.mubr.msk.f32.mxu1 %vm6711_vm2, %v6712_v6  ;;  %6425 = vmatpush3.bf16.xpose.msk.msra.mxu1 %vm6919_vm1, %v6423_v57 }
0x259d   : > { %6426 = vmatprep.subr.bf16.mxu1 %v6710_v3 }
0x266e   : > { %v3940_v16 = vpop.f32.mrb[44].mxu1 }
0x266f   : > { %v3941_v17 = vadd.f32 %v5626_v14, %v3940_v16  ;;  %v6175_v18 = vpop.f32.mrb[45].mxu1 }
0x2671   : > { %v3948_v19 = vadd.f32 %v3941_v17, %v7447_v42  ;;  %v5642_v42 = vld [vmem:[%s8043_s28 + $0x90] sm:$0xff] }
0x2672   : > { %v6427_v23 = vpack.c.bf16 %v5643_v22, %v5642_v42 }
0x2673   : > { %v3949_v2 = vsel %vm860_vm0, %v3948_v19, 0.0 }
0x2674   : > { %3950 = vadd.xlane.f32.xlu1 %v3949_v2  ;;  %6429 = vmatpush3.bf16.xpose.msk.msra.mxu1 %vm6919_vm1, %v6427_v23 }
0x2675   : > { %6430 = vmatprep.subr.bf16.mxu1 %v6710_v3 }
0x267c   : > { %6433 = vmatpush3.bf16.xpose.msk.msra.mxu1 %vm6919_vm1, %v6431_v32 }
0x267d   : > { %6434 = vmatprep.subr.bf16.mxu1 %v6710_v3 }
0x2684   : > { %6437 = vmatpush3.bf16.xpose.msk.msra.mxu1 %vm6919_vm1, %v6435_v39 }
0x2685   : > { %6231 = vmatprep.subr.mxu1 %v6712_v6 }
0x268b   : > { %6204 = vmatmul.mubr.msk.f32.vlgmr.msra.gmra.mrb[46].mxu1 %vm860_vm0, %v7180_v34  ;;  %v5635_v34 = vld [vmem:[%s8069_s0 + $0x1] ss:$0 sm:$0xff]  ;;  %s8070_s0 = sld [smem:[#allocation9_spill]] }
0x268c   : > { %6233 = vmatprep.mubr.msk.f32.mxu1 %vm6711_vm2, %v6712_v6 }
0x2701   : > { %v3951_v24 = vpop.xlane.xlu1 %3950 }
0x2702   : > { %v3952_v45 = vmul.f32 0.03125, %v3951_v24 }
0x2704   : > { %v3953_v25 = vsub.f32 %v3948_v19, %v3952_v45 }
0x2706   : > { %v3954_v26 = vmul.f32 %v3953_v25, %v3953_v25 }
0x2708   : > { %v3955_v27 = vsel %vm860_vm0, %v3954_v26, 0.0 }
0x2709   : > { %3956 = vadd.xlane.f32.xlu0 %v3955_v27 }
0x271f   : > { %4089 = vrot.lane.b32.xlu0 %v5654_v49, %s8047_s23 }
0x275e   : > { %v4182_v59 = vpop.f32.mrb[46].mxu1 }
0x275f   : > { %v6205_v40 = vpop.f32.mrb[47].mxu1 }
0x2796   : > { %v3957_v50 = vpop.xlane.xlu0 %3956 }
0x2797   : > { %v3958_v31 = vmul.f32 0.03125, %v3957_v50 }
0x2799   : > { %v3959_v51 = vadd.f32 1e-05, %v3958_v31 }
0x279a   : > { %v4090_v58 = vpop.permute.xlu0 %4089 }
0x279b   : > { %6592 = vrsqrt.f32 %v3959_v51  ;;  %v7639_v60 = vadd.f32 %v4182_v59, %v4090_v58 }
0x279d   : > { %4353 = vrot.lane.b32.xlu0 %v7639_v60, %s8050_s9 }
0x27a5   : > { %v6593_v52 = vpop.eup %6592 }
0x27a6   : > { %v3961_v54 = vmul.f32 %v6593_v52, %v3953_v25 }
0x27a8   : > { %v3968_v55 = vmul.f32 %v5634_v53, %v3961_v54 }
0x27aa   : > { %v7633_v56 = vadd.f32 %v5635_v34, %v3968_v55 }
0x27ac   : > { %6185 = vmatmul.mubr.msk.f32.vlgmr.msra.gmra.mrb[20].mxu0 %vm860_vm0, %v7633_v56 }
0x27ad   : > { %6208 = vmatprep.mubr.msk.f32.mxu0 %vm6711_vm2, %v6712_v6  ;;  %6207 = vmatpush3.xpose.msk.msra.mxu0 %vm973_vm4, %v7639_v60 }
0x27ae   : > { %6211 = vmatprep.subr.mxu0 %v6712_v6 }
0x280f   : > { %v4354_v14 = vpop.permute.xlu0 %4353 }
0x287f   : > { %v4085_v61 = vpop.f32.mrb[20].mxu0 }
0x2880   : > { %v4086_v48 = vadd.f32 %v5654_v49, %v4085_v61  ;;  %v6186_v62 = vpop.f32.mrb[21].mxu0 }
0x2882   : > { %4351 = vrot.lane.b32.xlu0 %v4086_v48, %s8050_s9  ;;  %6209 = vmatmul.mubr.msk.f32.vlgmr.msra.gmra.mrb[22].mxu0 %vm973_vm4, %v4086_v48  ;;  %s7656_s9 = sand.u32 1, %s8070_s0   ;;  %s8073_s0 = sld [smem:[#allocation31_spill]] }
0x2883   : > { %6213 = vmatprep.mubr.msk.f32.mxu0 %vm6711_vm2, %v6712_v6  ;;  %s5492_s11 = sshll.u32 %s7656_s9, 5  ;;  %s5337_s10 = scalar_lea.sflag [#allocation5], %s7656_s9 }
0x2884   : > { %s7661_s30 = scalar_lea.vmem [#allocation4], %s5492_s11 }
0x2885   : > { %s5363_s13 = sshll.u32 %s7661_s30, 4  ;;  %s7845_s13 = int_to_ptr.vmem [resolvable:$true] %s5363_s13 }
0x2886   : > { %s6614_s11 = scalar_lea.vmem %s7845_s13, 512 }
0x2887   : > { %p6615_p11 = scmp.ne.s32.totalorder %s7845_s13, %s6614_s11 }
0x2889   : > { %p6616_p12 = pnand %p6615_p11, %p6900_p5 }
0x288b   : > { %p6617_p13 = pneg %p6616_p12 }
0x28f4   : > { %v4352_v17 = vpop.permute.xlu0 %4351 }
0x2955   : > { %v4258_v47 = vpop.f32.mrb[22].mxu0 }
0x2956   : > { %v4262_v63 = vmul.f32 0.35355338, %v4258_v47  ;;  %v6210_v0 = vpop.f32.mrb[23].mxu0 }
0x2958   : > { %v4263_v1 = vadd.f32 %v4262_v63, %v6949_v15 }
0x295a   : > { %v4264_v4 = vsel %vm973_vm4, %v4263_v1, -inf }
0x295b   : > { %4265 = vmax.xlane.f32.xlu1 %v4264_v4 }
0x29e8   : > { %v4266_v7 = vpop.xlane.xlu1 %4265 }
0x29e9   : > { %v4267_v8 = vsub.f32 %v4263_v1, %v4266_v7 }
0x29eb   : > { %v4268_v9 = vmul.f32 1.442695, %v4267_v8 }
0x29ed   : > { %6594 = vpow2.f32 %v4268_v9 }
0x29f7   : > { %v6595_v10 = vpop.eup %6594 }
0x29f8   : > { %v4270_v11 = vsel %vm973_vm4, %v6595_v10, 0.0 }
0x29f9   : > { %4271 = vadd.xlane.f32.xlu1 %v4270_v11 }
0x2a0a   : > { %4275 = vrot.lane.b32.xlu1 %v7639_v60, %s8047_s23  ;;  %s6729_s23 = smov [#allocation4]  }
0x2a86   : > { %v4272_v28 = vpop.xlane.xlu1 %4271 }
0x2a87   : > { %6596 = vrcp.f32 %v4272_v28 }
0x2a8a   : > { %v4276_v12 = vpop.permute.xlu1 %4275 }
0x2a8b   : > { %6212 = vmatpush3.msra.mxu0 %v4276_v12 }
0x2a8c   : > { %6216 = vmatprep.subr.mxu0 %v6712_v6 }
0x2a91   : > { %v6597_v13 = vpop.eup %6596 }
0x2a92   : > { %v4274_v16 = vmul.f32 %v6597_v13, %v6595_v10 }
0x2a94   : > { %6214 = vmatmul.mubr.msk.f32.vlgmr.msra.gmra.mrb[24].mxu0 %vm973_vm4, %v4274_v16  ;;  %5324 = vst.msk [vmem:[%s7661_s30] sm:$0xff] %vm973_vm4, %v4274_v16 }
0x2a95   : > { %6217 = vmatpush3.xpose.msk.msra.mxu0 %vm973_vm4, %v4354_v14  ;;  %6218 = vmatprep.mubr.msk.f32.mxu0 %vm6711_vm2, %v6712_v6 }
0x2a96   : > { %6221 = vmatprep.subr.mxu0 %v6712_v6 }
0x2a98   : > { %6219 = vmatmul.mubr.msk.f32.vlgmr.msra.gmra.mrb[26].mxu0 %vm973_vm4, %v4352_v17 }
0x2a99   : > { %6223 = vmatprep.mubr.msk.f32.mxu0 %vm6711_vm2, %v6712_v6 }
0x2b67   : > { %v7672_v18 = vpop.f32.mrb[24].mxu0 }
0x2b68   : > { %v6215_v19 = vpop.f32.mrb[25].mxu0 }
0x2b6b   : > { %v4425_v2 = vpop.f32.mrb[26].mxu0 }
0x2b6c   : > { %v4429_v20 = vmul.f32 0.35355338, %v4425_v2  ;;  %v6220_v21 = vpop.f32.mrb[27].mxu0 }
0x2b6e   : > { %v4430_v57 = vadd.f32 %v4429_v20, %v6949_v15 }
0x2b70   : > { %v4431_v42 = vsel %vm973_vm4, %v4430_v57, -inf }
0x2b71   : > { %4432 = vmax.xlane.f32.xlu1 %v4431_v42 }
0x2b82   : > { %4520 = vrot.lane.b32.xlu1 %v7639_v60, %s8052_s24 }
0x2b86   : > { %4518 = vrot.lane.b32.xlu1 %v4086_v48, %s8052_s24  ;;  %s8071_s24 = sld [smem:[#allocation27_spill]] }
0x2b8a   : > { %4685 = vrot.lane.b32.xlu1 %v4086_v48, %s8053_s1 }
0x2b8c   : > { %v5650_v10 = vld [vmem:[%s8071_s24 + $0x28] sm:$0xff]  ;;  %v5651_v28 = vld [vmem:[%s8071_s24 + $0x30] sm:$0xff]  ;;  %v5652_v12 = vld [vmem:[%s8071_s24 + $0x38] sm:$0xff] }
0x2b8d   : > { %v6443_v13 = vpack.c.bf16 %v5652_v12, %v5651_v28 }
0x2bfe   : > { %v4433_v22 = vpop.xlane.xlu1 %4432 }
0x2bff   : > { %v4434_v23 = vsub.f32 %v4430_v57, %v4433_v22 }
0x2c01   : > { %v4435_v24 = vmul.f32 1.442695, %v4434_v23  ;;  %v5681_v23 = vld [vmem:[%s8072_s27 + $0x1] ss:$0 sm:$0xff]  ;;  %s8076_s27 = sld [smem:[#allocation34_spill]] }
0x2c02   : > { %v4521_v29 = vpop.permute.xlu1 %4520 }
0x2c03   : > { %6598 = vpow2.f32 %v4435_v24 }
0x2c06   : > { %v4519_v33 = vpop.permute.xlu1 %4518 }
0x2c0a   : > { %v4686_v36 = vpop.permute.xlu1 %4685 }
0x2c0d   : > { %v6599_v45 = vpop.eup %6598 }
0x2c0e   : > { %v4437_v25 = vsel %vm973_vm4, %v6599_v45, 0.0 }
0x2c0f   : > { %4438 = vadd.xlane.f32.xlu0 %v4437_v25 }
0x2c25   : > { %4442 = vrot.lane.b32.xlu0 %v7639_v60, %s8051_s29  ;;  %s8074_s29 = sld [smem:[#allocation12_spill]] }
0x2c29   : > { %4687 = vrot.lane.b32.xlu0 %v7639_v60, %s8053_s1  ;;  %s6618_s1 = sshll.u32 %s6729_s23, 4  ;;  %s6619_s1 = int_to_ptr.vmem [resolvable:$false] %s6618_s1 }
0x2c2a   : > { %p6621_p0 = scmp.lt.s32.totalorder %s7845_s13, %s6619_s1 }
0x2c2b   : > { %s5739_s2 = sshll.u32 %s8074_s29, 9 }
0x2c9c   : > { %v4439_v26 = vpop.xlane.xlu0 %4438 }
0x2c9d   : > { %6600 = vrcp.f32 %v4439_v26 }
0x2ca0   : > { %v4443_v27 = vpop.permute.xlu0 %4442 }
0x2ca1   : > { %6222 = vmatpush3.msra.mxu0 %v4443_v27  ;;  %v5691_v27 = vld [vmem:[%s7947_s18 + $0x40] sm:$0xff] }
0x2ca2   : > { %6226 = vmatprep.subr.mxu0 %v6712_v6 }
0x2ca4   : > { %v4688_v35 = vpop.permute.xlu0 %4687 }
0x2ca7   : > { %v6601_v30 = vpop.eup %6600 }
0x2ca8   : > { %v4441_v32 = vmul.f32 %v6601_v30, %v6599_v45 }
0x2caa   : > { %6224 = vmatmul.mubr.msk.f32.vlgmr.msra.gmra.mrb[28].mxu0 %vm973_vm4, %v4441_v32  ;;  %5729 = vst.msk [vmem:[%s7661_s30 + $0x8] sm:$0xff] %vm973_vm4, %v4441_v32  ;;  %v5694_v32 = vld [vmem:[%s7947_s18 + $0x58] sm:$0xff] }
0x2cab   : > { %6227 = vmatpush3.xpose.msk.msra.mxu0 %vm973_vm4, %v4521_v29  ;;  %6228 = vmatprep.mubr.msk.f32.mxu0 %vm6711_vm2, %v6712_v6  ;;  %v5692_v29 = vld [vmem:[%s7947_s18 + $0x48] sm:$0xff] }
0x2cac   : > { %6236 = vmatprep.subr.mxu0 %v6712_v6  ;;  %v6447_v30 = vpack.c.bf16 %v5692_v29, %v5691_v27 }
0x2cae   : > { %6229 = vmatmul.mubr.msk.f32.vlgmr.msra.gmra.mrb[30].mxu0 %vm973_vm4, %v4519_v33 }
0x2caf   : > { %6237 = vmatpush3.xpose.msk.msra.mxu0 %vm973_vm4, %v4688_v35  ;;  %6238 = vmatprep.mubr.msk.f32.mxu0 %vm6711_vm2, %v6712_v6 }
0x2cb0   : > { %6438 = vmatprep.subr.bf16.mxu0 %v6710_v3 }
0x2cb2   : > { %6239 = vmatmul.mubr.msk.f32.vlgmr.msra.gmra.mrb[32].mxu0 %vm973_vm4, %v4686_v36 }
0x2cb3   : > { %6254 = vmatprep.mubr.msk.f32.mxu0 %vm6711_vm2, %v6712_v6 }
0x2d7d   : > { %v4514_v37 = vpop.f32.mrb[28].mxu0 }
0x2d7e   : > { %v6225_v38 = vpop.f32.mrb[29].mxu0 }
0x2d81   : > { %v4592_v39 = vpop.f32.mrb[30].mxu0 }
0x2d82   : > { %v4596_v41 = vmul.f32 0.35355338, %v4592_v39  ;;  %v6230_v43 = vpop.f32.mrb[31].mxu0 }
0x2d83   : > { %v5696_v43 = vld [vmem:[%s7947_s18 + $0x68] sm:$0xff] }
0x2d84   : > { %v4597_v44 = vadd.f32 %v4596_v41, %v6949_v15  ;;  %v5695_v41 = vld [vmem:[%s7947_s18 + $0x60] sm:$0xff] }
0x2d85   : > { %v4759_v49 = vpop.f32.mrb[32].mxu0 }
0x2d86   : > { %v4763_v50 = vmul.f32 0.35355338, %v4759_v49  ;;  %v6240_v31 = vpop.f32.mrb[33].mxu0  ;;  %v4598_v51 = vsel %vm973_vm4, %v4597_v44, -inf  ;;  %v5697_v49 = vld [vmem:[%s7947_s18 + $0x70] sm:$0xff] }
0x2d87   : > { %4599 = vmax.xlane.f32.xlu0 %v4598_v51  ;;  %v5700_v51 = vld [vmem:[%s7949_s20 + $0x20] sm:$0xff] }
0x2d88   : > { %v4764_v52 = vadd.f32 %v4763_v50, %v6949_v15  ;;  %v5698_v50 = vld [vmem:[%s7947_s18 + $0x78] sm:$0xff] }
0x2d89   : > { %v6459_v31 = vpack.c.bf16 %v5698_v50, %v5697_v49 }
0x2d8a   : > { %v4765_v53 = vsel %vm973_vm4, %v4764_v52, -inf }
0x2d8b   : > { %4766 = vmax.xlane.f32.xlu1 %v4765_v53 }
0x2d9c   : > { %4609 = vrot.lane.b32.xlu1 %v7639_v60, %s8055_s4 }
0x2da0   : > { %4853 = vrot.lane.b32.xlu1 %v4514_v37, %s8056_s25 }
0x2e14   : > { %v4600_v54 = vpop.xlane.xlu0 %4599 }
0x2e15   : > { %v4601_v34 = vsub.f32 %v4597_v44, %v4600_v54  ;;  %v6455_v44 = vpack.c.bf16 %v5696_v43, %v5695_v41  ;;  %v5702_v54 = vld [vmem:[%s7949_s20 + $0x30] sm:$0xff] }
0x2e17   : > { %v4602_v55 = vmul.f32 1.442695, %v4601_v34  ;;  %v5703_v34 = vld [vmem:[%s7949_s20 + $0x38] sm:$0xff] }
0x2e18   : > { %v4767_v58 = vpop.xlane.xlu1 %4766 }
0x2e19   : > { %6602 = vpow2.f32 %v4602_v55  ;;  %v4768_v59 = vsub.f32 %v4764_v52, %v4767_v58  ;;  %v5701_v52 = vld [vmem:[%s7949_s20 + $0x28] sm:$0xff]  ;;  %v6467_v55 = vpack.c.bf16 %v5703_v34, %v5702_v54 }
0x2e1a   : > { %v6463_v53 = vpack.c.bf16 %v5701_v52, %v5700_v51 }
0x2e1b   : > { %v4769_v40 = vmul.f32 1.442695, %v4768_v59 }
0x2e1c   : > { %v4610_v61 = vpop.permute.xlu1 %4609 }
0x2e1d   : > { %6604 = vpow2.f32 %v4769_v40  ;;  %6232 = vmatpush3.msra.mxu1 %v4610_v61 }
0x2e1e   : > { %6241 = vmatprep.subr.mxu1 %v6712_v6 }
0x2e20   : > { %v4854_v2 = vpop.permute.xlu1 %4853 }
0x2e21   : > { %v4864_v21 = vsel %vm973_vm4, %v7672_v18, %v4854_v2 }
0x2e23   : > { %v6603_v15 = vpop.eup %6602 }
0x2e24   : > { %v4604_v48 = vsel %vm973_vm4, %v6603_v15, 0.0 }
0x2e25   : > { %4605 = vadd.xlane.f32.xlu0 %v4604_v48 }
0x2e27   : > { %v6605_v62 = vpop.eup %6604 }
0x2e28   : > { %v4771_v47 = vsel %vm973_vm4, %v6605_v62, 0.0 }
0x2e29   : > { %4772 = vadd.xlane.f32.xlu0 %v4771_v47 }
0x2e3f   : > { %4776 = vrot.lane.b32.xlu0 %v7639_v60, %s8054_s7  ;;  %v5649_v60 = vld [vmem:[%s8071_s24 + $0x20] sm:$0xff] }
0x2e40   : > { %v6439_v11 = vpack.c.bf16 %v5650_v10, %v5649_v60 }
0x2e42   : > { %6441 = vmatpush3.bf16.xpose.msk.msra.mxu0 %vm6919_vm1, %v6439_v11 }
0x2e43   : > { %6442 = vmatprep.subr.bf16.mxu0 %v6710_v3 }
0x2e4a   : > { %6445 = vmatpush3.bf16.xpose.msk.msra.mxu0 %vm6919_vm1, %v6443_v13 }
0x2e4b   : > { %6462 = vmatprep.subr.bf16.mxu0 %v6710_v3 }
0x2eb2   : > { %v4606_v63 = vpop.xlane.xlu0 %4605 }
0x2eb3   : > { %6606 = vrcp.f32 %v4606_v63 }
0x2eb6   : > { %v4773_v0 = vpop.xlane.xlu0 %4772 }
0x2eb7   : > { %6608 = vrcp.f32 %v4773_v0 }
0x2eba   : > { %v4777_v7 = vpop.permute.xlu0 %4776 }
0x2ebd   : > { %v6607_v1 = vpop.eup %6606 }
0x2ebe   : > { %v4608_v4 = vmul.f32 %v6607_v1, %v6603_v15  ;;  %v5689_v15 = vld [vmem:[%s7943_s14 + $0x1] ss:$0 sm:$0xff] }
0x2ec0   : > { %6234 = vmatmul.mubr.msk.f32.vlgmr.msra.gmra.mrb[48].mxu1 %vm973_vm4, %v4608_v4  ;;  %5730 = vst.msk [vmem:[%s7661_s30 + $0x10] sm:$0xff] %vm973_vm4, %v4608_v4 }
0x2ec1   : > { %v6609_v8 = vpop.eup %6608  ;;  %6242 = vmatpush3.msra.mxu1 %v4777_v7  ;;  %6243 = vmatprep.mubr.msk.f32.mxu1 %vm6711_vm2, %v6712_v6  ;;  %v5715_v7 = vld [vmem:[%s7950_s21 + $0x1] ss:$0 sm:$0xff] }
0x2ec2   : > { %v4775_v9 = vmul.f32 %v6609_v8, %v6605_v62  ;;  %6446 = vmatprep.subr.bf16.mxu1 %v6710_v3  ;;  %v5690_v62 = vld [vmem:[%s7944_s15 + $0x1] ss:$0 sm:$0xff] }
0x2ec4   : > { %6244 = vmatmul.mubr.msk.f32.vlgmr.msra.gmra.mrb[50].mxu1 %vm973_vm4, %v4775_v9  ;;  %5731 = vst.msk [vmem:[%s7661_s30 + $0x18] sm:$0xff] %vm973_vm4, %v4775_v9  ;;  %s6620_s30 = scalar_lea.vmem %s6619_s1, 1024 }
0x2ec5   : > { %6273 = vmatprep.mubr.msk.f32.mxu1 %vm6711_vm2, %v6712_v6  ;;  %p6622_p1 = scmp.lt.s32.totalorder %s6620_s30, %s6614_s11 }
0x2ec7   : > { %p6623_p2 = por %p6622_p1, %p6621_p0 }
0x2ec8   : > { %6449 = vmatpush3.bf16.xpose.msk.msra.mxu1 %vm6919_vm1, %v6447_v30 }
0x2ec9   : > { %6450 = vmatprep.subr.bf16.mxu1 %v6710_v3  ;;  %p6624_p3 = pnand %p6623_p2, %p6617_p13 }
0x2f93   : > { %v4681_v14 = vpop.f32.mrb[48].mxu1 }
0x2f94   : > { %4857 = vrot.lane.b32.xlu1 %v4681_v14, %s8058_s22  ;;  %v6235_v16 = vpop.f32.mrb[49].mxu1 }
0x2f97   : > { %v4848_v17 = vpop.f32.mrb[50].mxu1 }
0x2f98   : > { %4861 = vrot.lane.b32.xlu0 %v4848_v17, %s8059_s6  ;;  %v6245_v19 = vpop.f32.mrb[51].mxu1  ;;  %v5236_v17 = vld [vmem:[%s8073_s0 + $0x8] sm:$0xff]  ;;  %s7850_s6 = scalar_lea.hbm %s8076_s27, %s5739_s2 }
0x3006   : > { %v4858_v20 = vpop.permute.xlu1 %4857 }
0x3007   : > { %v4865_v57 = vsel %vm1651_vm9, %v4864_v21, %v4858_v20 }
0x300a   : > { %v4862_v42 = vpop.permute.xlu0 %4861 }
0x300b   : > { %v4866_v22 = vsel %vm1653_vm10, %v4865_v57, %v4862_v42  ;;  %v5723_v42 = vld [vmem:[%s7945_s16 + $0x1] ss:$0 sm:$0xff] }
0x300c   : > { %6255 = vmatmul.mubr.msk.f32.vlgmr.msra.gmra.mrb[34].mxu0 %vm860_vm0, %v4866_v22 }
0x300d   : > { %6284 = vmatprep.mubr.msk.f32.mxu0 %vm6711_vm2, %v6712_v6  ;;  %6465 = vmatpush3.bf16.xpose.msk.msra.mxu0 %vm7351_vm12, %v6463_v53 }
0x300e   : > { %6466 = vmatprep.subr.bf16.mxu0 %v6710_v3 }
0x3015   : > { %6469 = vmatpush3.bf16.xpose.msk.msra.mxu0 %vm7351_vm12, %v6467_v55 }
0x3016   : > { %6470 = vmatprep.subr.bf16.mxu0 %v6710_v3 }
0x30df   : > { %v4954_v24 = vpop.f32.mrb[34].mxu0 }
0x30e0   : > { %v4955_v45 = vadd.f32 %v5681_v23, %v4954_v24  ;;  %v6256_v25 = vpop.f32.mrb[35].mxu0  ;;  %v5724_v23 = vld [vmem:[%s7946_s17 + $0x1] ss:$0 sm:$0xff] }
0x30e2   : > { %v4962_v26 = vadd.f32 %v4955_v45, %v7633_v56  ;;  %v5693_v56 = vld [vmem:[%s7947_s18 + $0x50] sm:$0xff] }
0x30e3   : > { %v6451_v33 = vpack.c.bf16 %v5694_v32, %v5693_v56 }
0x30e4   : > { %v4963_v18 = vsel %vm860_vm0, %v4962_v26, 0.0 }
0x30e5   : > { %4964 = vadd.xlane.f32.xlu1 %v4963_v18  ;;  %6453 = vmatpush3.bf16.xpose.msk.msra.mxu1 %vm6919_vm1, %v6451_v33 }
0x30e6   : > { %6454 = vmatprep.subr.bf16.mxu1 %v6710_v3 }
0x30ed   : > { %6457 = vmatpush3.bf16.xpose.msk.msra.mxu1 %vm6919_vm1, %v6455_v44 }
0x30ee   : > { %6458 = vmatprep.subr.bf16.mxu1 %v6710_v3  ;;  %v5705_v3 = vld [vmem:[%s7948_s19 + $0x1] ss:$0 sm:$0xff] }
0x30f5   : > { %6461 = vmatpush3.bf16.xpose.msk.msra.mxu1 %vm6919_vm1, %v6459_v31 }
0x3172   : > { %v4965_v35 = vpop.xlane.xlu1 %4964 }
0x3173   : > { %v4966_v36 = vmul.f32 0.03125, %v4965_v35 }
0x3175   : > { %v4967_v37 = vsub.f32 %v4962_v26, %v4966_v36 }
0x3177   : > { %v4968_v38 = vmul.f32 %v4967_v37, %v4967_v37 }
0x3179   : > { %v4969_v39 = vsel %vm860_vm0, %v4968_v38, 0.0 }
0x317a   : > { %4970 = vadd.xlane.f32.xlu0 %v4969_v39 }
0x3207   : > { %v4971_v58 = vpop.xlane.xlu0 %4970 }
0x3208   : > { %v4972_v59 = vmul.f32 0.03125, %v4971_v58 }
0x320a   : > { %v4973_v40 = vadd.f32 1e-05, %v4972_v59 }
0x320c   : > { %6610 = vrsqrt.f32 %v4973_v40 }
0x3216   : > { %v6611_v61 = vpop.eup %6610 }
0x3217   : > { %v4975_v48 = vmul.f32 %v6611_v61, %v4967_v37 }
0x3219   : > { %v4982_v47 = vmul.f32 %v5689_v15, %v4975_v48 }
0x321b   : > { %v4989_v63 = vadd.f32 %v5690_v62, %v4982_v47 }
0x321d   : > { %6274 = vmatmul.mubr.msk.f32.vlgmr.msra.gmra.mrb[52].mxu1 %vm860_vm0, %v4989_v63 }
0x32f0   : > { %v5107_v46 = vpop.f32.mrb[52].mxu1 }
0x32f1   : > { %v5108_v0 = vadd.f32 %v5705_v3, %v5107_v46  ;;  %v6275_v1 = vpop.f32.mrb[53].mxu1 }
0x32f3   : > { %v5111_v4 = vmax.f32 %v5108_v0, 0.0 }
0x32f5   : > { %6285 = vmatmul.mubr.msk.f32.vlgmr.msra.gmra.mrb[36].mxu0 %vm2918_vm11, %v5111_v4 }
0x32f6   : > { %6291 = vmatprep.mubr.msk.f32.mxu0 %vm6711_vm2, %v6712_v6  ;;  %v5235_v6 = vld [vmem:[%s8073_s0] sm:$0xff] }
0x32f7   : > { %v6471_v19 = vpack.c.bf16 %v5236_v17, %v5235_v6 }
0x32f9   : > { %6473 = vmatpush3.bf16.xpose.msk.msra.mxu0 %vm6919_vm1, %v6471_v19 }
0x33c8   : > { %v5199_v8 = vpop.f32.mrb[36].mxu0 }
0x33c9   : > { %v5200_v9 = vadd.f32 %v5715_v7, %v5199_v8  ;;  %v6286_v60 = vpop.f32.mrb[37].mxu0 }
0x33cb   : > { %v5207_v10 = vadd.f32 %v5200_v9, %v4989_v63 }
0x33cd   : > { %v5208_v11 = vsel %vm860_vm0, %v5207_v10, 0.0 }
0x33ce   : > { %5209 = vadd.xlane.f32.xlu0 %v5208_v11 }
0x345b   : > { %v5210_v28 = vpop.xlane.xlu0 %5209 }
0x345c   : > { %v5211_v12 = vmul.f32 0.03125, %v5210_v28 }
0x345e   : > { %v5212_v13 = vsub.f32 %v5207_v10, %v5211_v12 }
0x3460   : > { %v5213_v14 = vmul.f32 %v5212_v13, %v5212_v13 }
0x3462   : > { %v5214_v16 = vsel %vm860_vm0, %v5213_v14, 0.0 }
0x3463   : > { %5215 = vadd.xlane.f32.xlu1 %v5214_v16 }
0x34f0   : > { %v5216_v2 = vpop.xlane.xlu1 %5215 }
0x34f1   : > { %v5217_v20 = vmul.f32 0.03125, %v5216_v2 }
0x34f3   : > { %v5218_v21 = vadd.f32 1e-05, %v5217_v20 }
0x34f5   : > { %6612 = vrsqrt.f32 %v5218_v21 }
0x34ff   : > { %v6613_v57 = vpop.eup %6612 }
0x3500   : > { %v5220_v22 = vmul.f32 %v6613_v57, %v5212_v13 }
0x3502   : > { %v5227_v24 = vmul.f32 %v5723_v42, %v5220_v22 }
0x3504   : > { %v5234_v45 = vadd.f32 %v5724_v23, %v5227_v24 }
0x3506   : > { %6292 = vmatmul.mubr.msk.f32.vlgmr.msra.gmra.mrb[38].mxu0 %vm860_vm0, %v5234_v45 }
0x3507   : > { %6627 = shalt.err (!%p6624_p3)
}
0x3508   : > { %s6628_s7 = scalar_lea.hbm %s7850_s6, 512  ;;  %s6632_s2 = scalar_lea.hbm %s8076_s27, 1024 }
0x3509   : > { %p6629_p4 = scmp.ne.s32.totalorder %s7850_s6, %s6628_s7  ;;  %p6633_p9 = scmp.lt.u32.totalorder %s7850_s6, %s8076_s27 }
0x350a   : > { %p6634_p10 = scmp.lt.u32.totalorder %s6632_s2, %s6628_s7  ;;  %p6636_p12 = scmp.lt.u32.totalorder %s6628_s7, %s7850_s6 }
0x350b   : > { %p6630_p7 = pnand %p6629_p4, %p6900_p5 }
0x350c   : > { %p6635_p11 = por %p6634_p10, %p6633_p9 }
0x350d   : > { %p6631_p8 = pneg %p6630_p7 }
0x350e   : > { %p6637_p13 = por %p6636_p12, %p6635_p11 }
0x3510   : > { %p6638_p0 = pnand %p6637_p13, %p6631_p8 }
0x3512   : > { %6641 = shalt.err (!%p6638_p0)
}
0x3513   : > { %s6730_s11 = smov 128   ;;  %s5491_s23 = sshll.u32 %s7656_s9, 3 }
0x3514   : > { %6475 = dma.vmem_to_hbm [thread:$0]  (%p6900_p5), %s7845_s13, 512, %s7850_s6, %s5337_s10, %s6730_s11, %s6730_s11, %s8056_s25  }
0x3515   : > { %s8077_s7 = sld [smem:[#allocation32_spill]]  ;;  %s5734_s4 = sshll.u32 %s8074_s29, 7 }
0x3516   : > { %s794_s12 = scalar_lea.vmem [#allocation2], %s5491_s23  ;;  %s8078_s0 = sld [smem:[#allocation33_spill]] }
0x3517   : > { %s5350_s2 = sshll.u32 %s794_s12, 4  ;;  %s5332_s25 = scalar_lea.sflag [#allocation3], %s7656_s9  ;;  %s7887_s2 = int_to_ptr.vmem [resolvable:$true] %s5350_s2 }
0x3518   : > { %s6642_s13 = scalar_lea.vmem %s7887_s2, 128  ;;  %s6731_s29 = smov [#allocation2]  }
0x3519   : > { %p6643_p1 = scmp.ne.s32.totalorder %s7887_s2, %s6642_s13  ;;  %s6646_s6 = sshll.u32 %s6731_s29, 4  ;;  %s6647_s6 = int_to_ptr.vmem [resolvable:$false] %s6646_s6 }
0x351a   : > { %s6648_s10 = scalar_lea.vmem %s6647_s6, 256  ;;  %p6649_p4 = scmp.lt.s32.totalorder %s7887_s2, %s6647_s6 }
0x351b   : > { %v5725_v5 = vld [vmem:[%s8077_s7] ss:$0 sm:$0xff]  ;;  %p6644_p2 = pnand %p6643_p1, %p6900_p5  ;;  %p6650_p7 = scmp.lt.s32.totalorder %s6648_s10, %s6642_s13 }
0x351c   : > { %s7885_s3 = scalar_lea.hbm %s8078_s0, %s5734_s4 }
0x351d   : > { %p6645_p3 = pneg %p6644_p2  ;;  %p6651_p8 = por %p6650_p7, %p6649_p4 }
0x351f   : > { %p6652_p9 = pnand %p6651_p8, %p6645_p3 }
0x35d9   : > { %v5319_v25 = vpop.f32.mrb[38].mxu0 }
0x35da   : > { %v5320_v26 = vadd.f32 %v5725_v5, %v5319_v25  ;;  %v6293_v18 = vpop.f32.mrb[39].mxu0 }
0x35dc   : > { %5323 = vst.msk [vmem:[%s794_s12] sm:$0xff] %vm1651_vm9, %v5320_v26 }
0x35dd   : > { %6655 = shalt.err (!%p6652_p9)
}
0x35de   : > { %s6656_s9 = scalar_lea.hbm %s7885_s3, 128  ;;  %s6660_s1 = scalar_lea.hbm %s8078_s0, 256 }
0x35df   : > { %p6657_p10 = scmp.ne.s32.totalorder %s7885_s3, %s6656_s9  ;;  %p6661_p13 = scmp.lt.u32.totalorder %s7885_s3, %s8078_s0 }
0x35e0   : > { %p6662_p0 = scmp.lt.u32.totalorder %s6660_s1, %s6656_s9  ;;  %p6664_p2 = scmp.lt.u32.totalorder %s6656_s9, %s7885_s3 }
0x35e1   : > { %p6658_p11 = pnand %p6657_p10, %p6900_p5 }
0x35e2   : > { %p6663_p1 = por %p6662_p0, %p6661_p13 }
0x35e3   : > { %p6659_p12 = pneg %p6658_p11 }
0x35e4   : > { %p6665_p3 = por %p6664_p2, %p6663_p1 }
0x35e6   : > { %p6666_p4 = pnand %p6665_p3, %p6659_p12 }
0x35e8   : > { %6669 = shalt.err (!%p6666_p4)
}
0x35e9   : > { %6474 = dma.vmem_to_hbm [thread:$0]  (%p6900_p5), %s7887_s2, 128, %s7885_s3, %s5332_s25  }
0x35ea PF: > { %s8079_s4 = sld [smem:[#allocation11_spill]]  ;;  %s8080_s12 = sld [smem:[#allocation8_spill]] }
0x35f0   : > { %p6485_p7 = scmp.ge.s32.totalorder %s8079_s4, 2  ;;  %s5378_s8 = sand.u32 1, %s8080_s12  }
0x35f1   : > { %s5379_s13 = scalar_lea.sflag [#allocation3], %s5378_s8 }
0x35f2   : > { %p6479_p8 = pnand %p6485_p7, %p6904_p6 }
0x35f4   : > { %6687 = dma.done.wait (!%p6479_p8), %s5379_s13, 128  }
0x35f5   : > { %6689 = vsyncadd (!%p6479_p8), %s5379_s13, 4294967168  ;;  %s5388_s29 = scalar_lea.sflag [#allocation5], %s5378_s8 }
0x35f6   : > { %6691 = dma.done.wait (!%p6479_p8), %s5388_s29, 512  }
0x35f7   : > { %6693 = vsyncadd (!%p6479_p8), %s5388_s29, 4294966784  ;;  %s8082_s30 = sld [smem:[#allocation13_spill]]  ;;  %s8083_s29 = sld [smem:[#allocation9_spill]] }
0x35f8   : > { %s8084_s2 = sld [smem:[#allocation10_spill]]  ;;  %s8085_s6 = sld [smem:[#allocation14_spill]] }
0x35fd   : > { %p39_p5 = scmp.ge.s32.totalorder %s8082_s30, 4  }
0x35ff   :  { %41 = sbr.rel (!%p39_p5) target bundleno = 24 (0x18), region = 198 }
0x3606   :  { %5393 = vsyncpa [#allocation3], 1 }
0x3607   :  { %5395 = vsyncpa [#allocation3 + $0x1], 1 }
0x3608   :  { %5396 = vsyncpa [#allocation5], 1 }
0x3609   :  { %5398 = vsyncpa [#allocation5 + $0x1], 1 }

</bundles_post_ra>
